<compile_context>
chip_gen: v7x
topology: tpu7x:2x2x1
jax: 0.10.0
libtpu: 0.0.40
codegen_flags: <defaults>
</compile_context>

<pallas_src>
import functools
import math

import jax
import jax.numpy as jnp
from jax.experimental import pallas as pl
from jax.experimental.pallas import tpu as pltpu


def _encoder_layer_kernel(
    x_ref, bias_ref,
    wq_ref, bq_ref, wk_ref, bk_ref, wv_ref, bv_ref, wo_ref, bo_ref,
    w1_ref, b1_ref, w2_ref, b2_ref,
    gamma_ref, beta_ref,
    out_ref,
    ctx_ref,
    *, heads, rows, ffn_chunk,
):
    NS, D = x_ref.shape          # NS = rows * S (a block of `rows` batch elements)
    S = NS // rows
    dk = D // heads
    bf16 = jnp.bfloat16

    x = x_ref[...]               # (NS, D) f32
    xb = x.astype(bf16)

    def project(w_ref, b_ref):   # bf16 MXU inputs, f32 accumulation, f32 bias add
        return jnp.dot(xb, w_ref[...], preferred_element_type=jnp.float32) + b_ref[...]

    # 1/sqrt(dk) folded into q once (instead of scaling each (S,S) score tile per head).
    q = (project(wq_ref, bq_ref) * (1.0 / math.sqrt(dk))).astype(bf16)
    k = project(wk_ref, bk_ref).astype(bf16)
    v = project(wv_ref, bv_ref).astype(bf16)

    qkT = (((1,), (1,)), ((), ()))          # contract minor dims: A @ B.T

    # --- multi-head self-attention --------------------------------------------
    # Per-row, per-head attention. Each head's context tile is written into its
    # column slice of the ctx VMEM scratch so the output projection below is a
    # single full-depth (NS, D) @ (D, D) matmul (full MXU contraction depth).
    # TODO(synk): batch heads in one dot_general once the (S, heads*dk) ->
    #             (heads, S, dk) relayout is cheap/supported in Mosaic.
    for r in range(rows):                   # static unroll; rows is small
        rs = r * S
        q_r = q[rs:rs + S, :]
        k_r = k[rs:rs + S, :]
        v_r = v[rs:rs + S, :]
        bias_r = bias_ref[r]                # (S, S) additive mask bias, f32 (precomputed)
        for h in range(heads):
            lo = h * dk
            s = jax.lax.dot_general(q_r[:, lo:lo + dk], k_r[:, lo:lo + dk], qkT,
                                    preferred_element_type=jnp.float32)
            s = s + bias_r
            s_max = jnp.max(s, axis=-1, keepdims=True)
            p = jnp.exp(s - s_max)                                  # unnormalized probs
            row_sum = jnp.sum(p, axis=-1, keepdims=True)
            ctx = jnp.dot(p.astype(bf16), v_r[:, lo:lo + dk],
                          preferred_element_type=jnp.float32)       # (S, dk)
            # Deferred softmax normalization: EUP reciprocal applied to the (S, dk)
            # context instead of a VALU divide over the (S, S) prob tile.
            ctx_ref[rs:rs + S, lo:lo + dk] = ctx * pl.reciprocal(row_sum, approx=True)
            # TODO(synk): attention dropout (p=0.1) omitted — eval-mode identity.

    attn = jnp.dot(ctx_ref[...].astype(bf16), wo_ref[...],
                   preferred_element_type=jnp.float32) + bo_ref[...]

    # --- residual + LayerNorm (the PyTorch module reuses ONE LayerNorm twice) ----
    gamma = gamma_ref[...]
    beta = beta_ref[...]

    def layer_norm(y):                      # keep elementwise math in f32
        mu = jnp.mean(y, axis=-1, keepdims=True)
        var = jnp.mean(jnp.square(y - mu), axis=-1, keepdims=True)
        return (y - mu) * jax.lax.rsqrt(var + 1e-5) * gamma + beta

    # TODO(synk): residual dropout (p=0.1) omitted — eval-mode identity.
    x1 = layer_norm(attn + x)
    x1b = x1.astype(bf16)

    # --- feed-forward: fc1 -> GELU -> fc2, chunked over the hidden dim -----------
    M = w1_ref.shape[1]
    c = math.sqrt(2.0 / math.pi)
    ff = jnp.zeros((NS, D), dtype=jnp.float32)
    for mi in range(0, M, ffn_chunk):       # static unroll; keeps (NS, M) out of VMEM
        h1 = jnp.dot(x1b, w1_ref[:, mi:mi + ffn_chunk],
                     preferred_element_type=jnp.float32) + b1_ref[:, mi:mi + ffn_chunk]
        # TODO(synk): torch.nn.GELU default is exact erf; tanh approximation used here.
        h1 = 0.5 * h1 * (1.0 + jnp.tanh(c * (h1 + 0.044715 * (h1 * h1 * h1))))
        ff = ff + jnp.dot(h1.astype(bf16), w2_ref[mi:mi + ffn_chunk, :],
                          preferred_element_type=jnp.float32)
    ff = ff + b2_ref[...]

    out_ref[...] = layer_norm(ff + x1)


def _vmem_limit_bytes():
    """Generation-aware VMEM limit (v5e/v6e: 128 MiB physical, v7x: 64 MiB/TC)."""
    cap = 128 * 1024 * 1024
    try:
        cap = int(pltpu.get_tpu_info().vmem_capacity_bytes)
    except Exception:
        pass
    return int(min(64 * 1024 * 1024, (cap * 3) // 4))


def _pick_block_b(B, S):
    """Rows per grid step: amortize ~0.35us/step and fill MXU sublanes when S is small."""
    target = max(1, 128 // max(S, 1))
    bt = min(B, target)
    while B % bt:
        bt -= 1
    return max(bt, 1)


def _encoder_layer_impl(x, mask, params, *, heads, block_b, ffn_chunk,
                        single_buffer_weights):
    B, S, D = x.shape
    M = params["w1"].shape[1]
    assert D % heads == 0 and B % block_b == 0 and M % ffn_chunk == 0

    grid = (B // block_b,)
    NS = block_b * S

    x2 = x.reshape(B * S, D).astype(jnp.float32)
    # Additive attention bias computed ONCE outside the kernel (hoists the mask==0
    # compare out of the per-head loop). Equivalent to masked_fill(mask==0, -1e9)
    # for any query row that has at least one unmasked key.
    # TODO(synk): for pure padding masks a (B, S) key-validity vector would cut mask
    #             HBM/VMEM traffic by ~S x; kept (B,1,S,S)-compatible for generality.
    bias = jnp.where(mask == 0, jnp.float32(-1e9), jnp.float32(0.0)).reshape(B, S, S)

    bf16 = jnp.bfloat16
    wq = params["wq"].astype(bf16)
    wk = params["wk"].astype(bf16)
    wv = params["wv"].astype(bf16)
    wo = params["wo"].astype(bf16)
    w1 = params["w1"].astype(bf16)
    w2 = params["w2"].astype(bf16)

    def resident(shape):
        kwargs = {}
        if single_buffer_weights:
            # Constant index_map -> the block never changes; single-buffer it.
            kwargs["pipeline_mode"] = pl.Buffered(1)
        return pl.BlockSpec(shape, lambda i: (0,) * len(shape), **kwargs)

    in_specs = [
        pl.BlockSpec((NS, D), lambda i: (i, 0)),               # this step's rows
        pl.BlockSpec((block_b, S, S), lambda i: (i, 0, 0)),    # additive mask bias
        resident((D, D)), resident((1, D)),                    # Wq, bq
        resident((D, D)), resident((1, D)),                    # Wk, bk
        resident((D, D)), resident((1, D)),                    # Wv, bv
        resident((D, D)), resident((1, D)),                    # Wo, bo
        resident((D, M)), resident((1, M)),                    # W1, b1
        resident((M, D)), resident((1, D)),                    # W2, b2
        resident((1, D)), resident((1, D)),                    # LayerNorm gamma, beta
    ]

    out = pl.pallas_call(
        functools.partial(_encoder_layer_kernel, heads=heads, rows=block_b,
                          ffn_chunk=ffn_chunk),
        out_shape=jax.ShapeDtypeStruct((B * S, D), jnp.float32),
        grid_spec=pltpu.PrefetchScalarGridSpec(
            num_scalar_prefetch=0,
            grid=grid,
            in_specs=in_specs,
            out_specs=pl.BlockSpec((NS, D), lambda i: (i, 0)),
            scratch_shapes=[pltpu.VMEM((NS, D), jnp.float32)],   # per-step ctx assembly
        ),
        compiler_params=pltpu.CompilerParams(
            dimension_semantics=("parallel",),
            vmem_limit_bytes=_vmem_limit_bytes(),
        ),
    )(x2, bias,
      wq, params["bq"], wk, params["bk"], wv, params["bv"], wo, params["bo"],
      w1, params["b1"], w2, params["b2"], params["gamma"], params["beta"])
    return out.reshape(B, S, D)


def encoder_layer(x, mask, params, *, heads, block_b=None, ffn_chunk=512):
    """x: (B, S, D) f32, mask: (B, 1, S, S) int. Returns (B, S, D) f32."""
    B, S, D = x.shape
    M = params["w1"].shape[1]
    if block_b is None:
        block_b = _pick_block_b(B, S)
    ffn_chunk = min(ffn_chunk, M)
    if M % ffn_chunk:
        ffn_chunk = M
    kwargs = dict(heads=heads, block_b=block_b, ffn_chunk=ffn_chunk)
    try:
        out = _encoder_layer_impl(x, mask, params, single_buffer_weights=True, **kwargs)
        return jax.block_until_ready(out)
    except Exception:
        # Fallback for JAX versions without BlockSpec pipeline_mode single-buffering.
        return _encoder_layer_impl(x, mask, params, single_buffer_weights=False, **kwargs)


def _reference(x, mask, params, heads):
    """Pure-JAX f32 reference mirroring the PyTorch forward (eval mode)."""
    B, S, D = x.shape
    dk = D // heads
    hp = jax.lax.Precision.HIGHEST

    def linear(a, w, b):
        return jnp.matmul(a, w, precision=hp) + b

    q = linear(x, params["wq"], params["bq"]).reshape(B, S, heads, dk).transpose(0, 2, 1, 3)
    k = linear(x, params["wk"], params["bk"]).reshape(B, S, heads, dk).transpose(0, 2, 1, 3)
    v = linear(x, params["wv"], params["bv"]).reshape(B, S, heads, dk).transpose(0, 2, 1, 3)

    s = jnp.einsum("bhqd,bhkd->bhqk", q, k, precision=hp) / math.sqrt(dk)
    s = jnp.where(mask == 0, -1e9, s)            # mask (B,1,S,S) broadcasts over heads
    w = jax.nn.softmax(s, axis=-1)
    ctx = jnp.einsum("bhqk,bhkd->bhqd", w, v, precision=hp)
    ctx = ctx.transpose(0, 2, 1, 3).reshape(B, S, D)
    attn_out = linear(ctx, params["wo"], params["bo"])

    def ln(y):
        mu = y.mean(-1, keepdims=True)
        var = ((y - mu) ** 2).mean(-1, keepdims=True)
        return (y - mu) / jnp.sqrt(var + 1e-5) * params["gamma"] + params["beta"]

    x1 = ln(attn_out + x)
    h = linear(x1, params["w1"], params["b1"])
    c = math.sqrt(2.0 / math.pi)
    h = 0.5 * h * (1.0 + jnp.tanh(c * (h + 0.044715 * h ** 3)))
    ff = linear(h, params["w2"], params["b2"])
    return ln(ff + x1)


def _init_params(key, d_model, middle):
    ks = jax.random.split(key, 14)
    D, M = d_model, middle

    def w(k, shape, scale=0.1):
        return scale * jax.random.normal(k, shape, dtype=jnp.float32)

    # Weights stored as (in, out): y = x @ W + b (transposed torch.nn.Linear layout,
    # semantically equivalent forward pass).
    return {
        "wq": w(ks[0], (D, D)), "bq": w(ks[1], (1, D)),
        "wk": w(ks[2], (D, D)), "bk": w(ks[3], (1, D)),
        "wv": w(ks[4], (D, D)), "bv": w(ks[5], (1, D)),
        "wo": w(ks[6], (D, D)), "bo": w(ks[7], (1, D)),
        "w1": w(ks[8], (D, M)), "b1": w(ks[9], (1, M)),
        "w2": w(ks[10], (M, D)), "b2": w(ks[11], (1, D)),
        "gamma": 1.0 + 0.1 * jax.random.normal(ks[12], (1, D), dtype=jnp.float32),
        "beta": 0.1 * jax.random.normal(ks[13], (1, D), dtype=jnp.float32),
    }


if __name__ == "__main__":
    # Small shapes consistent with the module's forward (d_model -> 32, heads -> 4).
    B, S, D, HEADS = 2, 8, 32, 4
    M = 4 * D                               # feed_forward_hidden = 4 * d_model

    key = jax.random.PRNGKey(0)
    k_params, k_x = jax.random.split(key, 2)

    params = _init_params(k_params, D, M)
    x = jax.random.normal(k_x, (B, S, D), dtype=jnp.float32)

    # Padding-style attention mask: batch 1 has its last two key positions masked.
    mask = jnp.ones((B, 1, S, S), dtype=jnp.int32)
    mask = mask.at[1, :, :, S - 2:].set(0)

    out = encoder_layer(x, mask, params, heads=HEADS)
    out = jax.block_until_ready(out)

    ref = _reference(x, mask, params, HEADS)
    assert out.shape == (B, S, D)
    # bf16 MXU inputs + approximate reciprocal -> relaxed tolerance vs the f32 reference.
    max_err = float(jnp.max(jnp.abs(out - ref)))
    assert jnp.allclose(out, ref, atol=5e-2, rtol=5e-2), f"mismatch vs reference: {max_err}"

    print("KERNEL_OK")
</pallas_src>

<mosaic_0001>
module attributes {stable_mosaic.version = 11 : i64} {
  func.func @_encoder_layer_kernel(%arg0: i32, %arg1: memref<16x32xf32, #tpu.memory_space<vmem>>, %arg2: memref<2x8x8xf32, #tpu.memory_space<vmem>>, %arg3: memref<32x32xbf16, #tpu.memory_space<vmem>>, %arg4: memref<1x32xf32, #tpu.memory_space<vmem>>, %arg5: memref<32x32xbf16, #tpu.memory_space<vmem>>, %arg6: memref<1x32xf32, #tpu.memory_space<vmem>>, %arg7: memref<32x32xbf16, #tpu.memory_space<vmem>>, %arg8: memref<1x32xf32, #tpu.memory_space<vmem>>, %arg9: memref<32x32xbf16, #tpu.memory_space<vmem>>, %arg10: memref<1x32xf32, #tpu.memory_space<vmem>>, %arg11: memref<32x128xbf16, #tpu.memory_space<vmem>>, %arg12: memref<1x128xf32, #tpu.memory_space<vmem>>, %arg13: memref<128x32xbf16, #tpu.memory_space<vmem>>, %arg14: memref<1x32xf32, #tpu.memory_space<vmem>>, %arg15: memref<1x32xf32, #tpu.memory_space<vmem>>, %arg16: memref<1x32xf32, #tpu.memory_space<vmem>>, %arg17: memref<16x32xf32, #tpu.memory_space<vmem>>, %arg18: memref<16x32xf32, #tpu.memory_space<vmem>>) attributes {dimension_semantics = [#tpu.dimension_semantics<parallel>], iteration_bounds = array<i64: 1>, scalar_prefetch = 0 : i64, scratch_operands = 1 : i64, tpu.core_type = #tpu.core_type<tc>, window_params = [{transform_indices = @transform_0, window_bounds = array<i64: 16, 32>}, {transform_indices = @transform_1, window_bounds = array<i64: 2, 8, 8>}, {pipeline_mode = #tpu.pipeline_mode<synchronous>, transform_indices = @transform_2, window_bounds = array<i64: 32, 32>}, {pipeline_mode = #tpu.pipeline_mode<synchronous>, transform_indices = @transform_3, window_bounds = array<i64: 1, 32>}, {pipeline_mode = #tpu.pipeline_mode<synchronous>, transform_indices = @transform_4, window_bounds = array<i64: 32, 32>}, {pipeline_mode = #tpu.pipeline_mode<synchronous>, transform_indices = @transform_5, window_bounds = array<i64: 1, 32>}, {pipeline_mode = #tpu.pipeline_mode<synchronous>, transform_indices = @transform_6, window_bounds = array<i64: 32, 32>}, {pipeline_mode = #tpu.pipeline_mode<synchronous>, transform_indices = @transform_7, window_bounds = array<i64: 1, 32>}, {pipeline_mode = #tpu.pipeline_mode<synchronous>, transform_indices = @transform_8, window_bounds = array<i64: 32, 32>}, {pipeline_mode = #tpu.pipeline_mode<synchronous>, transform_indices = @transform_9, window_bounds = array<i64: 1, 32>}, {pipeline_mode = #tpu.pipeline_mode<synchronous>, transform_indices = @transform_10, window_bounds = array<i64: 32, 128>}, {pipeline_mode = #tpu.pipeline_mode<synchronous>, transform_indices = @transform_11, window_bounds = array<i64: 1, 128>}, {pipeline_mode = #tpu.pipeline_mode<synchronous>, transform_indices = @transform_12, window_bounds = array<i64: 128, 32>}, {pipeline_mode = #tpu.pipeline_mode<synchronous>, transform_indices = @transform_13, window_bounds = array<i64: 1, 32>}, {pipeline_mode = #tpu.pipeline_mode<synchronous>, transform_indices = @transform_14, window_bounds = array<i64: 1, 32>}, {pipeline_mode = #tpu.pipeline_mode<synchronous>, transform_indices = @transform_15, window_bounds = array<i64: 1, 32>}, {transform_indices = @transform_16, window_bounds = array<i64: 16, 32>}]} {
    %c0 = arith.constant 0 : index
    %c0_0 = arith.constant 0 : index
    %0 = vector.load %arg1[%c0, %c0_0] : memref<16x32xf32, #tpu.memory_space<vmem>>, vector<16x32xf32>
    %1 = arith.truncf %0 : vector<16x32xf32> to vector<16x32xbf16>
    %c0_1 = arith.constant 0 : index
    %c0_2 = arith.constant 0 : index
    %2 = vector.load %arg3[%c0_1, %c0_2] : memref<32x32xbf16, #tpu.memory_space<vmem>>, vector<32x32xbf16>
    %cst = arith.constant dense<0.000000e+00> : vector<16x32xf32>
    %3 = tpu.matmul %1, %2, %cst {dimension_numbers = #tpu.dot_dimension_numbers<[1], [0], [0], [1], [0, 0, 1, 1], [], []>} : vector<16x32xbf16>, vector<32x32xbf16>, vector<16x32xf32> -> vector<16x32xf32>
    %c0_3 = arith.constant 0 : index
    %c0_4 = arith.constant 0 : index
    %4 = vector.load %arg4[%c0_3, %c0_4] : memref<1x32xf32, #tpu.memory_space<vmem>>, vector<1x32xf32>
    %5 = vector.broadcast %4 : vector<1x32xf32> to vector<16x32xf32>
    %6 = arith.addf %3, %5 : vector<16x32xf32>
    %cst_5 = arith.constant 0.353553385 : f32
    %7 = vector.broadcast %cst_5 : f32 to vector<16x32xf32>
    %8 = arith.mulf %6, %7 : vector<16x32xf32>
    %9 = arith.truncf %8 : vector<16x32xf32> to vector<16x32xbf16>
    %c0_6 = arith.constant 0 : index
    %c0_7 = arith.constant 0 : index
    %10 = vector.load %arg5[%c0_6, %c0_7] : memref<32x32xbf16, #tpu.memory_space<vmem>>, vector<32x32xbf16>
    %cst_8 = arith.constant dense<0.000000e+00> : vector<16x32xf32>
    %11 = tpu.matmul %1, %10, %cst_8 {dimension_numbers = #tpu.dot_dimension_numbers<[1], [0], [0], [1], [0, 0, 1, 1], [], []>} : vector<16x32xbf16>, vector<32x32xbf16>, vector<16x32xf32> -> vector<16x32xf32>
    %c0_9 = arith.constant 0 : index
    %c0_10 = arith.constant 0 : index
    %12 = vector.load %arg6[%c0_9, %c0_10] : memref<1x32xf32, #tpu.memory_space<vmem>>, vector<1x32xf32>
    %13 = vector.broadcast %12 : vector<1x32xf32> to vector<16x32xf32>
    %14 = arith.addf %11, %13 : vector<16x32xf32>
    %15 = arith.truncf %14 : vector<16x32xf32> to vector<16x32xbf16>
    %c0_11 = arith.constant 0 : index
    %c0_12 = arith.constant 0 : index
    %16 = vector.load %arg7[%c0_11, %c0_12] : memref<32x32xbf16, #tpu.memory_space<vmem>>, vector<32x32xbf16>
    %cst_13 = arith.constant dense<0.000000e+00> : vector<16x32xf32>
    %17 = tpu.matmul %1, %16, %cst_13 {dimension_numbers = #tpu.dot_dimension_numbers<[1], [0], [0], [1], [0, 0, 1, 1], [], []>} : vector<16x32xbf16>, vector<32x32xbf16>, vector<16x32xf32> -> vector<16x32xf32>
    %c0_14 = arith.constant 0 : index
    %c0_15 = arith.constant 0 : index
    %18 = vector.load %arg8[%c0_14, %c0_15] : memref<1x32xf32, #tpu.memory_space<vmem>>, vector<1x32xf32>
    %19 = vector.broadcast %18 : vector<1x32xf32> to vector<16x32xf32>
    %20 = arith.addf %17, %19 : vector<16x32xf32>
    %21 = arith.truncf %20 : vector<16x32xf32> to vector<16x32xbf16>
    %22 = vector.extract_strided_slice %9 {offsets = [0, 0], sizes = [8, 32], strides = [1, 1]} : vector<16x32xbf16> to vector<8x32xbf16>
    %23 = vector.extract_strided_slice %15 {offsets = [0, 0], sizes = [8, 32], strides = [1, 1]} : vector<16x32xbf16> to vector<8x32xbf16>
    %24 = vector.extract_strided_slice %21 {offsets = [0, 0], sizes = [8, 32], strides = [1, 1]} : vector<16x32xbf16> to vector<8x32xbf16>
    %c0_16 = arith.constant 0 : index
    %c0_17 = arith.constant 0 : index
    %c0_18 = arith.constant 0 : index
    %25 = vector.load %arg2[%c0_16, %c0_17, %c0_18] : memref<2x8x8xf32, #tpu.memory_space<vmem>>, vector<1x8x8xf32>
    %26 = vector.shape_cast %25 : vector<1x8x8xf32> to vector<8x8xf32>
    %27 = vector.extract_strided_slice %22 {offsets = [0, 0], sizes = [8, 8], strides = [1, 1]} : vector<8x32xbf16> to vector<8x8xbf16>
    %28 = vector.extract_strided_slice %23 {offsets = [0, 0], sizes = [8, 8], strides = [1, 1]} : vector<8x32xbf16> to vector<8x8xbf16>
    %cst_19 = arith.constant dense<0.000000e+00> : vector<8x8xf32>
    %29 = tpu.matmul %27, %28, %cst_19 {dimension_numbers = #tpu.dot_dimension_numbers<[1], [1], [0], [0], [0, 0, 1, 0], [], []>} : vector<8x8xbf16>, vector<8x8xbf16>, vector<8x8xf32> -> vector<8x8xf32>
    %30 = arith.addf %29, %26 : vector<8x8xf32>
    %cst_20 = arith.constant dense<0xFF800000> : vector<8xf32>
    %31 = vector.multi_reduction <maximumf>, %30, %cst_20 [1] : vector<8x8xf32> to vector<8xf32>
    %32 = vector.shape_cast %31 : vector<8xf32> to vector<8x1xf32>
    %33 = vector.broadcast %32 : vector<8x1xf32> to vector<8x8xf32>
    %34 = arith.subf %30, %33 : vector<8x8xf32>
    %35 = math.exp %34 : vector<8x8xf32>
    %cst_21 = arith.constant dense<0.000000e+00> : vector<8xf32>
    %36 = vector.multi_reduction <add>, %35, %cst_21 [1] : vector<8x8xf32> to vector<8xf32>
    %37 = vector.shape_cast %36 : vector<8xf32> to vector<8x1xf32>
    %38 = arith.truncf %35 : vector<8x8xf32> to vector<8x8xbf16>
    %39 = vector.extract_strided_slice %24 {offsets = [0, 0], sizes = [8, 8], strides = [1, 1]} : vector<8x32xbf16> to vector<8x8xbf16>
    %cst_22 = arith.constant dense<0.000000e+00> : vector<8x8xf32>
    %40 = tpu.matmul %38, %39, %cst_22 {dimension_numbers = #tpu.dot_dimension_numbers<[1], [0], [0], [1], [0, 0, 1, 1], [], []>} : vector<8x8xbf16>, vector<8x8xbf16>, vector<8x8xf32> -> vector<8x8xf32>
    %41 = tpu.reciprocal %37 {approx = true} : vector<8x1xf32> -> vector<8x1xf32>
    %42 = vector.broadcast %41 : vector<8x1xf32> to vector<8x8xf32>
    %43 = arith.mulf %40, %42 : vector<8x8xf32>
    %c0_23 = arith.constant 0 : index
    %c0_24 = arith.constant 0 : index
    %44 = vector.load %arg18[%c0_23, %c0_24] : memref<16x32xf32, #tpu.memory_space<vmem>>, vector<8x8xf32>
    tpu.vector_store %arg18[%c0_23, %c0_24], %43 {strides = array<i32>} : memref<16x32xf32, #tpu.memory_space<vmem>>, vector<8x8xf32>,
    %45 = vector.extract_strided_slice %22 {offsets = [0, 8], sizes = [8, 8], strides = [1, 1]} : vector<8x32xbf16> to vector<8x8xbf16>
    %46 = vector.extract_strided_slice %23 {offsets = [0, 8], sizes = [8, 8], strides = [1, 1]} : vector<8x32xbf16> to vector<8x8xbf16>
    %cst_25 = arith.constant dense<0.000000e+00> : vector<8x8xf32>
    %47 = tpu.matmul %45, %46, %cst_25 {dimension_numbers = #tpu.dot_dimension_numbers<[1], [1], [0], [0], [0, 0, 1, 0], [], []>} : vector<8x8xbf16>, vector<8x8xbf16>, vector<8x8xf32> -> vector<8x8xf32>
    %48 = arith.addf %47, %26 : vector<8x8xf32>
    %cst_26 = arith.constant dense<0xFF800000> : vector<8xf32>
    %49 = vector.multi_reduction <maximumf>, %48, %cst_26 [1] : vector<8x8xf32> to vector<8xf32>
    %50 = vector.shape_cast %49 : vector<8xf32> to vector<8x1xf32>
    %51 = vector.broadcast %50 : vector<8x1xf32> to vector<8x8xf32>
    %52 = arith.subf %48, %51 : vector<8x8xf32>
    %53 = math.exp %52 : vector<8x8xf32>
    %cst_27 = arith.constant dense<0.000000e+00> : vector<8xf32>
    %54 = vector.multi_reduction <add>, %53, %cst_27 [1] : vector<8x8xf32> to vector<8xf32>
    %55 = vector.shape_cast %54 : vector<8xf32> to vector<8x1xf32>
    %56 = arith.truncf %53 : vector<8x8xf32> to vector<8x8xbf16>
    %57 = vector.extract_strided_slice %24 {offsets = [0, 8], sizes = [8, 8], strides = [1, 1]} : vector<8x32xbf16> to vector<8x8xbf16>
    %cst_28 = arith.constant dense<0.000000e+00> : vector<8x8xf32>
    %58 = tpu.matmul %56, %57, %cst_28 {dimension_numbers = #tpu.dot_dimension_numbers<[1], [0], [0], [1], [0, 0, 1, 1], [], []>} : vector<8x8xbf16>, vector<8x8xbf16>, vector<8x8xf32> -> vector<8x8xf32>
    %59 = tpu.reciprocal %55 {approx = true} : vector<8x1xf32> -> vector<8x1xf32>
    %60 = vector.broadcast %59 : vector<8x1xf32> to vector<8x8xf32>
    %61 = arith.mulf %58, %60 : vector<8x8xf32>
    %c0_29 = arith.constant 0 : index
    %c8 = arith.constant 8 : index
    %62 = vector.load %arg18[%c0_29, %c8] : memref<16x32xf32, #tpu.memory_space<vmem>>, vector<8x8xf32>
    tpu.vector_store %arg18[%c0_29, %c8], %61 {strides = array<i32>} : memref<16x32xf32, #tpu.memory_space<vmem>>, vector<8x8xf32>,
    %63 = vector.extract_strided_slice %22 {offsets = [0, 16], sizes = [8, 8], strides = [1, 1]} : vector<8x32xbf16> to vector<8x8xbf16>
    %64 = vector.extract_strided_slice %23 {offsets = [0, 16], sizes = [8, 8], strides = [1, 1]} : vector<8x32xbf16> to vector<8x8xbf16>
    %cst_30 = arith.constant dense<0.000000e+00> : vector<8x8xf32>
    %65 = tpu.matmul %63, %64, %cst_30 {dimension_numbers = #tpu.dot_dimension_numbers<[1], [1], [0], [0], [0, 0, 1, 0], [], []>} : vector<8x8xbf16>, vector<8x8xbf16>, vector<8x8xf32> -> vector<8x8xf32>
    %66 = arith.addf %65, %26 : vector<8x8xf32>
    %cst_31 = arith.constant dense<0xFF800000> : vector<8xf32>
    %67 = vector.multi_reduction <maximumf>, %66, %cst_31 [1] : vector<8x8xf32> to vector<8xf32>
    %68 = vector.shape_cast %67 : vector<8xf32> to vector<8x1xf32>
    %69 = vector.broadcast %68 : vector<8x1xf32> to vector<8x8xf32>
    %70 = arith.subf %66, %69 : vector<8x8xf32>
    %71 = math.exp %70 : vector<8x8xf32>
    %cst_32 = arith.constant dense<0.000000e+00> : vector<8xf32>
    %72 = vector.multi_reduction <add>, %71, %cst_32 [1] : vector<8x8xf32> to vector<8xf32>
    %73 = vector.shape_cast %72 : vector<8xf32> to vector<8x1xf32>
    %74 = arith.truncf %71 : vector<8x8xf32> to vector<8x8xbf16>
    %75 = vector.extract_strided_slice %24 {offsets = [0, 16], sizes = [8, 8], strides = [1, 1]} : vector<8x32xbf16> to vector<8x8xbf16>
    %cst_33 = arith.constant dense<0.000000e+00> : vector<8x8xf32>
    %76 = tpu.matmul %74, %75, %cst_33 {dimension_numbers = #tpu.dot_dimension_numbers<[1], [0], [0], [1], [0, 0, 1, 1], [], []>} : vector<8x8xbf16>, vector<8x8xbf16>, vector<8x8xf32> -> vector<8x8xf32>
    %77 = tpu.reciprocal %73 {approx = true} : vector<8x1xf32> -> vector<8x1xf32>
    %78 = vector.broadcast %77 : vector<8x1xf32> to vector<8x8xf32>
    %79 = arith.mulf %76, %78 : vector<8x8xf32>
    %c0_34 = arith.constant 0 : index
    %c16 = arith.constant 16 : index
    %80 = vector.load %arg18[%c0_34, %c16] : memref<16x32xf32, #tpu.memory_space<vmem>>, vector<8x8xf32>
    tpu.vector_store %arg18[%c0_34, %c16], %79 {strides = array<i32>} : memref<16x32xf32, #tpu.memory_space<vmem>>, vector<8x8xf32>,
    %81 = vector.extract_strided_slice %22 {offsets = [0, 24], sizes = [8, 8], strides = [1, 1]} : vector<8x32xbf16> to vector<8x8xbf16>
    %82 = vector.extract_strided_slice %23 {offsets = [0, 24], sizes = [8, 8], strides = [1, 1]} : vector<8x32xbf16> to vector<8x8xbf16>
    %cst_35 = arith.constant dense<0.000000e+00> : vector<8x8xf32>
    %83 = tpu.matmul %81, %82, %cst_35 {dimension_numbers = #tpu.dot_dimension_numbers<[1], [1], [0], [0], [0, 0, 1, 0], [], []>} : vector<8x8xbf16>, vector<8x8xbf16>, vector<8x8xf32> -> vector<8x8xf32>
    %84 = arith.addf %83, %26 : vector<8x8xf32>
    %cst_36 = arith.constant dense<0xFF800000> : vector<8xf32>
    %85 = vector.multi_reduction <maximumf>, %84, %cst_36 [1] : vector<8x8xf32> to vector<8xf32>
    %86 = vector.shape_cast %85 : vector<8xf32> to vector<8x1xf32>
    %87 = vector.broadcast %86 : vector<8x1xf32> to vector<8x8xf32>
    %88 = arith.subf %84, %87 : vector<8x8xf32>
    %89 = math.exp %88 : vector<8x8xf32>
    %cst_37 = arith.constant dense<0.000000e+00> : vector<8xf32>
    %90 = vector.multi_reduction <add>, %89, %cst_37 [1] : vector<8x8xf32> to vector<8xf32>
    %91 = vector.shape_cast %90 : vector<8xf32> to vector<8x1xf32>
    %92 = arith.truncf %89 : vector<8x8xf32> to vector<8x8xbf16>
    %93 = vector.extract_strided_slice %24 {offsets = [0, 24], sizes = [8, 8], strides = [1, 1]} : vector<8x32xbf16> to vector<8x8xbf16>
    %cst_38 = arith.constant dense<0.000000e+00> : vector<8x8xf32>
    %94 = tpu.matmul %92, %93, %cst_38 {dimension_numbers = #tpu.dot_dimension_numbers<[1], [0], [0], [1], [0, 0, 1, 1], [], []>} : vector<8x8xbf16>, vector<8x8xbf16>, vector<8x8xf32> -> vector<8x8xf32>
    %95 = tpu.reciprocal %91 {approx = true} : vector<8x1xf32> -> vector<8x1xf32>
    %96 = vector.broadcast %95 : vector<8x1xf32> to vector<8x8xf32>
    %97 = arith.mulf %94, %96 : vector<8x8xf32>
    %c0_39 = arith.constant 0 : index
    %c24 = arith.constant 24 : index
    %98 = vector.load %arg18[%c0_39, %c24] : memref<16x32xf32, #tpu.memory_space<vmem>>, vector<8x8xf32>
    tpu.vector_store %arg18[%c0_39, %c24], %97 {strides = array<i32>} : memref<16x32xf32, #tpu.memory_space<vmem>>, vector<8x8xf32>,
    %99 = vector.extract_strided_slice %9 {offsets = [8, 0], sizes = [8, 32], strides = [1, 1]} : vector<16x32xbf16> to vector<8x32xbf16>
    %100 = vector.extract_strided_slice %15 {offsets = [8, 0], sizes = [8, 32], strides = [1, 1]} : vector<16x32xbf16> to vector<8x32xbf16>
    %101 = vector.extract_strided_slice %21 {offsets = [8, 0], sizes = [8, 32], strides = [1, 1]} : vector<16x32xbf16> to vector<8x32xbf16>
    %c1 = arith.constant 1 : index
    %c0_40 = arith.constant 0 : index
    %c0_41 = arith.constant 0 : index
    %102 = vector.load %arg2[%c1, %c0_40, %c0_41] : memref<2x8x8xf32, #tpu.memory_space<vmem>>, vector<1x8x8xf32>
    %103 = vector.shape_cast %102 : vector<1x8x8xf32> to vector<8x8xf32>
    %104 = vector.extract_strided_slice %99 {offsets = [0, 0], sizes = [8, 8], strides = [1, 1]} : vector<8x32xbf16> to vector<8x8xbf16>
    %105 = vector.extract_strided_slice %100 {offsets = [0, 0], sizes = [8, 8], strides = [1, 1]} : vector<8x32xbf16> to vector<8x8xbf16>
    %cst_42 = arith.constant dense<0.000000e+00> : vector<8x8xf32>
    %106 = tpu.matmul %104, %105, %cst_42 {dimension_numbers = #tpu.dot_dimension_numbers<[1], [1], [0], [0], [0, 0, 1, 0], [], []>} : vector<8x8xbf16>, vector<8x8xbf16>, vector<8x8xf32> -> vector<8x8xf32>
    %107 = arith.addf %106, %103 : vector<8x8xf32>
    %cst_43 = arith.constant dense<0xFF800000> : vector<8xf32>
    %108 = vector.multi_reduction <maximumf>, %107, %cst_43 [1] : vector<8x8xf32> to vector<8xf32>
    %109 = vector.shape_cast %108 : vector<8xf32> to vector<8x1xf32>
    %110 = vector.broadcast %109 : vector<8x1xf32> to vector<8x8xf32>
    %111 = arith.subf %107, %110 : vector<8x8xf32>
    %112 = math.exp %111 : vector<8x8xf32>
    %cst_44 = arith.constant dense<0.000000e+00> : vector<8xf32>
    %113 = vector.multi_reduction <add>, %112, %cst_44 [1] : vector<8x8xf32> to vector<8xf32>
    %114 = vector.shape_cast %113 : vector<8xf32> to vector<8x1xf32>
    %115 = arith.truncf %112 : vector<8x8xf32> to vector<8x8xbf16>
    %116 = vector.extract_strided_slice %101 {offsets = [0, 0], sizes = [8, 8], strides = [1, 1]} : vector<8x32xbf16> to vector<8x8xbf16>
    %cst_45 = arith.constant dense<0.000000e+00> : vector<8x8xf32>
    %117 = tpu.matmul %115, %116, %cst_45 {dimension_numbers = #tpu.dot_dimension_numbers<[1], [0], [0], [1], [0, 0, 1, 1], [], []>} : vector<8x8xbf16>, vector<8x8xbf16>, vector<8x8xf32> -> vector<8x8xf32>
    %118 = tpu.reciprocal %114 {approx = true} : vector<8x1xf32> -> vector<8x1xf32>
    %119 = vector.broadcast %118 : vector<8x1xf32> to vector<8x8xf32>
    %120 = arith.mulf %117, %119 : vector<8x8xf32>
    %c8_46 = arith.constant 8 : index
    %c0_47 = arith.constant 0 : index
    %121 = vector.load %arg18[%c8_46, %c0_47] : memref<16x32xf32, #tpu.memory_space<vmem>>, vector<8x8xf32>
    tpu.vector_store %arg18[%c8_46, %c0_47], %120 {strides = array<i32>} : memref<16x32xf32, #tpu.memory_space<vmem>>, vector<8x8xf32>,
    %122 = vector.extract_strided_slice %99 {offsets = [0, 8], sizes = [8, 8], strides = [1, 1]} : vector<8x32xbf16> to vector<8x8xbf16>
    %123 = vector.extract_strided_slice %100 {offsets = [0, 8], sizes = [8, 8], strides = [1, 1]} : vector<8x32xbf16> to vector<8x8xbf16>
    %cst_48 = arith.constant dense<0.000000e+00> : vector<8x8xf32>
    %124 = tpu.matmul %122, %123, %cst_48 {dimension_numbers = #tpu.dot_dimension_numbers<[1], [1], [0], [0], [0, 0, 1, 0], [], []>} : vector<8x8xbf16>, vector<8x8xbf16>, vector<8x8xf32> -> vector<8x8xf32>
    %125 = arith.addf %124, %103 : vector<8x8xf32>
    %cst_49 = arith.constant dense<0xFF800000> : vector<8xf32>
    %126 = vector.multi_reduction <maximumf>, %125, %cst_49 [1] : vector<8x8xf32> to vector<8xf32>
    %127 = vector.shape_cast %126 : vector<8xf32> to vector<8x1xf32>
    %128 = vector.broadcast %127 : vector<8x1xf32> to vector<8x8xf32>
    %129 = arith.subf %125, %128 : vector<8x8xf32>
    %130 = math.exp %129 : vector<8x8xf32>
    %cst_50 = arith.constant dense<0.000000e+00> : vector<8xf32>
    %131 = vector.multi_reduction <add>, %130, %cst_50 [1] : vector<8x8xf32> to vector<8xf32>
    %132 = vector.shape_cast %131 : vector<8xf32> to vector<8x1xf32>
    %133 = arith.truncf %130 : vector<8x8xf32> to vector<8x8xbf16>
    %134 = vector.extract_strided_slice %101 {offsets = [0, 8], sizes = [8, 8], strides = [1, 1]} : vector<8x32xbf16> to vector<8x8xbf16>
    %cst_51 = arith.constant dense<0.000000e+00> : vector<8x8xf32>
    %135 = tpu.matmul %133, %134, %cst_51 {dimension_numbers = #tpu.dot_dimension_numbers<[1], [0], [0], [1], [0, 0, 1, 1], [], []>} : vector<8x8xbf16>, vector<8x8xbf16>, vector<8x8xf32> -> vector<8x8xf32>
    %136 = tpu.reciprocal %132 {approx = true} : vector<8x1xf32> -> vector<8x1xf32>
    %137 = vector.broadcast %136 : vector<8x1xf32> to vector<8x8xf32>
    %138 = arith.mulf %135, %137 : vector<8x8xf32>
    %c8_52 = arith.constant 8 : index
    %c8_53 = arith.constant 8 : index
    %139 = vector.load %arg18[%c8_52, %c8_53] : memref<16x32xf32, #tpu.memory_space<vmem>>, vector<8x8xf32>
    tpu.vector_store %arg18[%c8_52, %c8_53], %138 {strides = array<i32>} : memref<16x32xf32, #tpu.memory_space<vmem>>, vector<8x8xf32>,
    %140 = vector.extract_strided_slice %99 {offsets = [0, 16], sizes = [8, 8], strides = [1, 1]} : vector<8x32xbf16> to vector<8x8xbf16>
    %141 = vector.extract_strided_slice %100 {offsets = [0, 16], sizes = [8, 8], strides = [1, 1]} : vector<8x32xbf16> to vector<8x8xbf16>
    %cst_54 = arith.constant dense<0.000000e+00> : vector<8x8xf32>
    %142 = tpu.matmul %140, %141, %cst_54 {dimension_numbers = #tpu.dot_dimension_numbers<[1], [1], [0], [0], [0, 0, 1, 0], [], []>} : vector<8x8xbf16>, vector<8x8xbf16>, vector<8x8xf32> -> vector<8x8xf32>
    %143 = arith.addf %142, %103 : vector<8x8xf32>
    %cst_55 = arith.constant dense<0xFF800000> : vector<8xf32>
    %144 = vector.multi_reduction <maximumf>, %143, %cst_55 [1] : vector<8x8xf32> to vector<8xf32>
    %145 = vector.shape_cast %144 : vector<8xf32> to vector<8x1xf32>
    %146 = vector.broadcast %145 : vector<8x1xf32> to vector<8x8xf32>
    %147 = arith.subf %143, %146 : vector<8x8xf32>
    %148 = math.exp %147 : vector<8x8xf32>
    %cst_56 = arith.constant dense<0.000000e+00> : vector<8xf32>
    %149 = vector.multi_reduction <add>, %148, %cst_56 [1] : vector<8x8xf32> to vector<8xf32>
    %150 = vector.shape_cast %149 : vector<8xf32> to vector<8x1xf32>
    %151 = arith.truncf %148 : vector<8x8xf32> to vector<8x8xbf16>
    %152 = vector.extract_strided_slice %101 {offsets = [0, 16], sizes = [8, 8], strides = [1, 1]} : vector<8x32xbf16> to vector<8x8xbf16>
    %cst_57 = arith.constant dense<0.000000e+00> : vector<8x8xf32>
    %153 = tpu.matmul %151, %152, %cst_57 {dimension_numbers = #tpu.dot_dimension_numbers<[1], [0], [0], [1], [0, 0, 1, 1], [], []>} : vector<8x8xbf16>, vector<8x8xbf16>, vector<8x8xf32> -> vector<8x8xf32>
    %154 = tpu.reciprocal %150 {approx = true} : vector<8x1xf32> -> vector<8x1xf32>
    %155 = vector.broadcast %154 : vector<8x1xf32> to vector<8x8xf32>
    %156 = arith.mulf %153, %155 : vector<8x8xf32>
    %c8_58 = arith.constant 8 : index
    %c16_59 = arith.constant 16 : index
    %157 = vector.load %arg18[%c8_58, %c16_59] : memref<16x32xf32, #tpu.memory_space<vmem>>, vector<8x8xf32>
    tpu.vector_store %arg18[%c8_58, %c16_59], %156 {strides = array<i32>} : memref<16x32xf32, #tpu.memory_space<vmem>>, vector<8x8xf32>,
    %158 = vector.extract_strided_slice %99 {offsets = [0, 24], sizes = [8, 8], strides = [1, 1]} : vector<8x32xbf16> to vector<8x8xbf16>
    %159 = vector.extract_strided_slice %100 {offsets = [0, 24], sizes = [8, 8], strides = [1, 1]} : vector<8x32xbf16> to vector<8x8xbf16>
    %cst_60 = arith.constant dense<0.000000e+00> : vector<8x8xf32>
    %160 = tpu.matmul %158, %159, %cst_60 {dimension_numbers = #tpu.dot_dimension_numbers<[1], [1], [0], [0], [0, 0, 1, 0], [], []>} : vector<8x8xbf16>, vector<8x8xbf16>, vector<8x8xf32> -> vector<8x8xf32>
    %161 = arith.addf %160, %103 : vector<8x8xf32>
    %cst_61 = arith.constant dense<0xFF800000> : vector<8xf32>
    %162 = vector.multi_reduction <maximumf>, %161, %cst_61 [1] : vector<8x8xf32> to vector<8xf32>
    %163 = vector.shape_cast %162 : vector<8xf32> to vector<8x1xf32>
    %164 = vector.broadcast %163 : vector<8x1xf32> to vector<8x8xf32>
    %165 = arith.subf %161, %164 : vector<8x8xf32>
    %166 = math.exp %165 : vector<8x8xf32>
    %cst_62 = arith.constant dense<0.000000e+00> : vector<8xf32>
    %167 = vector.multi_reduction <add>, %166, %cst_62 [1] : vector<8x8xf32> to vector<8xf32>
    %168 = vector.shape_cast %167 : vector<8xf32> to vector<8x1xf32>
    %169 = arith.truncf %166 : vector<8x8xf32> to vector<8x8xbf16>
    %170 = vector.extract_strided_slice %101 {offsets = [0, 24], sizes = [8, 8], strides = [1, 1]} : vector<8x32xbf16> to vector<8x8xbf16>
    %cst_63 = arith.constant dense<0.000000e+00> : vector<8x8xf32>
    %171 = tpu.matmul %169, %170, %cst_63 {dimension_numbers = #tpu.dot_dimension_numbers<[1], [0], [0], [1], [0, 0, 1, 1], [], []>} : vector<8x8xbf16>, vector<8x8xbf16>, vector<8x8xf32> -> vector<8x8xf32>
    %172 = tpu.reciprocal %168 {approx = true} : vector<8x1xf32> -> vector<8x1xf32>
    %173 = vector.broadcast %172 : vector<8x1xf32> to vector<8x8xf32>
    %174 = arith.mulf %171, %173 : vector<8x8xf32>
    %c8_64 = arith.constant 8 : index
    %c24_65 = arith.constant 24 : index
    %175 = vector.load %arg18[%c8_64, %c24_65] : memref<16x32xf32, #tpu.memory_space<vmem>>, vector<8x8xf32>
    tpu.vector_store %arg18[%c8_64, %c24_65], %174 {strides = array<i32>} : memref<16x32xf32, #tpu.memory_space<vmem>>, vector<8x8xf32>,
    %c0_66 = arith.constant 0 : index
    %c0_67 = arith.constant 0 : index
    %176 = vector.load %arg18[%c0_66, %c0_67] : memref<16x32xf32, #tpu.memory_space<vmem>>, vector<16x32xf32>
    %177 = arith.truncf %176 : vector<16x32xf32> to vector<16x32xbf16>
    %c0_68 = arith.constant 0 : index
    %c0_69 = arith.constant 0 : index
    %178 = vector.load %arg9[%c0_68, %c0_69] : memref<32x32xbf16, #tpu.memory_space<vmem>>, vector<32x32xbf16>
    %cst_70 = arith.constant dense<0.000000e+00> : vector<16x32xf32>
    %179 = tpu.matmul %177, %178, %cst_70 {dimension_numbers = #tpu.dot_dimension_numbers<[1], [0], [0], [1], [0, 0, 1, 1], [], []>} : vector<16x32xbf16>, vector<32x32xbf16>, vector<16x32xf32> -> vector<16x32xf32>
    %c0_71 = arith.constant 0 : index
    %c0_72 = arith.constant 0 : index
    %180 = vector.load %arg10[%c0_71, %c0_72] : memref<1x32xf32, #tpu.memory_space<vmem>>, vector<1x32xf32>
    %181 = vector.broadcast %180 : vector<1x32xf32> to vector<16x32xf32>
    %182 = arith.addf %179, %181 : vector<16x32xf32>
    %c0_73 = arith.constant 0 : index
    %c0_74 = arith.constant 0 : index
    %183 = vector.load %arg15[%c0_73, %c0_74] : memref<1x32xf32, #tpu.memory_space<vmem>>, vector<1x32xf32>
    %c0_75 = arith.constant 0 : index
    %c0_76 = arith.constant 0 : index
    %184 = vector.load %arg16[%c0_75, %c0_76] : memref<1x32xf32, #tpu.memory_space<vmem>>, vector<1x32xf32>
    %185 = arith.addf %182, %0 : vector<16x32xf32>
    %cst_77 = arith.constant dense<0.000000e+00> : vector<16xf32>
    %186 = vector.multi_reduction <add>, %185, %cst_77 [1] : vector<16x32xf32> to vector<16xf32>
    %187 = vector.shape_cast %186 : vector<16xf32> to vector<16x1xf32>
    %cst_78 = arith.constant 3.200000e+01 : f32
    %188 = vector.broadcast %cst_78 : f32 to vector<16x1xf32>
    %189 = arith.divf %187, %188 : vector<16x1xf32>
    %190 = vector.broadcast %189 : vector<16x1xf32> to vector<16x32xf32>
    %191 = arith.subf %185, %190 : vector<16x32xf32>
    %192 = arith.mulf %191, %191 : vector<16x32xf32>
    %cst_79 = arith.constant dense<0.000000e+00> : vector<16xf32>
    %193 = vector.multi_reduction <add>, %192, %cst_79 [1] : vector<16x32xf32> to vector<16xf32>
    %194 = vector.shape_cast %193 : vector<16xf32> to vector<16x1xf32>
    %cst_80 = arith.constant 3.200000e+01 : f32
    %195 = vector.broadcast %cst_80 : f32 to vector<16x1xf32>
    %196 = arith.divf %194, %195 : vector<16x1xf32>
    %197 = vector.broadcast %189 : vector<16x1xf32> to vector<16x32xf32>
    %198 = arith.subf %185, %197 : vector<16x32xf32>
    %cst_81 = arith.constant 9.99999974E-6 : f32
    %199 = vector.broadcast %cst_81 : f32 to vector<16x1xf32>
    %200 = arith.addf %196, %199 : vector<16x1xf32>
    %201 = math.rsqrt %200 : vector<16x1xf32>
    %202 = vector.broadcast %201 : vector<16x1xf32> to vector<16x32xf32>
    %203 = arith.mulf %198, %202 : vector<16x32xf32>
    %204 = vector.broadcast %183 : vector<1x32xf32> to vector<16x32xf32>
    %205 = arith.mulf %203, %204 : vector<16x32xf32>
    %206 = vector.broadcast %184 : vector<1x32xf32> to vector<16x32xf32>
    %207 = arith.addf %205, %206 : vector<16x32xf32>
    %208 = arith.truncf %207 : vector<16x32xf32> to vector<16x32xbf16>
    %cst_82 = arith.constant 0.000000e+00 : f32
    %209 = vector.broadcast %cst_82 : f32 to vector<16x32xf32>
    %c0_83 = arith.constant 0 : index
    %c0_84 = arith.constant 0 : index
    %210 = vector.load %arg11[%c0_83, %c0_84] : memref<32x128xbf16, #tpu.memory_space<vmem>>, vector<32x128xbf16>
    %cst_85 = arith.constant dense<0.000000e+00> : vector<16x128xf32>
    %211 = tpu.matmul %208, %210, %cst_85 {dimension_numbers = #tpu.dot_dimension_numbers<[1], [0], [0], [1], [0, 0, 1, 1], [], []>} : vector<16x32xbf16>, vector<32x128xbf16>, vector<16x128xf32> -> vector<16x128xf32>
    %c0_86 = arith.constant 0 : index
    %c0_87 = arith.constant 0 : index
    %212 = vector.load %arg12[%c0_86, %c0_87] : memref<1x128xf32, #tpu.memory_space<vmem>>, vector<1x128xf32>
    %213 = vector.broadcast %212 : vector<1x128xf32> to vector<16x128xf32>
    %214 = arith.addf %211, %213 : vector<16x128xf32>
    %cst_88 = arith.constant 5.000000e-01 : f32
    %215 = vector.broadcast %cst_88 : f32 to vector<16x128xf32>
    %216 = arith.mulf %215, %214 : vector<16x128xf32>
    %217 = arith.mulf %214, %214 : vector<16x128xf32>
    %218 = arith.mulf %217, %214 : vector<16x128xf32>
    %cst_89 = arith.constant 4.471500e-02 : f32
    %219 = vector.broadcast %cst_89 : f32 to vector<16x128xf32>
    %220 = arith.mulf %219, %218 : vector<16x128xf32>
    %221 = arith.addf %214, %220 : vector<16x128xf32>
    %cst_90 = arith.constant 0.797884583 : f32
    %222 = vector.broadcast %cst_90 : f32 to vector<16x128xf32>
    %223 = arith.mulf %222, %221 : vector<16x128xf32>
    %224 = math.tanh %223 : vector<16x128xf32>
    %cst_91 = arith.constant 1.000000e+00 : f32
    %225 = vector.broadcast %cst_91 : f32 to vector<16x128xf32>
    %226 = arith.addf %225, %224 : vector<16x128xf32>
    %227 = arith.mulf %216, %226 : vector<16x128xf32>
    %228 = arith.truncf %227 : vector<16x128xf32> to vector<16x128xbf16>
    %c0_92 = arith.constant 0 : index
    %c0_93 = arith.constant 0 : index
    %229 = vector.load %arg13[%c0_92, %c0_93] : memref<128x32xbf16, #tpu.memory_space<vmem>>, vector<128x32xbf16>
    %cst_94 = arith.constant dense<0.000000e+00> : vector<16x32xf32>
    %230 = tpu.matmul %228, %229, %cst_94 {dimension_numbers = #tpu.dot_dimension_numbers<[1], [0], [0], [1], [0, 0, 1, 1], [], []>} : vector<16x128xbf16>, vector<128x32xbf16>, vector<16x32xf32> -> vector<16x32xf32>
    %231 = arith.addf %209, %230 : vector<16x32xf32>
    %c0_95 = arith.constant 0 : index
    %c0_96 = arith.constant 0 : index
    %232 = vector.load %arg14[%c0_95, %c0_96] : memref<1x32xf32, #tpu.memory_space<vmem>>, vector<1x32xf32>
    %233 = vector.broadcast %232 : vector<1x32xf32> to vector<16x32xf32>
    %234 = arith.addf %231, %233 : vector<16x32xf32>
    %235 = arith.addf %234, %207 : vector<16x32xf32>
    %cst_97 = arith.constant dense<0.000000e+00> : vector<16xf32>
    %236 = vector.multi_reduction <add>, %235, %cst_97 [1] : vector<16x32xf32> to vector<16xf32>
    %237 = vector.shape_cast %236 : vector<16xf32> to vector<16x1xf32>
    %cst_98 = arith.constant 3.200000e+01 : f32
    %238 = vector.broadcast %cst_98 : f32 to vector<16x1xf32>
    %239 = arith.divf %237, %238 : vector<16x1xf32>
    %240 = vector.broadcast %239 : vector<16x1xf32> to vector<16x32xf32>
    %241 = arith.subf %235, %240 : vector<16x32xf32>
    %242 = arith.mulf %241, %241 : vector<16x32xf32>
    %cst_99 = arith.constant dense<0.000000e+00> : vector<16xf32>
    %243 = vector.multi_reduction <add>, %242, %cst_99 [1] : vector<16x32xf32> to vector<16xf32>
    %244 = vector.shape_cast %243 : vector<16xf32> to vector<16x1xf32>
    %cst_100 = arith.constant 3.200000e+01 : f32
    %245 = vector.broadcast %cst_100 : f32 to vector<16x1xf32>
    %246 = arith.divf %244, %245 : vector<16x1xf32>
    %247 = vector.broadcast %239 : vector<16x1xf32> to vector<16x32xf32>
    %248 = arith.subf %235, %247 : vector<16x32xf32>
    %cst_101 = arith.constant 9.99999974E-6 : f32
    %249 = vector.broadcast %cst_101 : f32 to vector<16x1xf32>
    %250 = arith.addf %246, %249 : vector<16x1xf32>
    %251 = math.rsqrt %250 : vector<16x1xf32>
    %252 = vector.broadcast %251 : vector<16x1xf32> to vector<16x32xf32>
    %253 = arith.mulf %248, %252 : vector<16x32xf32>
    %254 = vector.broadcast %183 : vector<1x32xf32> to vector<16x32xf32>
    %255 = arith.mulf %253, %254 : vector<16x32xf32>
    %256 = vector.broadcast %184 : vector<1x32xf32> to vector<16x32xf32>
    %257 = arith.addf %255, %256 : vector<16x32xf32>
    %c0_102 = arith.constant 0 : index
    %c0_103 = arith.constant 0 : index
    %258 = vector.load %arg17[%c0_102, %c0_103] : memref<16x32xf32, #tpu.memory_space<vmem>>, vector<16x32xf32>
    tpu.vector_store %arg17[%c0_102, %c0_103], %257 {strides = array<i32>} : memref<16x32xf32, #tpu.memory_space<vmem>>, vector<16x32xf32>,
    return
  }
  func.func @transform_0(%arg0: i32) -> (i32, i32) {
    %c0_i32 = arith.constant 0 : i32
    %c0_i32_0 = arith.constant 0 : i32
    return %arg0, %c0_i32 : i32, i32
  }
  func.func @transform_1(%arg0: i32) -> (i32, i32, i32) {
    %c0_i32 = arith.constant 0 : i32
    %c0_i32_0 = arith.constant 0 : i32
    %c0_i32_1 = arith.constant 0 : i32
    return %arg0, %c0_i32, %c0_i32_0 : i32, i32, i32
  }
  func.func @transform_2(%arg0: i32) -> (i32, i32) {
    %c0_i32 = arith.constant 0 : i32
    %c0_i32_0 = arith.constant 0 : i32
    %c0_i32_1 = arith.constant 0 : i32
    return %c0_i32, %c0_i32_0 : i32, i32
  }
  func.func @transform_3(%arg0: i32) -> (i32, i32) {
    %c0_i32 = arith.constant 0 : i32
    %c0_i32_0 = arith.constant 0 : i32
    %c0_i32_1 = arith.constant 0 : i32
    return %c0_i32, %c0_i32_0 : i32, i32
  }
  func.func @transform_4(%arg0: i32) -> (i32, i32) {
    %c0_i32 = arith.constant 0 : i32
    %c0_i32_0 = arith.constant 0 : i32
    %c0_i32_1 = arith.constant 0 : i32
    return %c0_i32, %c0_i32_0 : i32, i32
  }
  func.func @transform_5(%arg0: i32) -> (i32, i32) {
    %c0_i32 = arith.constant 0 : i32
    %c0_i32_0 = arith.constant 0 : i32
    %c0_i32_1 = arith.constant 0 : i32
    return %c0_i32, %c0_i32_0 : i32, i32
  }
  func.func @transform_6(%arg0: i32) -> (i32, i32) {
    %c0_i32 = arith.constant 0 : i32
    %c0_i32_0 = arith.constant 0 : i32
    %c0_i32_1 = arith.constant 0 : i32
    return %c0_i32, %c0_i32_0 : i32, i32
  }
  func.func @transform_7(%arg0: i32) -> (i32, i32) {
    %c0_i32 = arith.constant 0 : i32
    %c0_i32_0 = arith.constant 0 : i32
    %c0_i32_1 = arith.constant 0 : i32
    return %c0_i32, %c0_i32_0 : i32, i32
  }
  func.func @transform_8(%arg0: i32) -> (i32, i32) {
    %c0_i32 = arith.constant 0 : i32
    %c0_i32_0 = arith.constant 0 : i32
    %c0_i32_1 = arith.constant 0 : i32
    return %c0_i32, %c0_i32_0 : i32, i32
  }
  func.func @transform_9(%arg0: i32) -> (i32, i32) {
    %c0_i32 = arith.constant 0 : i32
    %c0_i32_0 = arith.constant 0 : i32
    %c0_i32_1 = arith.constant 0 : i32
    return %c0_i32, %c0_i32_0 : i32, i32
  }
  func.func @transform_10(%arg0: i32) -> (i32, i32) {
    %c0_i32 = arith.constant 0 : i32
    %c0_i32_0 = arith.constant 0 : i32
    %c0_i32_1 = arith.constant 0 : i32
    return %c0_i32, %c0_i32_0 : i32, i32
  }
  func.func @transform_11(%arg0: i32) -> (i32, i32) {
    %c0_i32 = arith.constant 0 : i32
    %c0_i32_0 = arith.constant 0 : i32
    %c0_i32_1 = arith.constant 0 : i32
    return %c0_i32, %c0_i32_0 : i32, i32
  }
  func.func @transform_12(%arg0: i32) -> (i32, i32) {
    %c0_i32 = arith.constant 0 : i32
    %c0_i32_0 = arith.constant 0 : i32
    %c0_i32_1 = arith.constant 0 : i32
    return %c0_i32, %c0_i32_0 : i32, i32
  }
  func.func @transform_13(%arg0: i32) -> (i32, i32) {
    %c0_i32 = arith.constant 0 : i32
    %c0_i32_0 = arith.constant 0 : i32
    %c0_i32_1 = arith.constant 0 : i32
    return %c0_i32, %c0_i32_0 : i32, i32
  }
  func.func @transform_14(%arg0: i32) -> (i32, i32) {
    %c0_i32 = arith.constant 0 : i32
    %c0_i32_0 = arith.constant 0 : i32
    %c0_i32_1 = arith.constant 0 : i32
    return %c0_i32, %c0_i32_0 : i32, i32
  }
  func.func @transform_15(%arg0: i32) -> (i32, i32) {
    %c0_i32 = arith.constant 0 : i32
    %c0_i32_0 = arith.constant 0 : i32
    %c0_i32_1 = arith.constant 0 : i32
    return %c0_i32, %c0_i32_0 : i32, i32
  }
  func.func @transform_16(%arg0: i32) -> (i32, i32) {
    %c0_i32 = arith.constant 0 : i32
    %c0_i32_0 = arith.constant 0 : i32
    return %arg0, %c0_i32 : i32, i32
  }
}

module attributes {stable_mosaic.version = 11 : i64} {
  func.func @_encoder_layer_kernel(%arg0: i32, %arg1: memref<16x32xf32, #tpu.memory_space<vmem>>, %arg2: memref<2x8x8xf32, #tpu.memory_space<vmem>>, %arg3: memref<32x32xbf16, #tpu.memory_space<vmem>>, %arg4: memref<1x32xf32, #tpu.memory_space<vmem>>, %arg5: memref<32x32xbf16, #tpu.memory_space<vmem>>, %arg6: memref<1x32xf32, #tpu.memory_space<vmem>>, %arg7: memref<32x32xbf16, #tpu.memory_space<vmem>>, %arg8: memref<1x32xf32, #tpu.memory_space<vmem>>, %arg9: memref<32x32xbf16, #tpu.memory_space<vmem>>, %arg10: memref<1x32xf32, #tpu.memory_space<vmem>>, %arg11: memref<32x128xbf16, #tpu.memory_space<vmem>>, %arg12: memref<1x128xf32, #tpu.memory_space<vmem>>, %arg13: memref<128x32xbf16, #tpu.memory_space<vmem>>, %arg14: memref<1x32xf32, #tpu.memory_space<vmem>>, %arg15: memref<1x32xf32, #tpu.memory_space<vmem>>, %arg16: memref<1x32xf32, #tpu.memory_space<vmem>>, %arg17: memref<16x32xf32, #tpu.memory_space<vmem>>, %arg18: memref<16x32xf32, #tpu.memory_space<vmem>>) attributes {dimension_semantics = [#tpu.dimension_semantics<parallel>], iteration_bounds = array<i64: 1>, scalar_prefetch = 0 : i64, scratch_operands = 1 : i64, tpu.core_type = #tpu.core_type<tc>, window_params = [{transform_indices = @transform_0, window_bounds = array<i64: 16, 32>}, {transform_indices = @transform_1, window_bounds = array<i64: 2, 8, 8>}, {pipeline_mode = #tpu.pipeline_mode<synchronous>, transform_indices = @transform_2, window_bounds = array<i64: 32, 32>}, {pipeline_mode = #tpu.pipeline_mode<synchronous>, transform_indices = @transform_3, window_bounds = array<i64: 1, 32>}, {pipeline_mode = #tpu.pipeline_mode<synchronous>, transform_indices = @transform_4, window_bounds = array<i64: 32, 32>}, {pipeline_mode = #tpu.pipeline_mode<synchronous>, transform_indices = @transform_5, window_bounds = array<i64: 1, 32>}, {pipeline_mode = #tpu.pipeline_mode<synchronous>, transform_indices = @transform_6, window_bounds = array<i64: 32, 32>}, {pipeline_mode = #tpu.pipeline_mode<synchronous>, transform_indices = @transform_7, window_bounds = array<i64: 1, 32>}, {pipeline_mode = #tpu.pipeline_mode<synchronous>, transform_indices = @transform_8, window_bounds = array<i64: 32, 32>}, {pipeline_mode = #tpu.pipeline_mode<synchronous>, transform_indices = @transform_9, window_bounds = array<i64: 1, 32>}, {pipeline_mode = #tpu.pipeline_mode<synchronous>, transform_indices = @transform_10, window_bounds = array<i64: 32, 128>}, {pipeline_mode = #tpu.pipeline_mode<synchronous>, transform_indices = @transform_11, window_bounds = array<i64: 1, 128>}, {pipeline_mode = #tpu.pipeline_mode<synchronous>, transform_indices = @transform_12, window_bounds = array<i64: 128, 32>}, {pipeline_mode = #tpu.pipeline_mode<synchronous>, transform_indices = @transform_13, window_bounds = array<i64: 1, 32>}, {pipeline_mode = #tpu.pipeline_mode<synchronous>, transform_indices = @transform_14, window_bounds = array<i64: 1, 32>}, {pipeline_mode = #tpu.pipeline_mode<synchronous>, transform_indices = @transform_15, window_bounds = array<i64: 1, 32>}, {transform_indices = @transform_16, window_bounds = array<i64: 16, 32>}]} {
    %c0 = arith.constant 0 : index
    %c0_0 = arith.constant 0 : index
    %0 = vector.load %arg1[%c0, %c0_0] : memref<16x32xf32, #tpu.memory_space<vmem>>, vector<16x32xf32>
    %1 = arith.truncf %0 : vector<16x32xf32> to vector<16x32xbf16>
    %c0_1 = arith.constant 0 : index
    %c0_2 = arith.constant 0 : index
    %2 = vector.load %arg3[%c0_1, %c0_2] : memref<32x32xbf16, #tpu.memory_space<vmem>>, vector<32x32xbf16>
    %cst = arith.constant dense<0.000000e+00> : vector<16x32xf32>
    %3 = tpu.matmul %1, %2, %cst {dimension_numbers = #tpu.dot_dimension_numbers<[1], [0], [0], [1], [0, 0, 1, 1], [], []>} : vector<16x32xbf16>, vector<32x32xbf16>, vector<16x32xf32> -> vector<16x32xf32>
    %c0_3 = arith.constant 0 : index
    %c0_4 = arith.constant 0 : index
    %4 = vector.load %arg4[%c0_3, %c0_4] : memref<1x32xf32, #tpu.memory_space<vmem>>, vector<1x32xf32>
    %5 = vector.broadcast %4 : vector<1x32xf32> to vector<16x32xf32>
    %6 = arith.addf %3, %5 : vector<16x32xf32>
    %cst_5 = arith.constant 0.353553385 : f32
    %7 = vector.broadcast %cst_5 : f32 to vector<16x32xf32>
    %8 = arith.mulf %6, %7 : vector<16x32xf32>
    %9 = arith.truncf %8 : vector<16x32xf32> to vector<16x32xbf16>
    %c0_6 = arith.constant 0 : index
    %c0_7 = arith.constant 0 : index
    %10 = vector.load %arg5[%c0_6, %c0_7] : memref<32x32xbf16, #tpu.memory_space<vmem>>, vector<32x32xbf16>
    %cst_8 = arith.constant dense<0.000000e+00> : vector<16x32xf32>
    %11 = tpu.matmul %1, %10, %cst_8 {dimension_numbers = #tpu.dot_dimension_numbers<[1], [0], [0], [1], [0, 0, 1, 1], [], []>} : vector<16x32xbf16>, vector<32x32xbf16>, vector<16x32xf32> -> vector<16x32xf32>
    %c0_9 = arith.constant 0 : index
    %c0_10 = arith.constant 0 : index
    %12 = vector.load %arg6[%c0_9, %c0_10] : memref<1x32xf32, #tpu.memory_space<vmem>>, vector<1x32xf32>
    %13 = vector.broadcast %12 : vector<1x32xf32> to vector<16x32xf32>
    %14 = arith.addf %11, %13 : vector<16x32xf32>
    %15 = arith.truncf %14 : vector<16x32xf32> to vector<16x32xbf16>
    %c0_11 = arith.constant 0 : index
    %c0_12 = arith.constant 0 : index
    %16 = vector.load %arg7[%c0_11, %c0_12] : memref<32x32xbf16, #tpu.memory_space<vmem>>, vector<32x32xbf16>
    %cst_13 = arith.constant dense<0.000000e+00> : vector<16x32xf32>
    %17 = tpu.matmul %1, %16, %cst_13 {dimension_numbers = #tpu.dot_dimension_numbers<[1], [0], [0], [1], [0, 0, 1, 1], [], []>} : vector<16x32xbf16>, vector<32x32xbf16>, vector<16x32xf32> -> vector<16x32xf32>
    %c0_14 = arith.constant 0 : index
    %c0_15 = arith.constant 0 : index
    %18 = vector.load %arg8[%c0_14, %c0_15] : memref<1x32xf32, #tpu.memory_space<vmem>>, vector<1x32xf32>
    %19 = vector.broadcast %18 : vector<1x32xf32> to vector<16x32xf32>
    %20 = arith.addf %17, %19 : vector<16x32xf32>
    %21 = arith.truncf %20 : vector<16x32xf32> to vector<16x32xbf16>
    %22 = vector.extract_strided_slice %9 {offsets = [0, 0], sizes = [8, 32], strides = [1, 1]} : vector<16x32xbf16> to vector<8x32xbf16>
    %23 = vector.extract_strided_slice %15 {offsets = [0, 0], sizes = [8, 32], strides = [1, 1]} : vector<16x32xbf16> to vector<8x32xbf16>
    %24 = vector.extract_strided_slice %21 {offsets = [0, 0], sizes = [8, 32], strides = [1, 1]} : vector<16x32xbf16> to vector<8x32xbf16>
    %c0_16 = arith.constant 0 : index
    %c0_17 = arith.constant 0 : index
    %c0_18 = arith.constant 0 : index
    %25 = vector.load %arg2[%c0_16, %c0_17, %c0_18] : memref<2x8x8xf32, #tpu.memory_space<vmem>>, vector<1x8x8xf32>
    %26 = vector.shape_cast %25 : vector<1x8x8xf32> to vector<8x8xf32>
    %27 = vector.extract_strided_slice %22 {offsets = [0, 0], sizes = [8, 8], strides = [1, 1]} : vector<8x32xbf16> to vector<8x8xbf16>
    %28 = vector.extract_strided_slice %23 {offsets = [0, 0], sizes = [8, 8], strides = [1, 1]} : vector<8x32xbf16> to vector<8x8xbf16>
    %cst_19 = arith.constant dense<0.000000e+00> : vector<8x8xf32>
    %29 = tpu.matmul %27, %28, %cst_19 {dimension_numbers = #tpu.dot_dimension_numbers<[1], [1], [0], [0], [0, 0, 1, 0], [], []>} : vector<8x8xbf16>, vector<8x8xbf16>, vector<8x8xf32> -> vector<8x8xf32>
    %30 = arith.addf %29, %26 : vector<8x8xf32>
    %cst_20 = arith.constant dense<0xFF800000> : vector<8xf32>
    %31 = vector.multi_reduction <maximumf>, %30, %cst_20 [1] : vector<8x8xf32> to vector<8xf32>
    %32 = vector.shape_cast %31 : vector<8xf32> to vector<8x1xf32>
    %33 = vector.broadcast %32 : vector<8x1xf32> to vector<8x8xf32>
    %34 = arith.subf %30, %33 : vector<8x8xf32>
    %35 = math.exp %34 : vector<8x8xf32>
    %cst_21 = arith.constant dense<0.000000e+00> : vector<8xf32>
    %36 = vector.multi_reduction <add>, %35, %cst_21 [1] : vector<8x8xf32> to vector<8xf32>
    %37 = vector.shape_cast %36 : vector<8xf32> to vector<8x1xf32>
    %38 = arith.truncf %35 : vector<8x8xf32> to vector<8x8xbf16>
    %39 = vector.extract_strided_slice %24 {offsets = [0, 0], sizes = [8, 8], strides = [1, 1]} : vector<8x32xbf16> to vector<8x8xbf16>
    %cst_22 = arith.constant dense<0.000000e+00> : vector<8x8xf32>
    %40 = tpu.matmul %38, %39, %cst_22 {dimension_numbers = #tpu.dot_dimension_numbers<[1], [0], [0], [1], [0, 0, 1, 1], [], []>} : vector<8x8xbf16>, vector<8x8xbf16>, vector<8x8xf32> -> vector<8x8xf32>
    %41 = tpu.reciprocal %37 {approx = true} : vector<8x1xf32> -> vector<8x1xf32>
    %42 = vector.broadcast %41 : vector<8x1xf32> to vector<8x8xf32>
    %43 = arith.mulf %40, %42 : vector<8x8xf32>
    %c0_23 = arith.constant 0 : index
    %c0_24 = arith.constant 0 : index
    %44 = vector.load %arg18[%c0_23, %c0_24] : memref<16x32xf32, #tpu.memory_space<vmem>>, vector<8x8xf32>
    tpu.vector_store %arg18[%c0_23, %c0_24], %43 {strides = array<i32>} : memref<16x32xf32, #tpu.memory_space<vmem>>, vector<8x8xf32>,
    %45 = vector.extract_strided_slice %22 {offsets = [0, 8], sizes = [8, 8], strides = [1, 1]} : vector<8x32xbf16> to vector<8x8xbf16>
    %46 = vector.extract_strided_slice %23 {offsets = [0, 8], sizes = [8, 8], strides = [1, 1]} : vector<8x32xbf16> to vector<8x8xbf16>
    %cst_25 = arith.constant dense<0.000000e+00> : vector<8x8xf32>
    %47 = tpu.matmul %45, %46, %cst_25 {dimension_numbers = #tpu.dot_dimension_numbers<[1], [1], [0], [0], [0, 0, 1, 0], [], []>} : vector<8x8xbf16>, vector<8x8xbf16>, vector<8x8xf32> -> vector<8x8xf32>
    %48 = arith.addf %47, %26 : vector<8x8xf32>
    %cst_26 = arith.constant dense<0xFF800000> : vector<8xf32>
    %49 = vector.multi_reduction <maximumf>, %48, %cst_26 [1] : vector<8x8xf32> to vector<8xf32>
    %50 = vector.shape_cast %49 : vector<8xf32> to vector<8x1xf32>
    %51 = vector.broadcast %50 : vector<8x1xf32> to vector<8x8xf32>
    %52 = arith.subf %48, %51 : vector<8x8xf32>
    %53 = math.exp %52 : vector<8x8xf32>
    %cst_27 = arith.constant dense<0.000000e+00> : vector<8xf32>
    %54 = vector.multi_reduction <add>, %53, %cst_27 [1] : vector<8x8xf32> to vector<8xf32>
    %55 = vector.shape_cast %54 : vector<8xf32> to vector<8x1xf32>
    %56 = arith.truncf %53 : vector<8x8xf32> to vector<8x8xbf16>
    %57 = vector.extract_strided_slice %24 {offsets = [0, 8], sizes = [8, 8], strides = [1, 1]} : vector<8x32xbf16> to vector<8x8xbf16>
    %cst_28 = arith.constant dense<0.000000e+00> : vector<8x8xf32>
    %58 = tpu.matmul %56, %57, %cst_28 {dimension_numbers = #tpu.dot_dimension_numbers<[1], [0], [0], [1], [0, 0, 1, 1], [], []>} : vector<8x8xbf16>, vector<8x8xbf16>, vector<8x8xf32> -> vector<8x8xf32>
    %59 = tpu.reciprocal %55 {approx = true} : vector<8x1xf32> -> vector<8x1xf32>
    %60 = vector.broadcast %59 : vector<8x1xf32> to vector<8x8xf32>
    %61 = arith.mulf %58, %60 : vector<8x8xf32>
    %c0_29 = arith.constant 0 : index
    %c8 = arith.constant 8 : index
    %62 = vector.load %arg18[%c0_29, %c8] : memref<16x32xf32, #tpu.memory_space<vmem>>, vector<8x8xf32>
    tpu.vector_store %arg18[%c0_29, %c8], %61 {strides = array<i32>} : memref<16x32xf32, #tpu.memory_space<vmem>>, vector<8x8xf32>,
    %63 = vector.extract_strided_slice %22 {offsets = [0, 16], sizes = [8, 8], strides = [1, 1]} : vector<8x32xbf16> to vector<8x8xbf16>
    %64 = vector.extract_strided_slice %23 {offsets = [0, 16], sizes = [8, 8], strides = [1, 1]} : vector<8x32xbf16> to vector<8x8xbf16>
    %cst_30 = arith.constant dense<0.000000e+00> : vector<8x8xf32>
    %65 = tpu.matmul %63, %64, %cst_30 {dimension_numbers = #tpu.dot_dimension_numbers<[1], [1], [0], [0], [0, 0, 1, 0], [], []>} : vector<8x8xbf16>, vector<8x8xbf16>, vector<8x8xf32> -> vector<8x8xf32>
    %66 = arith.addf %65, %26 : vector<8x8xf32>
    %cst_31 = arith.constant dense<0xFF800000> : vector<8xf32>
    %67 = vector.multi_reduction <maximumf>, %66, %cst_31 [1] : vector<8x8xf32> to vector<8xf32>
    %68 = vector.shape_cast %67 : vector<8xf32> to vector<8x1xf32>
    %69 = vector.broadcast %68 : vector<8x1xf32> to vector<8x8xf32>
    %70 = arith.subf %66, %69 : vector<8x8xf32>
    %71 = math.exp %70 : vector<8x8xf32>
    %cst_32 = arith.constant dense<0.000000e+00> : vector<8xf32>
    %72 = vector.multi_reduction <add>, %71, %cst_32 [1] : vector<8x8xf32> to vector<8xf32>
    %73 = vector.shape_cast %72 : vector<8xf32> to vector<8x1xf32>
    %74 = arith.truncf %71 : vector<8x8xf32> to vector<8x8xbf16>
    %75 = vector.extract_strided_slice %24 {offsets = [0, 16], sizes = [8, 8], strides = [1, 1]} : vector<8x32xbf16> to vector<8x8xbf16>
    %cst_33 = arith.constant dense<0.000000e+00> : vector<8x8xf32>
    %76 = tpu.matmul %74, %75, %cst_33 {dimension_numbers = #tpu.dot_dimension_numbers<[1], [0], [0], [1], [0, 0, 1, 1], [], []>} : vector<8x8xbf16>, vector<8x8xbf16>, vector<8x8xf32> -> vector<8x8xf32>
    %77 = tpu.reciprocal %73 {approx = true} : vector<8x1xf32> -> vector<8x1xf32>
    %78 = vector.broadcast %77 : vector<8x1xf32> to vector<8x8xf32>
    %79 = arith.mulf %76, %78 : vector<8x8xf32>
    %c0_34 = arith.constant 0 : index
    %c16 = arith.constant 16 : index
    %80 = vector.load %arg18[%c0_34, %c16] : memref<16x32xf32, #tpu.memory_space<vmem>>, vector<8x8xf32>
    tpu.vector_store %arg18[%c0_34, %c16], %79 {strides = array<i32>} : memref<16x32xf32, #tpu.memory_space<vmem>>, vector<8x8xf32>,
    %81 = vector.extract_strided_slice %22 {offsets = [0, 24], sizes = [8, 8], strides = [1, 1]} : vector<8x32xbf16> to vector<8x8xbf16>
    %82 = vector.extract_strided_slice %23 {offsets = [0, 24], sizes = [8, 8], strides = [1, 1]} : vector<8x32xbf16> to vector<8x8xbf16>
    %cst_35 = arith.constant dense<0.000000e+00> : vector<8x8xf32>
    %83 = tpu.matmul %81, %82, %cst_35 {dimension_numbers = #tpu.dot_dimension_numbers<[1], [1], [0], [0], [0, 0, 1, 0], [], []>} : vector<8x8xbf16>, vector<8x8xbf16>, vector<8x8xf32> -> vector<8x8xf32>
    %84 = arith.addf %83, %26 : vector<8x8xf32>
    %cst_36 = arith.constant dense<0xFF800000> : vector<8xf32>
    %85 = vector.multi_reduction <maximumf>, %84, %cst_36 [1] : vector<8x8xf32> to vector<8xf32>
    %86 = vector.shape_cast %85 : vector<8xf32> to vector<8x1xf32>
    %87 = vector.broadcast %86 : vector<8x1xf32> to vector<8x8xf32>
    %88 = arith.subf %84, %87 : vector<8x8xf32>
    %89 = math.exp %88 : vector<8x8xf32>
    %cst_37 = arith.constant dense<0.000000e+00> : vector<8xf32>
    %90 = vector.multi_reduction <add>, %89, %cst_37 [1] : vector<8x8xf32> to vector<8xf32>
    %91 = vector.shape_cast %90 : vector<8xf32> to vector<8x1xf32>
    %92 = arith.truncf %89 : vector<8x8xf32> to vector<8x8xbf16>
    %93 = vector.extract_strided_slice %24 {offsets = [0, 24], sizes = [8, 8], strides = [1, 1]} : vector<8x32xbf16> to vector<8x8xbf16>
    %cst_38 = arith.constant dense<0.000000e+00> : vector<8x8xf32>
    %94 = tpu.matmul %92, %93, %cst_38 {dimension_numbers = #tpu.dot_dimension_numbers<[1], [0], [0], [1], [0, 0, 1, 1], [], []>} : vector<8x8xbf16>, vector<8x8xbf16>, vector<8x8xf32> -> vector<8x8xf32>
    %95 = tpu.reciprocal %91 {approx = true} : vector<8x1xf32> -> vector<8x1xf32>
    %96 = vector.broadcast %95 : vector<8x1xf32> to vector<8x8xf32>
    %97 = arith.mulf %94, %96 : vector<8x8xf32>
    %c0_39 = arith.constant 0 : index
    %c24 = arith.constant 24 : index
    %98 = vector.load %arg18[%c0_39, %c24] : memref<16x32xf32, #tpu.memory_space<vmem>>, vector<8x8xf32>
    tpu.vector_store %arg18[%c0_39, %c24], %97 {strides = array<i32>} : memref<16x32xf32, #tpu.memory_space<vmem>>, vector<8x8xf32>,
    %99 = vector.extract_strided_slice %9 {offsets = [8, 0], sizes = [8, 32], strides = [1, 1]} : vector<16x32xbf16> to vector<8x32xbf16>
    %100 = vector.extract_strided_slice %15 {offsets = [8, 0], sizes = [8, 32], strides = [1, 1]} : vector<16x32xbf16> to vector<8x32xbf16>
    %101 = vector.extract_strided_slice %21 {offsets = [8, 0], sizes = [8, 32], strides = [1, 1]} : vector<16x32xbf16> to vector<8x32xbf16>
    %c1 = arith.constant 1 : index
    %c0_40 = arith.constant 0 : index
    %c0_41 = arith.constant 0 : index
    %102 = vector.load %arg2[%c1, %c0_40, %c0_41] : memref<2x8x8xf32, #tpu.memory_space<vmem>>, vector<1x8x8xf32>
    %103 = vector.shape_cast %102 : vector<1x8x8xf32> to vector<8x8xf32>
    %104 = vector.extract_strided_slice %99 {offsets = [0, 0], sizes = [8, 8], strides = [1, 1]} : vector<8x32xbf16> to vector<8x8xbf16>
    %105 = vector.extract_strided_slice %100 {offsets = [0, 0], sizes = [8, 8], strides = [1, 1]} : vector<8x32xbf16> to vector<8x8xbf16>
    %cst_42 = arith.constant dense<0.000000e+00> : vector<8x8xf32>
    %106 = tpu.matmul %104, %105, %cst_42 {dimension_numbers = #tpu.dot_dimension_numbers<[1], [1], [0], [0], [0, 0, 1, 0], [], []>} : vector<8x8xbf16>, vector<8x8xbf16>, vector<8x8xf32> -> vector<8x8xf32>
    %107 = arith.addf %106, %103 : vector<8x8xf32>
    %cst_43 = arith.constant dense<0xFF800000> : vector<8xf32>
    %108 = vector.multi_reduction <maximumf>, %107, %cst_43 [1] : vector<8x8xf32> to vector<8xf32>
    %109 = vector.shape_cast %108 : vector<8xf32> to vector<8x1xf32>
    %110 = vector.broadcast %109 : vector<8x1xf32> to vector<8x8xf32>
    %111 = arith.subf %107, %110 : vector<8x8xf32>
    %112 = math.exp %111 : vector<8x8xf32>
    %cst_44 = arith.constant dense<0.000000e+00> : vector<8xf32>
    %113 = vector.multi_reduction <add>, %112, %cst_44 [1] : vector<8x8xf32> to vector<8xf32>
    %114 = vector.shape_cast %113 : vector<8xf32> to vector<8x1xf32>
    %115 = arith.truncf %112 : vector<8x8xf32> to vector<8x8xbf16>
    %116 = vector.extract_strided_slice %101 {offsets = [0, 0], sizes = [8, 8], strides = [1, 1]} : vector<8x32xbf16> to vector<8x8xbf16>
    %cst_45 = arith.constant dense<0.000000e+00> : vector<8x8xf32>
    %117 = tpu.matmul %115, %116, %cst_45 {dimension_numbers = #tpu.dot_dimension_numbers<[1], [0], [0], [1], [0, 0, 1, 1], [], []>} : vector<8x8xbf16>, vector<8x8xbf16>, vector<8x8xf32> -> vector<8x8xf32>
    %118 = tpu.reciprocal %114 {approx = true} : vector<8x1xf32> -> vector<8x1xf32>
    %119 = vector.broadcast %118 : vector<8x1xf32> to vector<8x8xf32>
    %120 = arith.mulf %117, %119 : vector<8x8xf32>
    %c8_46 = arith.constant 8 : index
    %c0_47 = arith.constant 0 : index
    %121 = vector.load %arg18[%c8_46, %c0_47] : memref<16x32xf32, #tpu.memory_space<vmem>>, vector<8x8xf32>
    tpu.vector_store %arg18[%c8_46, %c0_47], %120 {strides = array<i32>} : memref<16x32xf32, #tpu.memory_space<vmem>>, vector<8x8xf32>,
    %122 = vector.extract_strided_slice %99 {offsets = [0, 8], sizes = [8, 8], strides = [1, 1]} : vector<8x32xbf16> to vector<8x8xbf16>
    %123 = vector.extract_strided_slice %100 {offsets = [0, 8], sizes = [8, 8], strides = [1, 1]} : vector<8x32xbf16> to vector<8x8xbf16>
    %cst_48 = arith.constant dense<0.000000e+00> : vector<8x8xf32>
    %124 = tpu.matmul %122, %123, %cst_48 {dimension_numbers = #tpu.dot_dimension_numbers<[1], [1], [0], [0], [0, 0, 1, 0], [], []>} : vector<8x8xbf16>, vector<8x8xbf16>, vector<8x8xf32> -> vector<8x8xf32>
    %125 = arith.addf %124, %103 : vector<8x8xf32>
    %cst_49 = arith.constant dense<0xFF800000> : vector<8xf32>
    %126 = vector.multi_reduction <maximumf>, %125, %cst_49 [1] : vector<8x8xf32> to vector<8xf32>
    %127 = vector.shape_cast %126 : vector<8xf32> to vector<8x1xf32>
    %128 = vector.broadcast %127 : vector<8x1xf32> to vector<8x8xf32>
    %129 = arith.subf %125, %128 : vector<8x8xf32>
    %130 = math.exp %129 : vector<8x8xf32>
    %cst_50 = arith.constant dense<0.000000e+00> : vector<8xf32>
    %131 = vector.multi_reduction <add>, %130, %cst_50 [1] : vector<8x8xf32> to vector<8xf32>
    %132 = vector.shape_cast %131 : vector<8xf32> to vector<8x1xf32>
    %133 = arith.truncf %130 : vector<8x8xf32> to vector<8x8xbf16>
    %134 = vector.extract_strided_slice %101 {offsets = [0, 8], sizes = [8, 8], strides = [1, 1]} : vector<8x32xbf16> to vector<8x8xbf16>
    %cst_51 = arith.constant dense<0.000000e+00> : vector<8x8xf32>
    %135 = tpu.matmul %133, %134, %cst_51 {dimension_numbers = #tpu.dot_dimension_numbers<[1], [0], [0], [1], [0, 0, 1, 1], [], []>} : vector<8x8xbf16>, vector<8x8xbf16>, vector<8x8xf32> -> vector<8x8xf32>
    %136 = tpu.reciprocal %132 {approx = true} : vector<8x1xf32> -> vector<8x1xf32>
    %137 = vector.broadcast %136 : vector<8x1xf32> to vector<8x8xf32>
    %138 = arith.mulf %135, %137 : vector<8x8xf32>
    %c8_52 = arith.constant 8 : index
    %c8_53 = arith.constant 8 : index
    %139 = vector.load %arg18[%c8_52, %c8_53] : memref<16x32xf32, #tpu.memory_space<vmem>>, vector<8x8xf32>
    tpu.vector_store %arg18[%c8_52, %c8_53], %138 {strides = array<i32>} : memref<16x32xf32, #tpu.memory_space<vmem>>, vector<8x8xf32>,
    %140 = vector.extract_strided_slice %99 {offsets = [0, 16], sizes = [8, 8], strides = [1, 1]} : vector<8x32xbf16> to vector<8x8xbf16>
    %141 = vector.extract_strided_slice %100 {offsets = [0, 16], sizes = [8, 8], strides = [1, 1]} : vector<8x32xbf16> to vector<8x8xbf16>
    %cst_54 = arith.constant dense<0.000000e+00> : vector<8x8xf32>
    %142 = tpu.matmul %140, %141, %cst_54 {dimension_numbers = #tpu.dot_dimension_numbers<[1], [1], [0], [0], [0, 0, 1, 0], [], []>} : vector<8x8xbf16>, vector<8x8xbf16>, vector<8x8xf32> -> vector<8x8xf32>
    %143 = arith.addf %142, %103 : vector<8x8xf32>
    %cst_55 = arith.constant dense<0xFF800000> : vector<8xf32>
    %144 = vector.multi_reduction <maximumf>, %143, %cst_55 [1] : vector<8x8xf32> to vector<8xf32>
    %145 = vector.shape_cast %144 : vector<8xf32> to vector<8x1xf32>
    %146 = vector.broadcast %145 : vector<8x1xf32> to vector<8x8xf32>
    %147 = arith.subf %143, %146 : vector<8x8xf32>
    %148 = math.exp %147 : vector<8x8xf32>
    %cst_56 = arith.constant dense<0.000000e+00> : vector<8xf32>
    %149 = vector.multi_reduction <add>, %148, %cst_56 [1] : vector<8x8xf32> to vector<8xf32>
    %150 = vector.shape_cast %149 : vector<8xf32> to vector<8x1xf32>
    %151 = arith.truncf %148 : vector<8x8xf32> to vector<8x8xbf16>
    %152 = vector.extract_strided_slice %101 {offsets = [0, 16], sizes = [8, 8], strides = [1, 1]} : vector<8x32xbf16> to vector<8x8xbf16>
    %cst_57 = arith.constant dense<0.000000e+00> : vector<8x8xf32>
    %153 = tpu.matmul %151, %152, %cst_57 {dimension_numbers = #tpu.dot_dimension_numbers<[1], [0], [0], [1], [0, 0, 1, 1], [], []>} : vector<8x8xbf16>, vector<8x8xbf16>, vector<8x8xf32> -> vector<8x8xf32>
    %154 = tpu.reciprocal %150 {approx = true} : vector<8x1xf32> -> vector<8x1xf32>
    %155 = vector.broadcast %154 : vector<8x1xf32> to vector<8x8xf32>
    %156 = arith.mulf %153, %155 : vector<8x8xf32>
    %c8_58 = arith.constant 8 : index
    %c16_59 = arith.constant 16 : index
    %157 = vector.load %arg18[%c8_58, %c16_59] : memref<16x32xf32, #tpu.memory_space<vmem>>, vector<8x8xf32>
    tpu.vector_store %arg18[%c8_58, %c16_59], %156 {strides = array<i32>} : memref<16x32xf32, #tpu.memory_space<vmem>>, vector<8x8xf32>,
    %158 = vector.extract_strided_slice %99 {offsets = [0, 24], sizes = [8, 8], strides = [1, 1]} : vector<8x32xbf16> to vector<8x8xbf16>
    %159 = vector.extract_strided_slice %100 {offsets = [0, 24], sizes = [8, 8], strides = [1, 1]} : vector<8x32xbf16> to vector<8x8xbf16>
    %cst_60 = arith.constant dense<0.000000e+00> : vector<8x8xf32>
    %160 = tpu.matmul %158, %159, %cst_60 {dimension_numbers = #tpu.dot_dimension_numbers<[1], [1], [0], [0], [0, 0, 1, 0], [], []>} : vector<8x8xbf16>, vector<8x8xbf16>, vector<8x8xf32> -> vector<8x8xf32>
    %161 = arith.addf %160, %103 : vector<8x8xf32>
    %cst_61 = arith.constant dense<0xFF800000> : vector<8xf32>
    %162 = vector.multi_reduction <maximumf>, %161, %cst_61 [1] : vector<8x8xf32> to vector<8xf32>
    %163 = vector.shape_cast %162 : vector<8xf32> to vector<8x1xf32>
    %164 = vector.broadcast %163 : vector<8x1xf32> to vector<8x8xf32>
    %165 = arith.subf %161, %164 : vector<8x8xf32>
    %166 = math.exp %165 : vector<8x8xf32>
    %cst_62 = arith.constant dense<0.000000e+00> : vector<8xf32>
    %167 = vector.multi_reduction <add>, %166, %cst_62 [1] : vector<8x8xf32> to vector<8xf32>
    %168 = vector.shape_cast %167 : vector<8xf32> to vector<8x1xf32>
    %169 = arith.truncf %166 : vector<8x8xf32> to vector<8x8xbf16>
    %170 = vector.extract_strided_slice %101 {offsets = [0, 24], sizes = [8, 8], strides = [1, 1]} : vector<8x32xbf16> to vector<8x8xbf16>
    %cst_63 = arith.constant dense<0.000000e+00> : vector<8x8xf32>
    %171 = tpu.matmul %169, %170, %cst_63 {dimension_numbers = #tpu.dot_dimension_numbers<[1], [0], [0], [1], [0, 0, 1, 1], [], []>} : vector<8x8xbf16>, vector<8x8xbf16>, vector<8x8xf32> -> vector<8x8xf32>
    %172 = tpu.reciprocal %168 {approx = true} : vector<8x1xf32> -> vector<8x1xf32>
    %173 = vector.broadcast %172 : vector<8x1xf32> to vector<8x8xf32>
    %174 = arith.mulf %171, %173 : vector<8x8xf32>
    %c8_64 = arith.constant 8 : index
    %c24_65 = arith.constant 24 : index
    %175 = vector.load %arg18[%c8_64, %c24_65] : memref<16x32xf32, #tpu.memory_space<vmem>>, vector<8x8xf32>
    tpu.vector_store %arg18[%c8_64, %c24_65], %174 {strides = array<i32>} : memref<16x32xf32, #tpu.memory_space<vmem>>, vector<8x8xf32>,
    %c0_66 = arith.constant 0 : index
    %c0_67 = arith.constant 0 : index
    %176 = vector.load %arg18[%c0_66, %c0_67] : memref<16x32xf32, #tpu.memory_space<vmem>>, vector<16x32xf32>
    %177 = arith.truncf %176 : vector<16x32xf32> to vector<16x32xbf16>
    %c0_68 = arith.constant 0 : index
    %c0_69 = arith.constant 0 : index
    %178 = vector.load %arg9[%c0_68, %c0_69] : memref<32x32xbf16, #tpu.memory_space<vmem>>, vector<32x32xbf16>
    %cst_70 = arith.constant dense<0.000000e+00> : vector<16x32xf32>
    %179 = tpu.matmul %177, %178, %cst_70 {dimension_numbers = #tpu.dot_dimension_numbers<[1], [0], [0], [1], [0, 0, 1, 1], [], []>} : vector<16x32xbf16>, vector<32x32xbf16>, vector<16x32xf32> -> vector<16x32xf32>
    %c0_71 = arith.constant 0 : index
    %c0_72 = arith.constant 0 : index
    %180 = vector.load %arg10[%c0_71, %c0_72] : memref<1x32xf32, #tpu.memory_space<vmem>>, vector<1x32xf32>
    %181 = vector.broadcast %180 : vector<1x32xf32> to vector<16x32xf32>
    %182 = arith.addf %179, %181 : vector<16x32xf32>
    %c0_73 = arith.constant 0 : index
    %c0_74 = arith.constant 0 : index
    %183 = vector.load %arg15[%c0_73, %c0_74] : memref<1x32xf32, #tpu.memory_space<vmem>>, vector<1x32xf32>
    %c0_75 = arith.constant 0 : index
    %c0_76 = arith.constant 0 : index
    %184 = vector.load %arg16[%c0_75, %c0_76] : memref<1x32xf32, #tpu.memory_space<vmem>>, vector<1x32xf32>
    %185 = arith.addf %182, %0 : vector<16x32xf32>
    %cst_77 = arith.constant dense<0.000000e+00> : vector<16xf32>
    %186 = vector.multi_reduction <add>, %185, %cst_77 [1] : vector<16x32xf32> to vector<16xf32>
    %187 = vector.shape_cast %186 : vector<16xf32> to vector<16x1xf32>
    %cst_78 = arith.constant 3.200000e+01 : f32
    %188 = vector.broadcast %cst_78 : f32 to vector<16x1xf32>
    %189 = arith.divf %187, %188 : vector<16x1xf32>
    %190 = vector.broadcast %189 : vector<16x1xf32> to vector<16x32xf32>
    %191 = arith.subf %185, %190 : vector<16x32xf32>
    %192 = arith.mulf %191, %191 : vector<16x32xf32>
    %cst_79 = arith.constant dense<0.000000e+00> : vector<16xf32>
    %193 = vector.multi_reduction <add>, %192, %cst_79 [1] : vector<16x32xf32> to vector<16xf32>
    %194 = vector.shape_cast %193 : vector<16xf32> to vector<16x1xf32>
    %cst_80 = arith.constant 3.200000e+01 : f32
    %195 = vector.broadcast %cst_80 : f32 to vector<16x1xf32>
    %196 = arith.divf %194, %195 : vector<16x1xf32>
    %197 = vector.broadcast %189 : vector<16x1xf32> to vector<16x32xf32>
    %198 = arith.subf %185, %197 : vector<16x32xf32>
    %cst_81 = arith.constant 9.99999974E-6 : f32
    %199 = vector.broadcast %cst_81 : f32 to vector<16x1xf32>
    %200 = arith.addf %196, %199 : vector<16x1xf32>
    %201 = math.rsqrt %200 : vector<16x1xf32>
    %202 = vector.broadcast %201 : vector<16x1xf32> to vector<16x32xf32>
    %203 = arith.mulf %198, %202 : vector<16x32xf32>
    %204 = vector.broadcast %183 : vector<1x32xf32> to vector<16x32xf32>
    %205 = arith.mulf %203, %204 : vector<16x32xf32>
    %206 = vector.broadcast %184 : vector<1x32xf32> to vector<16x32xf32>
    %207 = arith.addf %205, %206 : vector<16x32xf32>
    %208 = arith.truncf %207 : vector<16x32xf32> to vector<16x32xbf16>
    %cst_82 = arith.constant 0.000000e+00 : f32
    %209 = vector.broadcast %cst_82 : f32 to vector<16x32xf32>
    %c0_83 = arith.constant 0 : index
    %c0_84 = arith.constant 0 : index
    %210 = vector.load %arg11[%c0_83, %c0_84] : memref<32x128xbf16, #tpu.memory_space<vmem>>, vector<32x128xbf16>
    %cst_85 = arith.constant dense<0.000000e+00> : vector<16x128xf32>
    %211 = tpu.matmul %208, %210, %cst_85 {dimension_numbers = #tpu.dot_dimension_numbers<[1], [0], [0], [1], [0, 0, 1, 1], [], []>} : vector<16x32xbf16>, vector<32x128xbf16>, vector<16x128xf32> -> vector<16x128xf32>
    %c0_86 = arith.constant 0 : index
    %c0_87 = arith.constant 0 : index
    %212 = vector.load %arg12[%c0_86, %c0_87] : memref<1x128xf32, #tpu.memory_space<vmem>>, vector<1x128xf32>
    %213 = vector.broadcast %212 : vector<1x128xf32> to vector<16x128xf32>
    %214 = arith.addf %211, %213 : vector<16x128xf32>
    %cst_88 = arith.constant 5.000000e-01 : f32
    %215 = vector.broadcast %cst_88 : f32 to vector<16x128xf32>
    %216 = arith.mulf %215, %214 : vector<16x128xf32>
    %217 = arith.mulf %214, %214 : vector<16x128xf32>
    %218 = arith.mulf %217, %214 : vector<16x128xf32>
    %cst_89 = arith.constant 4.471500e-02 : f32
    %219 = vector.broadcast %cst_89 : f32 to vector<16x128xf32>
    %220 = arith.mulf %219, %218 : vector<16x128xf32>
    %221 = arith.addf %214, %220 : vector<16x128xf32>
    %cst_90 = arith.constant 0.797884583 : f32
    %222 = vector.broadcast %cst_90 : f32 to vector<16x128xf32>
    %223 = arith.mulf %222, %221 : vector<16x128xf32>
    %224 = math.tanh %223 : vector<16x128xf32>
    %cst_91 = arith.constant 1.000000e+00 : f32
    %225 = vector.broadcast %cst_91 : f32 to vector<16x128xf32>
    %226 = arith.addf %225, %224 : vector<16x128xf32>
    %227 = arith.mulf %216, %226 : vector<16x128xf32>
    %228 = arith.truncf %227 : vector<16x128xf32> to vector<16x128xbf16>
    %c0_92 = arith.constant 0 : index
    %c0_93 = arith.constant 0 : index
    %229 = vector.load %arg13[%c0_92, %c0_93] : memref<128x32xbf16, #tpu.memory_space<vmem>>, vector<128x32xbf16>
    %cst_94 = arith.constant dense<0.000000e+00> : vector<16x32xf32>
    %230 = tpu.matmul %228, %229, %cst_94 {dimension_numbers = #tpu.dot_dimension_numbers<[1], [0], [0], [1], [0, 0, 1, 1], [], []>} : vector<16x128xbf16>, vector<128x32xbf16>, vector<16x32xf32> -> vector<16x32xf32>
    %231 = arith.addf %209, %230 : vector<16x32xf32>
    %c0_95 = arith.constant 0 : index
    %c0_96 = arith.constant 0 : index
    %232 = vector.load %arg14[%c0_95, %c0_96] : memref<1x32xf32, #tpu.memory_space<vmem>>, vector<1x32xf32>
    %233 = vector.broadcast %232 : vector<1x32xf32> to vector<16x32xf32>
    %234 = arith.addf %231, %233 : vector<16x32xf32>
    %235 = arith.addf %234, %207 : vector<16x32xf32>
    %cst_97 = arith.constant dense<0.000000e+00> : vector<16xf32>
    %236 = vector.multi_reduction <add>, %235, %cst_97 [1] : vector<16x32xf32> to vector<16xf32>
    %237 = vector.shape_cast %236 : vector<16xf32> to vector<16x1xf32>
    %cst_98 = arith.constant 3.200000e+01 : f32
    %238 = vector.broadcast %cst_98 : f32 to vector<16x1xf32>
    %239 = arith.divf %237, %238 : vector<16x1xf32>
    %240 = vector.broadcast %239 : vector<16x1xf32> to vector<16x32xf32>
    %241 = arith.subf %235, %240 : vector<16x32xf32>
    %242 = arith.mulf %241, %241 : vector<16x32xf32>
    %cst_99 = arith.constant dense<0.000000e+00> : vector<16xf32>
    %243 = vector.multi_reduction <add>, %242, %cst_99 [1] : vector<16x32xf32> to vector<16xf32>
    %244 = vector.shape_cast %243 : vector<16xf32> to vector<16x1xf32>
    %cst_100 = arith.constant 3.200000e+01 : f32
    %245 = vector.broadcast %cst_100 : f32 to vector<16x1xf32>
    %246 = arith.divf %244, %245 : vector<16x1xf32>
    %247 = vector.broadcast %239 : vector<16x1xf32> to vector<16x32xf32>
    %248 = arith.subf %235, %247 : vector<16x32xf32>
    %cst_101 = arith.constant 9.99999974E-6 : f32
    %249 = vector.broadcast %cst_101 : f32 to vector<16x1xf32>
    %250 = arith.addf %246, %249 : vector<16x1xf32>
    %251 = math.rsqrt %250 : vector<16x1xf32>
    %252 = vector.broadcast %251 : vector<16x1xf32> to vector<16x32xf32>
    %253 = arith.mulf %248, %252 : vector<16x32xf32>
    %254 = vector.broadcast %183 : vector<1x32xf32> to vector<16x32xf32>
    %255 = arith.mulf %253, %254 : vector<16x32xf32>
    %256 = vector.broadcast %184 : vector<1x32xf32> to vector<16x32xf32>
    %257 = arith.addf %255, %256 : vector<16x32xf32>
    %c0_102 = arith.constant 0 : index
    %c0_103 = arith.constant 0 : index
    %258 = vector.load %arg17[%c0_102, %c0_103] : memref<16x32xf32, #tpu.memory_space<vmem>>, vector<16x32xf32>
    tpu.vector_store %arg17[%c0_102, %c0_103], %257 {strides = array<i32>} : memref<16x32xf32, #tpu.memory_space<vmem>>, vector<16x32xf32>,
    return
  }
  func.func @transform_0(%arg0: i32) -> (i32, i32) {
    %c0_i32 = arith.constant 0 : i32
    %c0_i32_0 = arith.constant 0 : i32
    return %arg0, %c0_i32 : i32, i32
  }
  func.func @transform_1(%arg0: i32) -> (i32, i32, i32) {
    %c0_i32 = arith.constant 0 : i32
    %c0_i32_0 = arith.constant 0 : i32
    %c0_i32_1 = arith.constant 0 : i32
    return %arg0, %c0_i32, %c0_i32_0 : i32, i32, i32
  }
  func.func @transform_2(%arg0: i32) -> (i32, i32) {
    %c0_i32 = arith.constant 0 : i32
    %c0_i32_0 = arith.constant 0 : i32
    %c0_i32_1 = arith.constant 0 : i32
    return %c0_i32, %c0_i32_0 : i32, i32
  }
  func.func @transform_3(%arg0: i32) -> (i32, i32) {
    %c0_i32 = arith.constant 0 : i32
    %c0_i32_0 = arith.constant 0 : i32
    %c0_i32_1 = arith.constant 0 : i32
    return %c0_i32, %c0_i32_0 : i32, i32
  }
  func.func @transform_4(%arg0: i32) -> (i32, i32) {
    %c0_i32 = arith.constant 0 : i32
    %c0_i32_0 = arith.constant 0 : i32
    %c0_i32_1 = arith.constant 0 : i32
    return %c0_i32, %c0_i32_0 : i32, i32
  }
  func.func @transform_5(%arg0: i32) -> (i32, i32) {
    %c0_i32 = arith.constant 0 : i32
    %c0_i32_0 = arith.constant 0 : i32
    %c0_i32_1 = arith.constant 0 : i32
    return %c0_i32, %c0_i32_0 : i32, i32
  }
  func.func @transform_6(%arg0: i32) -> (i32, i32) {
    %c0_i32 = arith.constant 0 : i32
    %c0_i32_0 = arith.constant 0 : i32
    %c0_i32_1 = arith.constant 0 : i32
    return %c0_i32, %c0_i32_0 : i32, i32
  }
  func.func @transform_7(%arg0: i32) -> (i32, i32) {
    %c0_i32 = arith.constant 0 : i32
    %c0_i32_0 = arith.constant 0 : i32
    %c0_i32_1 = arith.constant 0 : i32
    return %c0_i32, %c0_i32_0 : i32, i32
  }
  func.func @transform_8(%arg0: i32) -> (i32, i32) {
    %c0_i32 = arith.constant 0 : i32
    %c0_i32_0 = arith.constant 0 : i32
    %c0_i32_1 = arith.constant 0 : i32
    return %c0_i32, %c0_i32_0 : i32, i32
  }
  func.func @transform_9(%arg0: i32) -> (i32, i32) {
    %c0_i32 = arith.constant 0 : i32
    %c0_i32_0 = arith.constant 0 : i32
    %c0_i32_1 = arith.constant 0 : i32
    return %c0_i32, %c0_i32_0 : i32, i32
  }
  func.func @transform_10(%arg0: i32) -> (i32, i32) {
    %c0_i32 = arith.constant 0 : i32
    %c0_i32_0 = arith.constant 0 : i32
    %c0_i32_1 = arith.constant 0 : i32
    return %c0_i32, %c0_i32_0 : i32, i32
  }
  func.func @transform_11(%arg0: i32) -> (i32, i32) {
    %c0_i32 = arith.constant 0 : i32
    %c0_i32_0 = arith.constant 0 : i32
    %c0_i32_1 = arith.constant 0 : i32
    return %c0_i32, %c0_i32_0 : i32, i32
  }
  func.func @transform_12(%arg0: i32) -> (i32, i32) {
    %c0_i32 = arith.constant 0 : i32
    %c0_i32_0 = arith.constant 0 : i32
    %c0_i32_1 = arith.constant 0 : i32
    return %c0_i32, %c0_i32_0 : i32, i32
  }
  func.func @transform_13(%arg0: i32) -> (i32, i32) {
    %c0_i32 = arith.constant 0 : i32
    %c0_i32_0 = arith.constant 0 : i32
    %c0_i32_1 = arith.constant 0 : i32
    return %c0_i32, %c0_i32_0 : i32, i32
  }
  func.func @transform_14(%arg0: i32) -> (i32, i32) {
    %c0_i32 = arith.constant 0 : i32
    %c0_i32_0 = arith.constant 0 : i32
    %c0_i32_1 = arith.constant 0 : i32
    return %c0_i32, %c0_i32_0 : i32, i32
  }
  func.func @transform_15(%arg0: i32) -> (i32, i32) {
    %c0_i32 = arith.constant 0 : i32
    %c0_i32_0 = arith.constant 0 : i32
    %c0_i32_1 = arith.constant 0 : i32
    return %c0_i32, %c0_i32_0 : i32, i32
  }
  func.func @transform_16(%arg0: i32) -> (i32, i32) {
    %c0_i32 = arith.constant 0 : i32
    %c0_i32_0 = arith.constant 0 : i32
    return %arg0, %c0_i32 : i32, i32
  }
}

</mosaic_0001>

<bundles_post_ra>
// kernel: tpu_custom_call.1
= control target key start
LH: loop header
LB: loop body
LE: loop exit
PB: predicated region body
PF: predicated region fallthrough
CT: control target
= control target key end

     0   :  { %s3080_s0 = inlined_call_operand.hbm [shape: f32[16,32], index: 0, kind: input, shape index: {}]   ;;  %s3081_s1 = inlined_call_operand.hbm [shape: f32[2,8,8], index: 1, kind: input, shape index: {}]   ;;  %s3082_s2 = inlined_call_operand.hbm [shape: bf16[32,32], index: 2, kind: input, shape index: {}]   ;;  %s3083_s3 = inlined_call_operand.hbm [shape: f32[1,32], index: 3, kind: input, shape index: {}]   ;;  %s3084_s4 = inlined_call_operand.hbm [shape: bf16[32,32], index: 4, kind: input, shape index: {}]   ;;  %s3085_s5 = inlined_call_operand.hbm [shape: f32[1,32], index: 5, kind: input, shape index: {}]   ;;  %s3086_s6 = inlined_call_operand.hbm [shape: bf16[32,32], index: 6, kind: input, shape index: {}]   ;;  %s3087_s7 = inlined_call_operand.hbm [shape: f32[1,32], index: 7, kind: input, shape index: {}]   ;;  %s3088_s8 = inlined_call_operand.hbm [shape: bf16[32,32], index: 8, kind: input, shape index: {}]   ;;  %s3089_s9 = inlined_call_operand.hbm [shape: f32[1,32], index: 9, kind: input, shape index: {}]   ;;  %s3090_s10 = inlined_call_operand.hbm [shape: bf16[32,128], index: 10, kind: input, shape index: {}]   ;;  %s3091_s11 = inlined_call_operand.hbm [shape: f32[1,128], index: 11, kind: input, shape index: {}]   ;;  %s3092_s12 = inlined_call_operand.hbm [shape: bf16[128,32], index: 12, kind: input, shape index: {}]   ;;  %s3093_s13 = inlined_call_operand.hbm [shape: f32[1,32], index: 13, kind: input, shape index: {}]   ;;  %s3094_s14 = inlined_call_operand.hbm [shape: f32[1,32], index: 14, kind: input, shape index: {}]   ;;  %s3095_s15 = inlined_call_operand.hbm [shape: f32[1,32], index: 15, kind: input, shape index: {}]   ;;  %s3096_s16 = inlined_call_operand.hbm [shape: f32[16,32], index: 16, kind: output, shape index: {}]  }
   0x1   :  { %3098 = sst [smem:[#allocation40_spill]] %s3080_s0 }
   0x2   :  { %21 = vsyncpa [#allocation4], 0 }
   0x3   :  { %22 = vsyncpa [#allocation7], 0 }
   0x4   :  { %23 = vsyncpa [#allocation10], 0 }
   0x5   :  { %24 = vsyncpa [#allocation13], 0 }
   0x6   :  { %25 = vsyncpa [#allocation16], 0 }
   0x7   :  { %26 = vsyncpa [#allocation19], 0 }
   0x8   :  { %27 = vsyncpa [#allocation22], 0 }
   0x9   :  { %28 = vsyncpa [#allocation25], 0 }
   0xa   :  { %29 = vsyncpa [#allocation28], 0 }
   0xb   :  { %30 = vsyncpa [#allocation5], 0  ;;  %s2492_s21 = smov [#allocation6]   ;;  %s2493_s23 = smov [#allocation9]  }
   0xc   :  { %s48_s22 = sshll.u32 %s2492_s21, 4  ;;  %s73_s24 = sshll.u32 %s2493_s23, 4  ;;  %s49_s22 = int_to_ptr.vmem [resolvable:$true] %s48_s22  ;;  %s2605_s24 = int_to_ptr.vmem [resolvable:$true] %s73_s24 }
   0xd   :  { %s2098_s27 = scalar_lea.hbm %s3081_s1, 256 }
   0xe   :  { %p2099_p0 = scmp.ne.s32.totalorder %s3081_s1, %s2098_s27  ;;  %p2102_p1 = scmp.lt.u32.totalorder %s2098_s27, %s3081_s1 }
  0x10   :  { %p2104_p2 = pnand %p2102_p1, %p2099_p0 }
  0x12   :  { %2107 = shalt.err (!%p2104_p2)
}
  0x13   :  { %s2108_s17 = scalar_lea.vmem %s49_s22, 256  ;;  %p2113_p4 = scmp.lt.s32.totalorder %s49_s22, %s49_s22 }
  0x14   :  { %p2109_p3 = scmp.ne.s32.totalorder %s49_s22, %s2108_s17  ;;  %p2114_p5 = scmp.lt.s32.totalorder %s2108_s17, %s2108_s17 }
  0x16   :  { %p2115_p6 = por %p2114_p5, %p2113_p4 }
  0x18   :  { %p2116_p7 = pnand %p2115_p6, %p2109_p3 }
  0x1a   :  { %2119 = shalt.err (!%p2116_p7)
}
  0x1b   :  { %s2494_s18 = smov 128   ;;  %s2495_s19 = smov 8  }
  0x1c   :  { %54 = dma.hbm_to_vmem [thread:$0]  %s3081_s1, 256, %s49_s22, [#allocation7], %s2494_s18, %s2494_s18, %s2495_s19  }
  0x1d   :  { %s2120_s26 = scalar_lea.hbm %s3083_s3, 16 }
  0x1e   :  { %p2121_p8 = scmp.ne.s32.totalorder %s3083_s3, %s2120_s26  ;;  %p2124_p9 = scmp.lt.u32.totalorder %s2120_s26, %s3083_s3 }
  0x20   :  { %p2126_p10 = pnand %p2124_p9, %p2121_p8 }
  0x22   :  { %2129 = shalt.err (!%p2126_p10)
}
  0x23   :  { %s2130_s0 = scalar_lea.vmem %s2605_s24, 16  ;;  %s2134_s1 = scalar_lea.vmem %s2605_s24, 32 }
  0x24   :  { %p2131_p11 = scmp.ne.s32.totalorder %s2605_s24, %s2130_s0  ;;  %p2135_p12 = scmp.lt.s32.totalorder %s2605_s24, %s2605_s24 }
  0x25   :  { %p2136_p13 = scmp.lt.s32.totalorder %s2134_s1, %s2130_s0 }
  0x27   :  { %p2137_p0 = por %p2136_p13, %p2135_p12 }
  0x29   :  { %p2138_p1 = pnand %p2137_p0, %p2131_p11 }
  0x2b   :  { %2141 = shalt.err (!%p2138_p1)
}
  0x2c   :  { %76 = dma.hbm_to_vmem [thread:$0]  %s3083_s3, 16, %s2605_s24, [#allocation10]  }
  0x2d   :  { %s2496_s20 = smov [#allocation12]   ;;  %s2497_s23 = smov [#allocation15]  }
  0x2e   :  { %s95_s21 = sshll.u32 %s2496_s20, 4  ;;  %s117_s25 = sshll.u32 %s2497_s23, 4  ;;  %s96_s21 = int_to_ptr.vmem [resolvable:$true] %s95_s21  ;;  %s118_s25 = int_to_ptr.vmem [resolvable:$true] %s117_s25 }
  0x2f   :  { %s2142_s28 = scalar_lea.hbm %s3085_s5, 16 }
  0x30   :  { %p2143_p2 = scmp.ne.s32.totalorder %s3085_s5, %s2142_s28  ;;  %p2146_p3 = scmp.lt.u32.totalorder %s2142_s28, %s3085_s5 }
  0x32   :  { %p2148_p4 = pnand %p2146_p3, %p2143_p2 }
  0x34   :  { %2151 = shalt.err (!%p2148_p4)
}
  0x35   :  { %s2152_s3 = scalar_lea.vmem %s96_s21, 16  ;;  %s2156_s24 = scalar_lea.vmem %s96_s21, 32 }
  0x36   :  { %p2153_p5 = scmp.ne.s32.totalorder %s96_s21, %s2152_s3  ;;  %p2157_p6 = scmp.lt.s32.totalorder %s96_s21, %s96_s21 }
  0x37   :  { %p2158_p7 = scmp.lt.s32.totalorder %s2156_s24, %s2152_s3 }
  0x39   :  { %p2159_p8 = por %p2158_p7, %p2157_p6 }
  0x3b   :  { %p2160_p9 = pnand %p2159_p8, %p2153_p5 }
  0x3d   :  { %2163 = shalt.err (!%p2160_p9)
}
  0x3e   :  { %98 = dma.hbm_to_vmem [thread:$0]  %s3085_s5, 16, %s96_s21, [#allocation13]  }
  0x3f   :  { %s2164_s26 = scalar_lea.hbm %s3087_s7, 16 }
  0x40   :  { %p2165_p10 = scmp.ne.s32.totalorder %s3087_s7, %s2164_s26  ;;  %p2168_p11 = scmp.lt.u32.totalorder %s2164_s26, %s3087_s7 }
  0x42   :  { %p2170_p12 = pnand %p2168_p11, %p2165_p10 }
  0x44   :  { %2173 = shalt.err (!%p2170_p12)
}
  0x45   :  { %s2174_s0 = scalar_lea.vmem %s118_s25, 16  ;;  %s2178_s1 = scalar_lea.vmem %s118_s25, 32 }
  0x46   :  { %p2175_p13 = scmp.ne.s32.totalorder %s118_s25, %s2174_s0  ;;  %p2179_p0 = scmp.lt.s32.totalorder %s118_s25, %s118_s25 }
  0x47   :  { %p2180_p1 = scmp.lt.s32.totalorder %s2178_s1, %s2174_s0 }
  0x49   :  { %p2181_p2 = por %p2180_p1, %p2179_p0 }
  0x4b   :  { %p2182_p3 = pnand %p2181_p2, %p2175_p13 }
  0x4d   :  { %2185 = shalt.err (!%p2182_p3)
}
  0x4e   :  { %120 = dma.hbm_to_vmem [thread:$0]  %s3087_s7, 16, %s118_s25, [#allocation16]  }
  0x4f   :  { %s2498_s3 = smov [#allocation18]   ;;  %s2499_s22 = smov [#allocation21]  }
  0x50   :  { %s139_s24 = sshll.u32 %s2498_s3, 4  ;;  %s161_s17 = sshll.u32 %s2499_s22, 4  ;;  %s140_s24 = int_to_ptr.vmem [resolvable:$true] %s139_s24  ;;  %s162_s17 = int_to_ptr.vmem [resolvable:$true] %s161_s17 }
  0x51   :  { %s2186_s26 = scalar_lea.hbm %s3089_s9, 16 }
  0x52   :  { %p2187_p4 = scmp.ne.s32.totalorder %s3089_s9, %s2186_s26  ;;  %p2190_p5 = scmp.lt.u32.totalorder %s2186_s26, %s3089_s9 }
  0x54   :  { %p2192_p6 = pnand %p2190_p5, %p2187_p4 }
  0x56   :  { %2195 = shalt.err (!%p2192_p6)
}
  0x57   :  { %s2196_s7 = scalar_lea.vmem %s140_s24, 16  ;;  %s2200_s25 = scalar_lea.vmem %s140_s24, 32 }
  0x58   :  { %p2197_p7 = scmp.ne.s32.totalorder %s140_s24, %s2196_s7  ;;  %p2201_p8 = scmp.lt.s32.totalorder %s140_s24, %s140_s24 }
  0x59   :  { %p2202_p9 = scmp.lt.s32.totalorder %s2200_s25, %s2196_s7 }
  0x5b   :  { %p2203_p10 = por %p2202_p9, %p2201_p8 }
  0x5d   :  { %p2204_p11 = pnand %p2203_p10, %p2197_p7 }
  0x5f   :  { %2207 = shalt.err (!%p2204_p11)
}
  0x60   :  { %142 = dma.hbm_to_vmem [thread:$0]  %s3089_s9, 16, %s140_s24, [#allocation19]  }
  0x61   :  { %s2208_s3 = scalar_lea.hbm %s3091_s11, 16 }
  0x62   :  { %p2209_p12 = scmp.ne.s32.totalorder %s3091_s11, %s2208_s3  ;;  %p2212_p13 = scmp.lt.u32.totalorder %s2208_s3, %s3091_s11 }
  0x64   :  { %p2214_p0 = pnand %p2212_p13, %p2209_p12 }
  0x66   :  { %2217 = shalt.err (!%p2214_p0)
}
  0x67   :  { %s2218_s27 = scalar_lea.vmem %s162_s17, 16  ;;  %s2222_s28 = scalar_lea.vmem %s162_s17, 32 }
  0x68   :  { %p2219_p1 = scmp.ne.s32.totalorder %s162_s17, %s2218_s27  ;;  %p2223_p2 = scmp.lt.s32.totalorder %s162_s17, %s162_s17 }
  0x69   :  { %p2224_p3 = scmp.lt.s32.totalorder %s2222_s28, %s2218_s27 }
  0x6b   :  { %p2225_p4 = por %p2224_p3, %p2223_p2 }
  0x6d   :  { %p2226_p5 = pnand %p2225_p4, %p2219_p1 }
  0x6f   :  { %2229 = shalt.err (!%p2226_p5)
}
  0x70   :  { %164 = dma.hbm_to_vmem [thread:$0]  %s3091_s11, 16, %s162_s17, [#allocation22]  }
  0x71   :  { %s2500_s29 = smov [#allocation24]   ;;  %s2501_s7 = smov [#allocation3]  }
  0x72   :  { %s183_s30 = sshll.u32 %s2500_s29, 4  ;;  %s36_s25 = sshll.u32 %s2501_s7, 4  ;;  %s184_s30 = int_to_ptr.vmem [resolvable:$true] %s183_s30  ;;  %s2688_s25 = int_to_ptr.vmem [resolvable:$true] %s36_s25 }
  0x73   :  { %s2230_s5 = scalar_lea.hbm %s3093_s13, 16 }
  0x74   :  { %p2231_p6 = scmp.ne.s32.totalorder %s3093_s13, %s2230_s5  ;;  %p2234_p7 = scmp.lt.u32.totalorder %s2230_s5, %s3093_s13 }
  0x76   :  { %p2236_p8 = pnand %p2234_p7, %p2231_p6 }
  0x78   :  { %2239 = shalt.err (!%p2236_p8)
}
  0x79   :  { %s2240_s11 = scalar_lea.vmem %s184_s30, 16  ;;  %s2244_s17 = scalar_lea.vmem %s184_s30, 32 }
  0x7a   :  { %p2241_p9 = scmp.ne.s32.totalorder %s184_s30, %s2240_s11  ;;  %p2245_p10 = scmp.lt.s32.totalorder %s184_s30, %s184_s30 }
  0x7b   :  { %p2246_p11 = scmp.lt.s32.totalorder %s2244_s17, %s2240_s11 }
  0x7d   :  { %p2247_p12 = por %p2246_p11, %p2245_p10 }
  0x7f   :  { %p2248_p13 = pnand %p2247_p12, %p2241_p9 }
  0x81   :  { %2251 = shalt.err (!%p2248_p13)
}
  0x82   :  { %186 = dma.hbm_to_vmem [thread:$0]  %s3093_s13, 16, %s184_s30, [#allocation25]  }
  0x83   :  { %s3099_s9 = sld [smem:[#allocation40_spill]] }
  0x89   :  { %s2252_s24 = scalar_lea.hbm %s3099_s9, 256 }
  0x8a   :  { %p2253_p0 = scmp.ne.s32.totalorder %s3099_s9, %s2252_s24  ;;  %p2256_p1 = scmp.lt.u32.totalorder %s2252_s24, %s3099_s9 }
  0x8c   :  { %p2258_p2 = pnand %p2256_p1, %p2253_p0 }
  0x8e   :  { %2261 = shalt.err (!%p2258_p2)
}
  0x8f   :  { %s2262_s5 = scalar_lea.vmem %s2688_s25, 256  ;;  %p2267_p4 = scmp.lt.s32.totalorder %s2688_s25, %s2688_s25 }
  0x90   :  { %p2263_p3 = scmp.ne.s32.totalorder %s2688_s25, %s2262_s5  ;;  %p2268_p5 = scmp.lt.s32.totalorder %s2262_s5, %s2262_s5 }
  0x92   :  { %p2269_p6 = por %p2268_p5, %p2267_p4 }
  0x94   :  { %p2270_p7 = pnand %p2269_p6, %p2263_p3 }
  0x96   :  { %2273 = shalt.err (!%p2270_p7)
}
  0x97   :  { %42 = dma.hbm_to_vmem [thread:$0]  %s3099_s9, 256, %s2688_s25, [#allocation4], %s2494_s18, %s2494_s18, %s2495_s19  }
  0x98   :  { %s2502_s21 = smov [#allocation8]   ;;  %s2274_s11 = scalar_lea.hbm %s3082_s2, 256 }
  0x99   :  { %s60_s3 = sshll.u32 %s2502_s21, 4  ;;  %p2275_p8 = scmp.ne.s32.totalorder %s3082_s2, %s2274_s11  ;;  %s61_s3 = int_to_ptr.vmem [resolvable:$true] %s60_s3 }
  0x9a   :  { %p2278_p9 = scmp.lt.u32.totalorder %s2274_s11, %s3082_s2 }
  0x9c   :  { %p2280_p10 = pnand %p2278_p9, %p2275_p8 }
  0x9e   :  { %2283 = shalt.err (!%p2280_p10)
}
  0x9f   :  { %s2284_s28 = scalar_lea.vmem %s61_s3, 256  ;;  %p2289_p12 = scmp.lt.s32.totalorder %s61_s3, %s61_s3 }
  0xa0   :  { %p2285_p11 = scmp.ne.s32.totalorder %s61_s3, %s2284_s28  ;;  %p2290_p13 = scmp.lt.s32.totalorder %s2284_s28, %s2284_s28 }
  0xa2   :  { %p2291_p0 = por %p2290_p13, %p2289_p12 }
  0xa4   :  { %p2292_p1 = pnand %p2291_p0, %p2285_p11 }
  0xa6   :  { %2295 = shalt.err (!%p2292_p1)
}
  0xa7   :  { %s2503_s25 = smov 64   ;;  %s2504_s9 = smov 4  }
  0xa8   :  { %66 = dma.hbm_to_vmem [thread:$0]  %s3082_s2, 256, %s61_s3, [#allocation7], %s2503_s25, %s2503_s25, %s2504_s9  }
  0xa9   :  { %s2505_s7 = smov [#allocation11]   ;;  %s2506_s1 = smov [#allocation14]  }
  0xaa   :  { %s82_s0 = sshll.u32 %s2505_s7, 4  ;;  %s104_s5 = sshll.u32 %s2506_s1, 4  ;;  %s83_s0 = int_to_ptr.vmem [resolvable:$true] %s82_s0  ;;  %s105_s5 = int_to_ptr.vmem [resolvable:$true] %s104_s5 }
  0xab   :  { %s2296_s21 = scalar_lea.hbm %s3084_s4, 256 }
  0xac   :  { %p2297_p2 = scmp.ne.s32.totalorder %s3084_s4, %s2296_s21  ;;  %p2300_p3 = scmp.lt.u32.totalorder %s2296_s21, %s3084_s4 }
  0xae   :  { %p2302_p4 = pnand %p2300_p3, %p2297_p2 }
  0xb0   :  { %2305 = shalt.err (!%p2302_p4)
}
  0xb1   :  { %s2306_s2 = scalar_lea.vmem %s83_s0, 256  ;;  %p2311_p6 = scmp.lt.s32.totalorder %s83_s0, %s83_s0 }
  0xb2   :  { %p2307_p5 = scmp.ne.s32.totalorder %s83_s0, %s2306_s2  ;;  %p2312_p7 = scmp.lt.s32.totalorder %s2306_s2, %s2306_s2 }
  0xb4   :  { %p2313_p8 = por %p2312_p7, %p2311_p6 }
  0xb6   :  { %p2314_p9 = pnand %p2313_p8, %p2307_p5 }
  0xb8   :  { %2317 = shalt.err (!%p2314_p9)
}
  0xb9   :  { %88 = dma.hbm_to_vmem [thread:$0]  %s3084_s4, 256, %s83_s0, [#allocation10], %s2503_s25, %s2503_s25, %s2504_s9  }
  0xba   :  { %s2318_s28 = scalar_lea.hbm %s3086_s6, 256 }
  0xbb   :  { %p2319_p10 = scmp.ne.s32.totalorder %s3086_s6, %s2318_s28  ;;  %p2322_p11 = scmp.lt.u32.totalorder %s2318_s28, %s3086_s6 }
  0xbd   :  { %p2324_p12 = pnand %p2322_p11, %p2319_p10 }
  0xbf   :  { %2327 = shalt.err (!%p2324_p12)
}
  0xc0   :  { %s2328_s13 = scalar_lea.vmem %s105_s5, 256  ;;  %p2333_p0 = scmp.lt.s32.totalorder %s105_s5, %s105_s5 }
  0xc1   :  { %p2329_p13 = scmp.ne.s32.totalorder %s105_s5, %s2328_s13  ;;  %p2334_p1 = scmp.lt.s32.totalorder %s2328_s13, %s2328_s13 }
  0xc3   :  { %p2335_p2 = por %p2334_p1, %p2333_p0 }
  0xc5   :  { %p2336_p3 = pnand %p2335_p2, %p2329_p13 }
  0xc7   :  { %2339 = shalt.err (!%p2336_p3)
}
  0xc8   :  { %110 = dma.hbm_to_vmem [thread:$0]  %s3086_s6, 256, %s105_s5, [#allocation13], %s2503_s25, %s2503_s25, %s2504_s9  }
  0xc9   :  { %s2507_s30 = smov [#allocation17]   ;;  %s2508_s22 = smov [#allocation20]  }
  0xca   :  { %s126_s21 = sshll.u32 %s2507_s30, 4  ;;  %s148_s20 = sshll.u32 %s2508_s22, 4  ;;  %s127_s21 = int_to_ptr.vmem [resolvable:$true] %s126_s21  ;;  %s149_s20 = int_to_ptr.vmem [resolvable:$true] %s148_s20 }
  0xcb   :  { %s2340_s2 = scalar_lea.hbm %s3088_s8, 256 }
  0xcc   :  { %p2341_p4 = scmp.ne.s32.totalorder %s3088_s8, %s2340_s2  ;;  %p2344_p5 = scmp.lt.u32.totalorder %s2340_s2, %s3088_s8 }
  0xce   :  { %p2346_p6 = pnand %p2344_p5, %p2341_p4 }
  0xd0   :  { %2349 = shalt.err (!%p2346_p6)
}
  0xd1   :  { %s2350_s6 = scalar_lea.vmem %s127_s21, 256  ;;  %p2355_p8 = scmp.lt.s32.totalorder %s127_s21, %s127_s21 }
  0xd2   :  { %p2351_p7 = scmp.ne.s32.totalorder %s127_s21, %s2350_s6  ;;  %p2356_p9 = scmp.lt.s32.totalorder %s2350_s6, %s2350_s6 }
  0xd4   :  { %p2357_p10 = por %p2356_p9, %p2355_p8 }
  0xd6   :  { %p2358_p11 = pnand %p2357_p10, %p2351_p7 }
  0xd8   :  { %2361 = shalt.err (!%p2358_p11)
}
  0xd9   :  { %132 = dma.hbm_to_vmem [thread:$0]  %s3088_s8, 256, %s127_s21, [#allocation16], %s2503_s25, %s2503_s25, %s2504_s9  }
  0xda   :  { %s2362_s7 = scalar_lea.hbm %s3090_s10, 256 }
  0xdb   :  { %p2363_p12 = scmp.ne.s32.totalorder %s3090_s10, %s2362_s7  ;;  %p2366_p13 = scmp.lt.u32.totalorder %s2362_s7, %s3090_s10 }
  0xdd   :  { %p2368_p0 = pnand %p2366_p13, %p2363_p12 }
  0xdf   :  { %2371 = shalt.err (!%p2368_p0)
}
  0xe0   :  { %s2372_s30 = scalar_lea.vmem %s149_s20, 256  ;;  %p2377_p2 = scmp.lt.s32.totalorder %s149_s20, %s149_s20 }
  0xe1   :  { %p2373_p1 = scmp.ne.s32.totalorder %s149_s20, %s2372_s30  ;;  %p2378_p3 = scmp.lt.s32.totalorder %s2372_s30, %s2372_s30 }
  0xe3   :  { %p2379_p4 = por %p2378_p3, %p2377_p2 }
  0xe5   :  { %p2380_p5 = pnand %p2379_p4, %p2373_p1 }
  0xe7   :  { %2383 = shalt.err (!%p2380_p5)
}
  0xe8   :  { %154 = dma.hbm_to_vmem [thread:$0]  %s3090_s10, 256, %s149_s20, [#allocation19], %s2503_s25, %s2503_s25, %s2504_s9  }
  0xe9   :  { %s2509_s22 = smov [#allocation23]   ;;  %s2510_s17 = smov [#allocation26]  }
  0xea   :  { %s170_s11 = sshll.u32 %s2509_s22, 4  ;;  %s193_s2 = sshll.u32 %s2510_s17, 4  ;;  %s171_s11 = int_to_ptr.vmem [resolvable:$true] %s170_s11  ;;  %s194_s2 = int_to_ptr.vmem [resolvable:$true] %s193_s2 }
  0xeb   :  { %s2384_s26 = scalar_lea.hbm %s3092_s12, 1024 }
  0xec   :  { %p2385_p6 = scmp.ne.s32.totalorder %s3092_s12, %s2384_s26  ;;  %p2388_p7 = scmp.lt.u32.totalorder %s2384_s26, %s3092_s12 }
  0xee   :  { %p2390_p8 = pnand %p2388_p7, %p2385_p6 }
  0xf0   :  { %2393 = shalt.err (!%p2390_p8)
}
  0xf1   :  { %s2394_s10 = scalar_lea.vmem %s171_s11, 1024  ;;  %p2399_p10 = scmp.lt.s32.totalorder %s171_s11, %s171_s11 }
  0xf2   :  { %p2395_p9 = scmp.ne.s32.totalorder %s171_s11, %s2394_s10  ;;  %p2400_p11 = scmp.lt.s32.totalorder %s2394_s10, %s2394_s10 }
  0xf4   :  { %p2401_p12 = por %p2400_p11, %p2399_p10 }
  0xf6   :  { %p2402_p13 = pnand %p2401_p12, %p2395_p9 }
  0xf8   :  { %2405 = shalt.err (!%p2402_p13)
}
  0xf9   :  { %176 = dma.hbm_to_vmem [thread:$0]  %s3092_s12, 1024, %s171_s11, [#allocation22], %s2503_s25, %s2503_s25, %s2504_s9  }
  0xfa   :  { %s2406_s1 = scalar_lea.hbm %s3094_s14, 16 }
  0xfb   :  { %p2407_p0 = scmp.ne.s32.totalorder %s3094_s14, %s2406_s1  ;;  %p2410_p1 = scmp.lt.u32.totalorder %s2406_s1, %s3094_s14 }
  0xfd   :  { %p2412_p2 = pnand %p2410_p1, %p2407_p0 }
  0xff   :  { %2415 = shalt.err (!%p2412_p2)
}
 0x100   :  { %s2416_s8 = scalar_lea.vmem %s194_s2, 16  ;;  %s2420_s21 = scalar_lea.vmem %s194_s2, 32 }
 0x101   :  { %p2417_p3 = scmp.ne.s32.totalorder %s194_s2, %s2416_s8  ;;  %p2421_p4 = scmp.lt.s32.totalorder %s194_s2, %s194_s2 }
 0x102   :  { %p2422_p5 = scmp.lt.s32.totalorder %s2420_s21, %s2416_s8 }
 0x104   :  { %p2423_p6 = por %p2422_p5, %p2421_p4 }
 0x106   :  { %p2424_p7 = pnand %p2423_p6, %p2417_p3 }
 0x108   :  { %2427 = shalt.err (!%p2424_p7)
}
 0x109   :  { %196 = dma.hbm_to_vmem [thread:$0]  %s3094_s14, 16, %s194_s2, [#allocation25]  }
 0x10a   :  { %s2511_s9 = smov [#allocation27]   ;;  %s2428_s3 = scalar_lea.hbm %s3095_s15, 16 }
 0x10b   :  { %s203_s22 = sshll.u32 %s2511_s9, 4  ;;  %p2429_p8 = scmp.ne.s32.totalorder %s3095_s15, %s2428_s3  ;;  %s204_s22 = int_to_ptr.vmem [resolvable:$true] %s203_s22 }
 0x10c   :  { %p2432_p9 = scmp.lt.u32.totalorder %s2428_s3, %s3095_s15 }
 0x10e   :  { %p2434_p10 = pnand %p2432_p9, %p2429_p8 }
 0x110   :  { %2437 = shalt.err (!%p2434_p10)
}
 0x111   :  { %s2438_s5 = scalar_lea.vmem %s204_s22, 16  ;;  %s2442_s14 = scalar_lea.vmem %s204_s22, 32 }
 0x112   :  { %p2439_p11 = scmp.ne.s32.totalorder %s204_s22, %s2438_s5  ;;  %p2443_p12 = scmp.lt.s32.totalorder %s204_s22, %s204_s22 }
 0x113   :  { %p2444_p13 = scmp.lt.s32.totalorder %s2442_s14, %s2438_s5 }
 0x115   :  { %p2445_p0 = por %p2444_p13, %p2443_p12 }
 0x117   :  { %p2446_p1 = pnand %p2445_p0, %p2439_p11 }
 0x119   :  { %2449 = shalt.err (!%p2446_p1)
}
 0x11a   :  { %206 = dma.hbm_to_vmem [thread:$0]  %s3095_s15, 16, %s204_s22, [#allocation28]  }
 0x11b   :  { %2472 = dma.done.wait [#allocation4], 256  }
 0x11c   :  { %2473 = vsyncadd [#allocation4], 4294967040 }
 0x11d   :  { %2474 = dma.done.wait [#allocation7], 512  }
 0x11e   :  { %2475 = vsyncadd [#allocation7], 4294966784 }
 0x11f   :  { %2476 = dma.done.wait [#allocation10], 272  }
 0x120   :  { %2477 = vsyncadd [#allocation10], 4294967024 }
 0x121   :  { %2478 = dma.done.wait [#allocation13], 272  }
 0x122   :  { %2479 = vsyncadd [#allocation13], 4294967024 }
 0x123   :  { %2480 = dma.done.wait [#allocation16], 272  }
 0x124   :  { %2481 = vsyncadd [#allocation16], 4294967024 }
 0x125   :  { %2482 = dma.done.wait [#allocation19], 272  }
 0x126   :  { %2483 = vsyncadd [#allocation19], 4294967024 }
 0x127   :  { %2484 = dma.done.wait [#allocation22], 1040  }
 0x128   :  { %2485 = vsyncadd [#allocation22], 4294966256 }
 0x129   :  { %2486 = dma.done.wait [#allocation25], 32  }
 0x12a   :  { %2487 = vsyncadd [#allocation25], 4294967264 }
 0x12b   :  { %2488 = dma.done.wait [#allocation28], 16  }
 0x12c   :  { %2489 = vsyncadd [#allocation28], 4294967280  ;;  %v2512_v0 = vmov 0.0   ;;  %vm2513_vm0 = vmmov 0   ;;  %v2036_v1 = vld [vmem:[#allocation8] sm:$0xff]   ;;  %v2037_v2 = vld [vmem:[#allocation8 + $0x8] sm:$0xff]  }
 0x12d   :  { %1852 = vmatprep.subr.bf16.mxu0 %v2512_v0  ;;  %1856 = vmatprep.mubr.msk.bf16.mxu0 %vm2513_vm0, %v2512_v0  ;;  %v2842_v3 = vld [vmem:[#allocation3] sm:$0xff]  ;;  %v2844_v4 = vld [vmem:[#allocation3 + $0x8] sm:$0xff]  ;;  %vm282_vm1 = vcmask 261120   ;;  %v2038_v5 = vld [vmem:[#allocation11] sm:$0xff]   ;;  %vm461_vm2 = vcmask 64512   ;;  %s2514_s15 = smov 112  }
 0x12e   :  { %1876 = vmatprep.subr.bf16.mxu1 %v2512_v0  ;;  %1878 = vmatprep.mubr.msk.bf16.mxu1 %vm2513_vm0, %v2512_v0  ;;  %v258_v6 = vpack.c.bf16 %v2844_v4, %v2842_v3  ;;  %v2039_v7 = vld [vmem:[#allocation11 + $0x8] sm:$0xff]   ;;  %v1749_v8 = vld [vmem:[#allocation9] ss:$0 sm:$0xff]  ;;  %v1753_v18 = vld [vmem:[#allocation12] ss:$0 sm:$0xff]  ;;  %s2515_s10 = smov 120  }
 0x12f   :  { %1853 = vmatpush3.bf16.msra.mxu0 %v2036_v1  ;;  %v2040_v26 = vld [vmem:[#allocation14] sm:$0xff]   ;;  %v2041_v28 = vld [vmem:[#allocation14 + $0x8] sm:$0xff]   ;;  %s2516_s20 = smov 104   ;;  %v1757_v51 = vld [vmem:[#allocation15] ss:$0 sm:$0xff]  ;;  %vm521_vm3 = vcmask 1043456  }
 0x130   :  { %1854 = vmatprep.subr.bf16.mxu0 %v2512_v0  ;;  %v460_v50 = vld [vmem:[#allocation6] sm:$0xff]  ;;  %s2517_s24 = smov 16   ;;  %s2518_s29 = smov 24   ;;  %vm685_vm4 = vcmask 130112   ;;  %vm801_vm5 = vcmask 195712   ;;  %vm917_vm6 = vcmask 261312  }
 0x131   :  { %s2519_s7 = smov [#allocation29]  }
 0x132   :  { %s1729_s1 = sshll.u32 %s2519_s7, 4  ;;  %s1730_s1 = int_to_ptr.vmem [resolvable:$true] %s1729_s1 }
 0x133   :  { %1855 = vmatpush3.bf16.msra.mxu0 %v2037_v2  ;;  %s2450_s13 = scalar_lea.vmem %s1730_s1, 256  ;;  %p2455_p3 = scmp.lt.s32.totalorder %s1730_s1, %s1730_s1 }
 0x134   :  { %1860 = vmatprep.subr.bf16.mxu0 %v2512_v0  ;;  %p2451_p2 = scmp.ne.s32.totalorder %s1730_s1, %s2450_s13  ;;  %p2456_p4 = scmp.lt.s32.totalorder %s2450_s13, %s2450_s13 }
 0x136   :  { %1857 = vmatmul.mubr.msk.bf16.vlgmr.msra.gmra.mrb[0].mxu0 %vm282_vm1, %v258_v6  ;;  %p2457_p5 = por %p2456_p4, %p2455_p3 }
 0x137   :  { %1861 = vmatpush3.bf16.msra.mxu0 %v2038_v5  ;;  %1864 = vmatprep.mubr.msk.bf16.mxu0 %vm2513_vm0, %v2512_v0 }
 0x138   :  { %1862 = vmatprep.subr.bf16.mxu0 %v2512_v0  ;;  %p2458_p6 = pnand %p2457_p5, %p2451_p2 }
 0x13b   :  { %1863 = vmatpush3.bf16.msra.mxu0 %v2039_v7 }
 0x13c   :  { %1868 = vmatprep.subr.bf16.mxu0 %v2512_v0 }
 0x13e   :  { %1865 = vmatmul.mubr.msk.bf16.vlgmr.msra.gmra.mrb[4].mxu0 %vm282_vm1, %v258_v6 }
 0x13f   :  { %1872 = vmatprep.mubr.msk.bf16.mxu0 %vm2513_vm0, %v2512_v0  ;;  %1869 = vmatpush3.bf16.msra.mxu0 %v2040_v26 }
 0x140   :  { %1870 = vmatprep.subr.bf16.mxu0 %v2512_v0 }
 0x143   :  { %1871 = vmatpush3.bf16.msra.mxu0 %v2041_v28 }
 0x144   :  { %1882 = vmatprep.subr.bf16.mxu0 %v2512_v0 }
 0x146   :  { %1873 = vmatmul.mubr.msk.bf16.vlgmr.msra.gmra.mrb[8].mxu0 %vm282_vm1, %v258_v6 }
 0x147   :  { %1884 = vmatprep.mubr.msk.bf16.mxu0 %vm2513_vm0, %v2512_v0 }
 0x209   :  { %v320_v9 = vpop.f32.mrb[0].mxu0 }
 0x20a   :  { %v321_v10 = vadd.f32 %v1749_v8, %v320_v9  ;;  %v1858_v11 = vpop.f32.mrb[1].mxu0 }
 0x20b   :  { %v323_v12 = vpop.f32.mrb[2].mxu0 }
 0x20c   :  { %v324_v13 = vadd.f32 %v1749_v8, %v323_v12  ;;  %v1859_v14 = vpop.f32.mrb[3].mxu0  ;;  %v327_v15 = vmul.f32 0.35355338, %v321_v10 }
 0x20e   :  { %v328_v16 = vmul.f32 0.35355338, %v324_v13 }
 0x210   :  { %v329_v17 = vpack.c.bf16 %v328_v16, %v327_v15 }
 0x211   :  { %v387_v19 = vpop.f32.mrb[4].mxu0 }
 0x212   :  { %v1866_v20 = vpop.f32.mrb[5].mxu0  ;;  %v388_v22 = vadd.f32 %v1753_v18, %v387_v19  ;;  %v921_v29 = vrot.slane %v329_v17, 4 }
 0x213   :  { %v390_v21 = vpop.f32.mrb[6].mxu0 }
 0x214   :  { %v391_v23 = vadd.f32 %v1753_v18, %v390_v21  ;;  %v1867_v24 = vpop.f32.mrb[7].mxu0 }
 0x216   :  { %v394_v25 = vpack.c.bf16 %v391_v23, %v388_v22 }
 0x218   :  { %689 = vrot.lane.b32.xlu1 %v394_v25, %s2514_s15  ;;  %572 = vrot.lane.b32.xlu0 %v394_v25, %s2515_s10  ;;  %v466_v27 = vsel %vm461_vm2, %v394_v25, 0  ;;  %v922_v30 = vrot.slane %v394_v25, 4 }
 0x219   :  { %1877 = vmatpush3.bf16.xpose.msra.mxu1 %v466_v27  ;;  %v452_v53 = vpop.f32.mrb[8].mxu0 }
 0x21a   :  { %1888 = vmatprep.subr.bf16.mxu1 %v2512_v0  ;;  %v927_v40 = vsel %vm461_vm2, %v922_v30, 0  ;;  %v453_v56 = vadd.f32 %v1757_v51, %v452_v53  ;;  %v1874_v57 = vpop.f32.mrb[9].mxu0 }
 0x21b   :  { %v455_v59 = vpop.f32.mrb[10].mxu0 }
 0x21c   :  { %687 = vrot.lane.b32.xlu1 %v329_v17, %s2514_s15  ;;  %569 = vrot.lane.b32.xlu0 %v329_v17, %s2515_s10  ;;  %v456_v62 = vadd.f32 %v1757_v51, %v455_v59  ;;  %v1875_v63 = vpop.f32.mrb[11].mxu0 }
 0x21e   :  { %v2916_v1 = vpack.c.bf16 %v456_v62, %v453_v56 }
 0x220   :  { %803 = vrot.lane.b32.xlu1 %v329_v17, %s2516_s20  ;;  %805 = vrot.lane.b32.xlu0 %v394_v25, %s2516_s20  ;;  %v523_v2 = vsel %vm521_vm3, %v2916_v1, 0  ;;  %v979_v53 = vrot.slane %v2916_v1, 4 }
 0x221   :  { %1879 = vmatmul.mubr.msk.bf16.vlgmr.msra.gmra.mrb[0].mxu1 %vm461_vm2, %v329_v17  ;;  %1883 = vmatpush3.bf16.msra.mxu0 %v523_v2 }
 0x222   :  { %1890 = vmatprep.mubr.msk.bf16.mxu1 %vm2513_vm0, %v2512_v0  ;;  %1894 = vmatprep.subr.bf16.mxu0 %v2512_v0 }
 0x224   :  { %1029 = vrot.lane.b32.xlu1 %v921_v29, %s2515_s10  ;;  %1031 = vrot.lane.b32.xlu0 %v922_v30, %s2515_s10 }
 0x228   :  { %1144 = vrot.lane.b32.xlu1 %v921_v29, %s2514_s15  ;;  %1146 = vrot.lane.b32.xlu0 %v922_v30, %s2514_s15 }
 0x22c   :  { %1259 = vrot.lane.b32.xlu1 %v921_v29, %s2516_s20  ;;  %1261 = vrot.lane.b32.xlu0 %v922_v30, %s2516_s20 }
 0x28a   :  { %v573_v31 = vpop.permute.xlu0 %572  ;;  %v690_v33 = vpop.permute.xlu1 %689 }
 0x28b   :  { %v578_v32 = vsel %vm461_vm2, %v573_v31, 0  ;;  %v695_v35 = vsel %vm461_vm2, %v690_v33, 0 }
 0x28c   :  { %1889 = vmatpush3.bf16.xpose.msra.mxu1 %v578_v32 }
 0x28d   :  { %1900 = vmatprep.subr.bf16.mxu1 %v2512_v0 }
 0x28e   :  { %v570_v34 = vpop.permute.xlu0 %569  ;;  %v688_v37 = vpop.permute.xlu1 %687 }
 0x292   :  { %v806_v36 = vpop.permute.xlu0 %805  ;;  %v804_v39 = vpop.permute.xlu1 %803 }
 0x293   :  { %1891 = vmatmul.mubr.msk.bf16.vlgmr.msra.gmra.mrb[4].mxu1 %vm461_vm2, %v570_v34  ;;  %v811_v38 = vsel %vm461_vm2, %v806_v36, 0 }
 0x294   :  { %1901 = vmatpush3.bf16.xpose.msra.mxu1 %v695_v35  ;;  %1902 = vmatprep.mubr.msk.bf16.mxu1 %vm2513_vm0, %v2512_v0 }
 0x295   :  { %1912 = vmatprep.subr.bf16.mxu1 %v2512_v0 }
 0x296   :  { %v1032_v41 = vpop.permute.xlu0 %1031  ;;  %v1030_v44 = vpop.permute.xlu1 %1029 }
 0x297   :  { %v1037_v42 = vsel %vm461_vm2, %v1032_v41, 0 }
 0x29a   :  { %v1147_v43 = vpop.permute.xlu0 %1146  ;;  %v1145_v47 = vpop.permute.xlu1 %1144 }
 0x29b   :  { %1903 = vmatmul.mubr.msk.bf16.vlgmr.msra.gmra.mrb[8].mxu1 %vm461_vm2, %v688_v37  ;;  %v1152_v45 = vsel %vm461_vm2, %v1147_v43, 0 }
 0x29c   :  { %1913 = vmatpush3.bf16.xpose.msra.mxu1 %v811_v38  ;;  %1914 = vmatprep.mubr.msk.bf16.mxu1 %vm2513_vm0, %v2512_v0 }
 0x29d   :  { %1924 = vmatprep.subr.bf16.mxu1 %v2512_v0 }
 0x29e   :  { %v1262_v46 = vpop.permute.xlu0 %1261  ;;  %v1260_v49 = vpop.permute.xlu1 %1259 }
 0x29f   :  { %v1267_v48 = vsel %vm461_vm2, %v1262_v46, 0 }
 0x2a3   :  { %1915 = vmatmul.mubr.msk.bf16.vlgmr.msra.gmra.mrb[12].mxu1 %vm461_vm2, %v804_v39 }
 0x2a4   :  { %1925 = vmatpush3.bf16.xpose.msra.mxu1 %v927_v40  ;;  %1926 = vmatprep.mubr.msk.bf16.mxu1 %vm2513_vm0, %v2512_v0 }
 0x2a5   :  { %1936 = vmatprep.subr.bf16.mxu1 %v2512_v0 }
 0x2ab   :  { %1927 = vmatmul.mubr.msk.bf16.vlgmr.msra.gmra.mrb[16].mxu1 %vm461_vm2, %v921_v29 }
 0x2ac   :  { %1937 = vmatpush3.bf16.xpose.msra.mxu1 %v1037_v42  ;;  %1938 = vmatprep.mubr.msk.bf16.mxu1 %vm2513_vm0, %v2512_v0 }
 0x2ad   :  { %1948 = vmatprep.subr.bf16.mxu1 %v2512_v0 }
 0x2b3   :  { %1939 = vmatmul.mubr.msk.bf16.vlgmr.msra.gmra.mrb[20].mxu1 %vm461_vm2, %v1030_v44  ;;  %v920_v44 = vld [vmem:[#allocation6 + $0x8] sm:$0xff] }
 0x2b4   :  { %1949 = vmatpush3.bf16.xpose.msra.mxu1 %v1152_v45  ;;  %1950 = vmatprep.mubr.msk.bf16.mxu1 %vm2513_vm0, %v2512_v0 }
 0x2b5   :  { %1960 = vmatprep.subr.bf16.mxu1 %v2512_v0 }
 0x2bb   :  { %1951 = vmatmul.mubr.msk.bf16.vlgmr.msra.gmra.mrb[24].mxu1 %vm461_vm2, %v1145_v47 }
 0x2bc   :  { %1961 = vmatpush3.bf16.xpose.msra.mxu1 %v1267_v48  ;;  %1962 = vmatprep.mubr.msk.bf16.mxu1 %vm2513_vm0, %v2512_v0 }
 0x2bd   :  { %1972 = vmatprep.subr.bf16.mxu1 %v2512_v0 }
 0x2c3   :  { %1963 = vmatmul.mubr.msk.bf16.vlgmr.msra.gmra.mrb[28].mxu1 %vm461_vm2, %v1260_v49 }
 0x2c4   :  { %1976 = vmatprep.mubr.msk.bf16.mxu1 %vm2513_vm0, %v2512_v0 }
 0x2f4   :  { %v502_v52 = vpop.f32.mrb[0].mxu1 }
 0x2f5   :  { %v503_v54 = vadd.f32 %v502_v52, %v460_v50  ;;  %v1880_v55 = vpop.f32.mrb[1].mxu1 }
 0x2f6   :  { %v505_v58 = vpop.f32.mrb[2].mxu1 }
 0x2f7   :  { %v1881_v60 = vpop.f32.mrb[3].mxu1  ;;  %v508_v61 = vsel %vm461_vm2, %v503_v54, -inf }
 0x2f8   :  { %509 = vmax.xlane.f32.xlu0 %v508_v61 }
 0x366   :  { %v614_v5 = vpop.f32.mrb[4].mxu1 }
 0x367   :  { %v2921_v6 = vadd.f32 %v614_v5, %v460_v50  ;;  %v1892_v7 = vpop.f32.mrb[5].mxu1 }
 0x368   :  { %v617_v8 = vpop.f32.mrb[6].mxu1 }
 0x369   :  { %v1893_v9 = vpop.f32.mrb[7].mxu1  ;;  %v620_v10 = vsel %vm461_vm2, %v2921_v6, -inf }
 0x36a   :  { %621 = vmax.xlane.f32.xlu1 %v620_v10 }
 0x36e   :  { %v731_v11 = vpop.f32.mrb[8].mxu1 }
 0x36f   :  { %v2925_v12 = vadd.f32 %v731_v11, %v460_v50  ;;  %v1904_v13 = vpop.f32.mrb[9].mxu1 }
 0x370   :  { %v734_v14 = vpop.f32.mrb[10].mxu1 }
 0x371   :  { %v1905_v15 = vpop.f32.mrb[11].mxu1  ;;  %v737_v16 = vsel %vm461_vm2, %v2925_v12, -inf }
 0x372   :  { %738 = vmax.xlane.f32.xlu0 %v737_v16  ;;  %v984_v16 = vsel %vm521_vm3, %v979_v53, 0 }
 0x376   :  { %v847_v17 = vpop.f32.mrb[12].mxu1 }
 0x377   :  { %v2929_v18 = vadd.f32 %v847_v17, %v460_v50  ;;  %v1916_v19 = vpop.f32.mrb[13].mxu1 }
 0x378   :  { %v850_v20 = vpop.f32.mrb[14].mxu1 }
 0x379   :  { %v1917_v21 = vpop.f32.mrb[15].mxu1  ;;  %v853_v22 = vsel %vm461_vm2, %v2929_v18, -inf }
 0x37a   :  { %854 = vmax.xlane.f32.xlu0 %v853_v22 }
 0x37b   :  { %747 = vrot.lane.b32.xlu1 %v2916_v1, %s2514_s15 }
 0x37e   :  { %v963_v23 = vpop.f32.mrb[16].mxu1 }
 0x37f   :  { %v1928_v24 = vpop.f32.mrb[17].mxu1  ;;  %863 = vrot.lane.b32.xlu1 %v2916_v1, %s2516_s20  ;;  %v964_v45 = vadd.f32 %v963_v23, %v920_v44 }
 0x380   :  { %v966_v25 = vpop.f32.mrb[18].mxu1 }
 0x381   :  { %v1929_v26 = vpop.f32.mrb[19].mxu1  ;;  %v969_v47 = vsel %vm461_vm2, %v964_v45, -inf }
 0x385   :  { %v510_v27 = vpop.xlane.xlu0 %509 }
 0x386   :  { %v511_v28 = vsub.f32 %v503_v54, %v510_v27  ;;  %v1073_v29 = vpop.f32.mrb[20].mxu1 }
 0x387   :  { %v1940_v30 = vpop.f32.mrb[21].mxu1  ;;  %v2946_v46 = vadd.f32 %v1073_v29, %v920_v44 }
 0x388   :  { %v512_v31 = vmul.f32 1.442695, %v511_v28  ;;  %v1076_v32 = vpop.f32.mrb[22].mxu1 }
 0x389   :  { %v1941_v33 = vpop.f32.mrb[23].mxu1  ;;  %v1079_v49 = vsel %vm461_vm2, %v2946_v46, -inf }
 0x38a   :  { %2054 = vpow2.f32 %v512_v31 }
 0x38e   :  { %v1188_v34 = vpop.f32.mrb[24].mxu1 }
 0x38f   :  { %v1952_v35 = vpop.f32.mrb[25].mxu1  ;;  %v2953_v50 = vadd.f32 %v1188_v34, %v920_v44 }
 0x390   :  { %v1191_v36 = vpop.f32.mrb[26].mxu1  ;;  %631 = vrot.lane.b32.xlu0 %v2916_v1, %s2515_s10 }
 0x391   :  { %v1953_v37 = vpop.f32.mrb[27].mxu1  ;;  %v1194_v52 = vsel %vm461_vm2, %v2953_v50, -inf }
 0x394   :  { %v2939_v38 = vpop.eup %2054 }
 0x395   :  { %v517_v39 = vpack.c.bf16 %v2939_v38, %v2939_v38 }
 0x396   :  { %v1303_v40 = vpop.f32.mrb[28].mxu1 }
 0x397   :  { %1885 = vmatmul.mubr.msk.bf16.vlgmr.msra.gmra.mrb[12].mxu0 %vm461_vm2, %v517_v39  ;;  %v1964_v41 = vpop.f32.mrb[29].mxu1  ;;  %v2949_v48 = vadd.f32 %v1303_v40, %v920_v44 }
 0x398   :  { %v1306_v42 = vpop.f32.mrb[30].mxu1  ;;  %1896 = vmatprep.mubr.msk.bf16.mxu0 %vm2513_vm0, %v2512_v0  ;;  %v514_v41 = vsel %vm461_vm2, %v2939_v38, 0.0 }
 0x399   :  { %v1965_v43 = vpop.f32.mrb[31].mxu1  ;;  %v1309_v51 = vsel %vm461_vm2, %v2949_v48, -inf }
 0x3a3   :  { %970 = vmax.xlane.f32.xlu1 %v969_v47 }
 0x3a7   :  { %1080 = vmax.xlane.f32.xlu1 %v1079_v49 }
 0x3ab   :  { %1310 = vmax.xlane.f32.xlu1 %v1309_v51 }
 0x3af   :  { %1195 = vmax.xlane.f32.xlu0 %v1194_v52 }
 0x3bc   :  { %1204 = vrot.lane.b32.xlu1 %v979_v53, %s2514_s15 }
 0x3c5   :  { %1089 = vrot.lane.b32.xlu0 %v979_v53, %s2515_s10 }
 0x3c9   :  { %1319 = vrot.lane.b32.xlu0 %v979_v53, %s2516_s20 }
 0x3f7   :  { %v622_v54 = vpop.xlane.xlu1 %621 }
 0x3f8   :  { %v623_v55 = vsub.f32 %v2921_v6, %v622_v54 }
 0x3fa   :  { %v624_v56 = vmul.f32 1.442695, %v623_v55 }
 0x3fb   :  { %v748_v5 = vpop.permute.xlu1 %747 }
 0x3fc   :  { %2056 = vpow2.f32 %v624_v56  ;;  %v753_v10 = vsel %vm521_vm3, %v748_v5, 0 }
 0x3ff   :  { %v739_v57 = vpop.xlane.xlu0 %738  ;;  %v864_v11 = vpop.permute.xlu1 %863 }
 0x400   :  { %v740_v58 = vsub.f32 %v2925_v12, %v739_v57  ;;  %v869_v13 = vsel %vm521_vm3, %v864_v11, 0 }
 0x402   :  { %v741_v59 = vmul.f32 1.442695, %v740_v58 }
 0x404   :  { %2058 = vpow2.f32 %v741_v59 }
 0x406   :  { %v2057_v60 = vpop.eup %2056 }
 0x407   :  { %v855_v61 = vpop.xlane.xlu0 %854  ;;  %v626_v62 = vsel %vm461_vm2, %v2057_v60, 0.0  ;;  %v629_v8 = vpack.c.bf16 %v2057_v60, %v2057_v60 }
 0x408   :  { %627 = vadd.xlane.f32.xlu0 %v626_v62  ;;  %v856_v63 = vsub.f32 %v2929_v18, %v855_v61 }
 0x40a   :  { %v857_v7 = vmul.f32 1.442695, %v856_v63 }
 0x40b   :  { %v632_v1 = vpop.permute.xlu0 %631 }
 0x40c   :  { %v637_v2 = vsel %vm521_vm3, %v632_v1, 0  ;;  %2060 = vpow2.f32 %v857_v7 }
 0x40d   :  { %1895 = vmatpush3.bf16.msra.mxu0 %v637_v2 }
 0x40e   :  { %v2059_v6 = vpop.eup %2058  ;;  %1906 = vmatprep.subr.bf16.mxu0 %v2512_v0 }
 0x40f   :  { %v743_v9 = vsel %vm461_vm2, %v2059_v6, 0.0  ;;  %v746_v12 = vpack.c.bf16 %v2059_v6, %v2059_v6 }
 0x410   :  { %744 = vadd.xlane.f32.xlu0 %v743_v9  ;;  %1897 = vmatmul.mubr.msk.bf16.vlgmr.msra.gmra.mrb[16].mxu0 %vm461_vm2, %v629_v8 }
 0x411   :  { %1907 = vmatpush3.bf16.msra.mxu0 %v753_v10  ;;  %1908 = vmatprep.mubr.msk.bf16.mxu0 %vm2513_vm0, %v2512_v0 }
 0x412   :  { %1918 = vmatprep.subr.bf16.mxu0 %v2512_v0 }
 0x416   :  { %v2061_v14 = vpop.eup %2060 }
 0x417   :  { %v862_v15 = vpack.c.bf16 %v2061_v14, %v2061_v14  ;;  %v859_v36 = vsel %vm461_vm2, %v2061_v14, 0.0 }
 0x418   :  { %1909 = vmatmul.mubr.msk.bf16.vlgmr.msra.gmra.mrb[20].mxu0 %vm461_vm2, %v746_v12 }
 0x419   :  { %1919 = vmatpush3.bf16.msra.mxu0 %v869_v13  ;;  %1920 = vmatprep.mubr.msk.bf16.mxu0 %vm2513_vm0, %v2512_v0 }
 0x41a   :  { %1930 = vmatprep.subr.bf16.mxu0 %v2512_v0 }
 0x420   :  { %1921 = vmatmul.mubr.msk.bf16.vlgmr.msra.gmra.mrb[24].mxu0 %vm461_vm2, %v862_v15 }
 0x421   :  { %1931 = vmatpush3.bf16.msra.mxu0 %v984_v16  ;;  %1932 = vmatprep.mubr.msk.bf16.mxu0 %vm2513_vm0, %v2512_v0 }
 0x422   :  { %1942 = vmatprep.subr.bf16.mxu0 %v2512_v0 }
 0x430   :  { %v971_v17 = vpop.xlane.xlu1 %970 }
 0x431   :  { %v972_v18 = vsub.f32 %v964_v45, %v971_v17 }
 0x433   :  { %v973_v19 = vmul.f32 1.442695, %v972_v18 }
 0x434   :  { %v1081_v20 = vpop.xlane.xlu1 %1080 }
 0x435   :  { %2062 = vpow2.f32 %v973_v19  ;;  %v1082_v21 = vsub.f32 %v2946_v46, %v1081_v20 }
 0x437   :  { %v1083_v22 = vmul.f32 1.442695, %v1082_v21 }
 0x438   :  { %v1311_v23 = vpop.xlane.xlu1 %1310 }
 0x439   :  { %2064 = vpow2.f32 %v1083_v22  ;;  %v1312_v24 = vsub.f32 %v2949_v48, %v1311_v23 }
 0x43b   :  { %v1313_v28 = vmul.f32 1.442695, %v1312_v24 }
 0x43c   :  { %v1196_v25 = vpop.xlane.xlu0 %1195  ;;  %v1205_v35 = vpop.permute.xlu1 %1204 }
 0x43d   :  { %v1197_v26 = vsub.f32 %v2953_v50, %v1196_v25  ;;  %v1210_v39 = vsel %vm521_vm3, %v1205_v35, 0  ;;  %v2043_v35 = vld [vmem:[#allocation17 + $0x8] sm:$0xff]  }
 0x43f   :  { %v2063_v27 = vpop.eup %2062  ;;  %v1198_v29 = vmul.f32 1.442695, %v1197_v26 }
 0x440   :  { %v1090_v30 = vpop.permute.xlu0 %1089  ;;  %v978_v31 = vpack.c.bf16 %v2063_v27, %v2063_v27  ;;  %v975_v38 = vsel %vm461_vm2, %v2063_v27, 0.0 }
 0x441   :  { %2066 = vpow2.f32 %v1198_v29  ;;  %v1095_v32 = vsel %vm521_vm3, %v1090_v30, 0 }
 0x442   :  { %1933 = vmatmul.mubr.msk.bf16.vlgmr.msra.gmra.mrb[28].mxu0 %vm461_vm2, %v978_v31  ;;  %2068 = vpow2.f32 %v1313_v28 }
 0x443   :  { %v2065_v33 = vpop.eup %2064  ;;  %1943 = vmatpush3.bf16.msra.mxu0 %v1095_v32  ;;  %1944 = vmatprep.mubr.msk.bf16.mxu0 %vm2513_vm0, %v2512_v0  ;;  %v2042_v32 = vld [vmem:[#allocation17] sm:$0xff]  }
 0x444   :  { %v1085_v34 = vsel %vm461_vm2, %v2065_v33, 0.0  ;;  %1954 = vmatprep.subr.bf16.mxu0 %v2512_v0  ;;  %v1088_v37 = vpack.c.bf16 %v2065_v33, %v2065_v33  ;;  %v1320_v44 = vpop.permute.xlu0 %1319  ;;  %1973 = vmatpush3.bf16.msra.mxu1 %v2042_v32  ;;  %v2046_v32 = vld [vmem:[#allocation23] sm:$0xff]  }
 0x445   :  { %1086 = vadd.xlane.f32.xlu1 %v1085_v34  ;;  %v1325_v47 = vsel %vm521_vm3, %v1320_v44, 0  ;;  %1974 = vmatprep.subr.bf16.mxu1 %v2512_v0 }
 0x448   :  { %1975 = vmatpush3.bf16.msra.mxu1 %v2043_v35  ;;  %v2049_v35 = vld [vmem:[#allocation23 + $0x18] sm:$0xff]  }
 0x449   :  { %860 = vadd.xlane.f32.xlu1 %v859_v36  ;;  %1988 = vmatprep.subr.bf16.mxu1 %v2512_v0 }
 0x44a   :  { %1945 = vmatmul.mubr.msk.bf16.vlgmr.msra.gmra.mrb[32].mxu0 %vm461_vm2, %v1088_v37 }
 0x44b   :  { %v2067_v40 = vpop.eup %2066  ;;  %1955 = vmatpush3.bf16.msra.mxu0 %v1210_v39  ;;  %1956 = vmatprep.mubr.msk.bf16.mxu0 %vm2513_vm0, %v2512_v0 }
 0x44c   :  { %v1200_v42 = vsel %vm461_vm2, %v2067_v40, 0.0  ;;  %1966 = vmatprep.subr.bf16.mxu0 %v2512_v0  ;;  %v2069_v43 = vpop.eup %2068  ;;  %v1203_v46 = vpack.c.bf16 %v2067_v40, %v2067_v40 }
 0x44d   :  { %515 = vadd.xlane.f32.xlu1 %v514_v41  ;;  %1201 = vadd.xlane.f32.xlu0 %v1200_v42  ;;  %v1315_v45 = vsel %vm461_vm2, %v2069_v43, 0.0  ;;  %v1318_v48 = vpack.c.bf16 %v2069_v43, %v2069_v43 }
 0x451   :  { %1316 = vadd.xlane.f32.xlu0 %v1315_v45 }
 0x452   :  { %1957 = vmatmul.mubr.msk.bf16.vlgmr.msra.gmra.mrb[36].mxu0 %vm461_vm2, %v1203_v46 }
 0x453   :  { %1967 = vmatpush3.bf16.msra.mxu0 %v1325_v47  ;;  %1968 = vmatprep.mubr.msk.bf16.mxu0 %vm2513_vm0, %v2512_v0 }
 0x454   :  { %1980 = vmatprep.subr.bf16.mxu0 %v2512_v0 }
 0x455   :  { %976 = vadd.xlane.f32.xlu0 %v975_v38 }
 0x45a   :  { %1969 = vmatmul.mubr.msk.bf16.vlgmr.msra.gmra.mrb[40].mxu0 %vm461_vm2, %v1318_v48 }
 0x45b   :  { %1984 = vmatprep.mubr.msk.bf16.mxu0 %vm2513_vm0, %v2512_v0 }
 0x46a   :  { %v559_v49 = vpop.f32.mrb[12].mxu0 }
 0x46b   :  { %v1886_v50 = vpop.f32.mrb[13].mxu0 }
 0x46c   :  { %v562_v51 = vpop.f32.mrb[14].mxu0 }
 0x46d   :  { %v1887_v52 = vpop.f32.mrb[15].mxu0 }
 0x495   :  { %v628_v54 = vpop.xlane.xlu0 %627 }
 0x496   :  { %2070 = vrcp.f32 %v628_v54 }
 0x49d   :  { %v745_v57 = vpop.xlane.xlu0 %744 }
 0x4a0   :  { %v2071_v58 = vpop.eup %2070 }
 0x4d2   :  { %v1087_v53 = vpop.xlane.xlu1 %1086 }
 0x4d6   :  { %v861_v55 = vpop.xlane.xlu1 %860 }
 0x4da   :  { %v516_v56 = vpop.xlane.xlu1 %515  ;;  %v1202_v17 = vpop.xlane.xlu0 %1201 }
 0x4db   :  { %2072 = vrcp.f32 %v516_v56 }
 0x4dc   :  { %2074 = vrcp.f32 %v745_v57 }
 0x4dd   :  { %2076 = vrcp.f32 %v861_v55  ;;  %v1777_v55 = vld [vmem:[#allocation18] ss:$0 sm:$0xff] }
 0x4de   :  { %v1317_v18 = vpop.xlane.xlu0 %1316 }
 0x4e2   :  { %v977_v19 = vpop.xlane.xlu0 %976 }
 0x4e3   :  { %v673_v59 = vpop.f32.mrb[16].mxu0  ;;  %2078 = vrcp.f32 %v977_v19 }
 0x4e4   :  { %v680_v60 = vmul.f32 %v2071_v58, %v673_v59  ;;  %v1898_v61 = vpop.f32.mrb[17].mxu0  ;;  %2080 = vrcp.f32 %v1087_v53 }
 0x4e5   :  { %v2073_v62 = vpop.eup %2072  ;;  %v676_v63 = vpop.f32.mrb[18].mxu0  ;;  %2082 = vrcp.f32 %v1202_v17 }
 0x4e6   :  { %v566_v1 = vmul.f32 %v2073_v62, %v559_v49  ;;  %682 = vrot.lane.b32.xlu1 %v680_v60, %s2495_s19  ;;  %v1899_v2 = vpop.f32.mrb[19].mxu0  ;;  %v2075_v5 = vpop.eup %2074  ;;  %2084 = vrcp.f32 %v1317_v18 }
 0x4e7   :  { %v2077_v11 = vpop.eup %2076 }
 0x4e8   :  { %567 = vst.msk [vmem:[#allocation2] sm:$0xff] %vm461_vm2, %v566_v1 }
 0x4eb   :  { %v789_v7 = vpop.f32.mrb[20].mxu0 }
 0x4ec   :  { %v796_v6 = vmul.f32 %v2075_v5, %v789_v7  ;;  %v1910_v8 = vpop.f32.mrb[21].mxu0 }
 0x4ed   :  { %v792_v9 = vpop.f32.mrb[22].mxu0  ;;  %v2079_v20 = vpop.eup %2078 }
 0x4ee   :  { %798 = vrot.lane.b32.xlu1 %v796_v6, %s2517_s24  ;;  %v1911_v10 = vpop.f32.mrb[23].mxu0  ;;  %v2081_v26 = vpop.eup %2080 }
 0x4ef   :  { %v2083_v33 = vpop.eup %2082 }
 0x4f0   :  { %v2085_v41 = vpop.eup %2084 }
 0x4f3   :  { %v905_v12 = vpop.f32.mrb[24].mxu0 }
 0x4f4   :  { %v912_v13 = vmul.f32 %v2077_v11, %v905_v12  ;;  %v1922_v14 = vpop.f32.mrb[25].mxu0 }
 0x4f5   :  { %v908_v15 = vpop.f32.mrb[26].mxu0  ;;  %v2044_v14 = vld [vmem:[#allocation20] sm:$0xff]  }
 0x4f6   :  { %v1923_v16 = vpop.f32.mrb[27].mxu0  ;;  %1981 = vmatpush3.bf16.msra.mxu0 %v2044_v14 }
 0x4f7   :  { %1982 = vmatprep.subr.bf16.mxu0 %v2512_v0 }
 0x515   :  { %v1020_v21 = vpop.f32.mrb[28].mxu0 }
 0x516   :  { %v1027_v22 = vmul.f32 %v2079_v20, %v1020_v21  ;;  %v1934_v23 = vpop.f32.mrb[29].mxu0 }
 0x517   :  { %v1023_v24 = vpop.f32.mrb[30].mxu0  ;;  %v3031_v23 = vld [vmem:[#allocation26] ss:$0 sm:$0xff] }
 0x518   :  { %1028 = vst.msk [vmem:[#allocation2 + $0x8] sm:$0xff] %vm461_vm2, %v1027_v22  ;;  %v1935_v25 = vpop.f32.mrb[31].mxu0 }
 0x51d   :  { %v1131_v27 = vpop.f32.mrb[32].mxu0 }
 0x51e   :  { %v1138_v28 = vmul.f32 %v2081_v26, %v1131_v27  ;;  %v1946_v29 = vpop.f32.mrb[33].mxu0  ;;  %v3034_v27 = vld [vmem:[#allocation27] ss:$0 sm:$0xff] }
 0x51f   :  { %v1134_v30 = vpop.f32.mrb[34].mxu0 }
 0x520   :  { %1140 = vrot.lane.b32.xlu0 %v1138_v28, %s2495_s19  ;;  %v1947_v31 = vpop.f32.mrb[35].mxu0 }
 0x524   :  { %914 = vrot.lane.b32.xlu0 %v912_v13, %s2518_s29 }
 0x525   :  { %v1246_v34 = vpop.f32.mrb[36].mxu0 }
 0x526   :  { %v1253_v36 = vmul.f32 %v2083_v33, %v1246_v34  ;;  %v1958_v37 = vpop.f32.mrb[37].mxu0  ;;  %v2047_v33 = vld [vmem:[#allocation23 + $0x8] sm:$0xff]   ;;  %v2048_v34 = vld [vmem:[#allocation23 + $0x10] sm:$0xff]  }
 0x527   :  { %v1249_v39 = vpop.f32.mrb[38].mxu0  ;;  %v2051_v37 = vld [vmem:[#allocation23 + $0x28] sm:$0xff]  }
 0x528   :  { %1255 = vrot.lane.b32.xlu1 %v1253_v36, %s2517_s24  ;;  %v1959_v40 = vpop.f32.mrb[39].mxu0  ;;  %v2050_v36 = vld [vmem:[#allocation23 + $0x20] sm:$0xff]   ;;  %v2052_v39 = vld [vmem:[#allocation23 + $0x30] sm:$0xff]  }
 0x529   :  { %v2053_v40 = vld [vmem:[#allocation23 + $0x38] sm:$0xff]  }
 0x52d   :  { %v1361_v42 = vpop.f32.mrb[40].mxu0 }
 0x52e   :  { %v1368_v43 = vmul.f32 %v2085_v41, %v1361_v42  ;;  %v1970_v44 = vpop.f32.mrb[41].mxu0  ;;  %v1783_v41 = vld [vmem:[#allocation21] ss:$0 sm:$0xff] }
 0x52f   :  { %v1364_v45 = vpop.f32.mrb[42].mxu0 }
 0x530   :  { %1370 = vrot.lane.b32.xlu1 %v1368_v43, %s2518_s29  ;;  %v1971_v46 = vpop.f32.mrb[43].mxu0 }
 0x558   :  { %v683_v47 = vpop.permute.xlu1 %682 }
 0x559   :  { %686 = vst.msk [vmem:[#allocation2] sm:$0xff] %vm685_vm4, %v683_v47 }
 0x560   :  { %v799_v38 = vpop.permute.xlu1 %798 }
 0x561   :  { %802 = vst.msk [vmem:[#allocation2] sm:$0xff] %vm801_vm5, %v799_v38 }
 0x592   :  { %v1141_v48 = vpop.permute.xlu0 %1140 }
 0x593   :  { %1143 = vst.msk [vmem:[#allocation2 + $0x8] sm:$0xff] %vm685_vm4, %v1141_v48 }
 0x596   :  { %v915_v49 = vpop.permute.xlu0 %914 }
 0x597   :  { %918 = vst.msk [vmem:[#allocation2] sm:$0xff] %vm917_vm6, %v915_v49 }
 0x59a   :  { %v1256_v50 = vpop.permute.xlu1 %1255 }
 0x59b   :  { %1258 = vst.msk [vmem:[#allocation2 + $0x8] sm:$0xff] %vm801_vm5, %v1256_v50 }
 0x59e   :  { %v1374_v52 = vld [vmem:[#allocation2] sm:$0xff] }
 0x5a2   :  { %v1371_v51 = vpop.permute.xlu1 %1370 }
 0x5a3   :  { %1373 = vst.msk [vmem:[#allocation2 + $0x8] sm:$0xff] %vm917_vm6, %v1371_v51 }
 0x5aa   :  { %v1375_v53 = vld [vmem:[#allocation2 + $0x8] sm:$0xff] }
 0x5ab   :  { %v1376_v54 = vpack.c.bf16 %v1375_v53, %v1374_v52 }
 0x5ad   :  { %1977 = vmatmul.mubr.msk.bf16.vlgmr.msra.gmra.mrb[32].mxu1 %vm282_vm1, %v1376_v54 }
 0x5ae   :  { %2004 = vmatprep.mubr.msk.bf16.mxu1 %vm2513_vm0, %v2512_v0  ;;  %1989 = vmatpush3.bf16.msra.mxu1 %v2046_v32 }
 0x5af   :  { %1990 = vmatprep.subr.bf16.mxu1 %v2512_v0 }
 0x5b2   :  { %1991 = vmatpush3.bf16.msra.mxu1 %v2047_v33 }
 0x5b3   :  { %1992 = vmatprep.subr.bf16.mxu1 %v2512_v0 }
 0x5b6   :  { %1993 = vmatpush3.bf16.msra.mxu1 %v2048_v34 }
 0x5b7   :  { %1994 = vmatprep.subr.bf16.mxu1 %v2512_v0 }
 0x5ba   :  { %1995 = vmatpush3.bf16.msra.mxu1 %v2049_v35 }
 0x5bb   :  { %1996 = vmatprep.subr.bf16.mxu1 %v2512_v0 }
 0x5be   :  { %1997 = vmatpush3.bf16.msra.mxu1 %v2050_v36 }
 0x5bf   :  { %1998 = vmatprep.subr.bf16.mxu1 %v2512_v0 }
 0x5c2   :  { %1999 = vmatpush3.bf16.msra.mxu1 %v2051_v37 }
 0x5c3   :  { %2000 = vmatprep.subr.bf16.mxu1 %v2512_v0 }
 0x5c6   :  { %2001 = vmatpush3.bf16.msra.mxu1 %v2052_v39 }
 0x5c7   :  { %2002 = vmatprep.subr.bf16.mxu1 %v2512_v0 }
 0x5ca   :  { %2003 = vmatpush3.bf16.msra.mxu1 %v2053_v40 }
 0x680   :  { %v1437_v56 = vpop.f32.mrb[32].mxu1 }
 0x681   :  { %v1438_v57 = vadd.f32 %v1777_v55, %v1437_v56  ;;  %v1978_v58 = vpop.f32.mrb[33].mxu1 }
 0x682   :  { %v1440_v59 = vpop.f32.mrb[34].mxu1 }
 0x683   :  { %v1441_v60 = vadd.f32 %v1777_v55, %v1440_v59  ;;  %v1979_v61 = vpop.f32.mrb[35].mxu1  ;;  %v1446_v62 = vadd.f32 %v1438_v57, %v2842_v3 }
 0x685   :  { %v1448_v63 = vsel %vm282_vm1, %v1446_v62, 0.0  ;;  %v1447_v1 = vadd.f32 %v1441_v60, %v2844_v4  ;;  %v2045_v4 = vld [vmem:[#allocation20 + $0x8] sm:$0xff]  }
 0x686   :  { %1449 = vadd.xlane.f32.xlu0 %v1448_v63  ;;  %1983 = vmatpush3.bf16.msra.mxu0 %v2045_v4 }
 0x687   :  { %v1451_v2 = vsel %vm282_vm1, %v1447_v1, 0.0 }
 0x688   :  { %1452 = vadd.xlane.f32.xlu1 %v1451_v2  ;;  %v1787_v2 = vld [vmem:[#allocation24] ss:$0 sm:$0xff] }
 0x713   :  { %v1450_v5 = vpop.xlane.xlu0 %1449 }
 0x714   :  { %v1455_v7 = vmul.f32 0.03125, %v1450_v5 }
 0x715   :  { %v1453_v6 = vpop.xlane.xlu1 %1452 }
 0x716   :  { %v1457_v8 = vsub.f32 %v1446_v62, %v1455_v7  ;;  %v1456_v9 = vmul.f32 0.03125, %v1453_v6 }
 0x718   :  { %v1458_v10 = vsub.f32 %v1447_v1, %v1456_v9  ;;  %v1459_v11 = vmul.f32 %v1457_v8, %v1457_v8 }
 0x71a   :  { %v1461_v12 = vsel %vm282_vm1, %v1459_v11, 0.0  ;;  %v1460_v13 = vmul.f32 %v1458_v10, %v1458_v10 }
 0x71b   :  { %1462 = vadd.xlane.f32.xlu0 %v1461_v12 }
 0x71c   :  { %v1464_v3 = vsel %vm282_vm1, %v1460_v13, 0.0 }
 0x71f   :  { %1465 = vadd.xlane.f32.xlu0 %v1464_v3 }
 0x7a8   :  { %v1463_v15 = vpop.xlane.xlu0 %1462 }
 0x7a9   :  { %v1467_v16 = vmul.f32 0.03125, %v1463_v15 }
 0x7ab   :  { %v1469_v17 = vadd.f32 1e-05, %v1467_v16 }
 0x7ac   :  { %v1466_v18 = vpop.xlane.xlu0 %1465 }
 0x7ad   :  { %2086 = vrsqrt.f32 %v1469_v17  ;;  %v1468_v19 = vmul.f32 0.03125, %v1466_v18 }
 0x7af   :  { %v1470_v20 = vadd.f32 1e-05, %v1468_v19 }
 0x7b1   :  { %2088 = vrsqrt.f32 %v1470_v20 }
 0x7b7   :  { %v2087_v21 = vpop.eup %2086 }
 0x7b8   :  { %v1473_v22 = vmul.f32 %v2087_v21, %v1457_v8 }
 0x7ba   :  { %v1481_v25 = vmul.f32 %v3031_v23, %v1473_v22 }
 0x7bb   :  { %v2089_v24 = vpop.eup %2088 }
 0x7bc   :  { %v1474_v26 = vmul.f32 %v2089_v24, %v1458_v10  ;;  %v3038_v29 = vadd.f32 %v3034_v27, %v1481_v25 }
 0x7be   :  { %v1482_v28 = vmul.f32 %v3031_v23, %v1474_v26 }
 0x7c0   :  { %v3041_v30 = vadd.f32 %v3034_v27, %v1482_v28 }
 0x7c2   :  { %v1491_v31 = vpack.c.bf16 %v3041_v30, %v3038_v29 }
 0x7c4   :  { %1985 = vmatmul.mubr.msk.bf16.vlgmr.msra.gmra.mrb[44].mxu0 %vm282_vm1, %v1491_v31 }
 0x897   :  { %v1552_v42 = vpop.f32.mrb[44].mxu0 }
 0x898   :  { %v1553_v43 = vadd.f32 %v1783_v41, %v1552_v42  ;;  %v1986_v44 = vpop.f32.mrb[45].mxu0 }
 0x899   :  { %v1555_v45 = vpop.f32.mrb[46].mxu0 }
 0x89a   :  { %v1561_v46 = vmul.f32 %v1553_v43, %v1553_v43  ;;  %v1556_v47 = vadd.f32 %v1783_v41, %v1555_v45  ;;  %v1987_v38 = vpop.f32.mrb[47].mxu0  ;;  %v1559_v59 = vmul.f32 0.5, %v1553_v43 }
 0x89c   :  { %v1563_v48 = vmul.f32 %v1561_v46, %v1553_v43  ;;  %v1562_v49 = vmul.f32 %v1556_v47, %v1556_v47  ;;  %v1560_v60 = vmul.f32 0.5, %v1556_v47 }
 0x89e   :  { %v1565_v50 = vmul.f32 0.044715, %v1563_v48  ;;  %v1564_v51 = vmul.f32 %v1562_v49, %v1556_v47 }
 0x8a0   :  { %v1567_v52 = vadd.f32 %v1565_v50, %v1553_v43  ;;  %v1566_v53 = vmul.f32 0.044715, %v1564_v51 }
 0x8a2   :  { %v1569_v54 = vmul.f32 0.7978846, %v1567_v52  ;;  %v1568_v55 = vadd.f32 %v1566_v53, %v1556_v47 }
 0x8a4   :  { %2090 = vtanh.f32 %v1569_v54  ;;  %v1570_v56 = vmul.f32 0.7978846, %v1568_v55 }
 0x8a6   :  { %2092 = vtanh.f32 %v1570_v56 }
 0x8ae   :  { %v2091_v0 = vpop.eup %2090 }
 0x8af   :  { %v1573_v57 = vadd.f32 1.0, %v2091_v0 }
 0x8b0   :  { %v2093_v58 = vpop.eup %2092 }
 0x8b1   :  { %v1574_v61 = vadd.f32 1.0, %v2093_v58  ;;  %v1575_v62 = vmul.f32 %v1573_v57, %v1559_v59 }
 0x8b3   :  { %v1576_v63 = vmul.f32 %v1574_v61, %v1560_v60 }
 0x8b5   :  { %v1577_v1 = vpack.c.bf16 %v1576_v63, %v1575_v62 }
 0x8b7   :  { %2005 = vmatmul.mubr.bf16.vlgmr.msra.gmra.mrb[36].mxu1 %v1577_v1 }
 0x98a   :  { %v1683_v5 = vpop.f32.mrb[36].mxu1 }
 0x98b   :  { %v1684_v7 = vadd.f32 %v1787_v2, %v1683_v5  ;;  %v2006_v6 = vpop.f32.mrb[37].mxu1 }
 0x98c   :  { %v1686_v8 = vpop.f32.mrb[38].mxu1 }
 0x98d   :  { %v1687_v9 = vadd.f32 %v1787_v2, %v1686_v8  ;;  %v2007_v10 = vpop.f32.mrb[39].mxu1  ;;  %v1690_v11 = vadd.f32 %v1684_v7, %v3038_v29 }
 0x98f   :  { %v1692_v12 = vsel %vm282_vm1, %v1690_v11, 0.0  ;;  %v1691_v13 = vadd.f32 %v1687_v9, %v3041_v30 }
 0x990   :  { %1693 = vadd.xlane.f32.xlu1 %v1692_v12 }
 0x991   :  { %v1695_v3 = vsel %vm282_vm1, %v1691_v13, 0.0 }
 0x992   :  { %1696 = vadd.xlane.f32.xlu0 %v1695_v3 }
 0xa1d   :  { %v1694_v14 = vpop.xlane.xlu1 %1693 }
 0xa1e   :  { %v1698_v4 = vmul.f32 0.03125, %v1694_v14 }
 0xa1f   :  { %v1697_v15 = vpop.xlane.xlu0 %1696 }
 0xa20   :  { %v1700_v16 = vsub.f32 %v1690_v11, %v1698_v4  ;;  %v1699_v17 = vmul.f32 0.03125, %v1697_v15 }
 0xa22   :  { %v1701_v18 = vsub.f32 %v1691_v13, %v1699_v17  ;;  %v1702_v19 = vmul.f32 %v1700_v16, %v1700_v16 }
 0xa24   :  { %v1704_v20 = vsel %vm282_vm1, %v1702_v19, 0.0  ;;  %v1703_v21 = vmul.f32 %v1701_v18, %v1701_v18 }
 0xa25   :  { %1705 = vadd.xlane.f32.xlu1 %v1704_v20 }
 0xa26   :  { %v1707_v22 = vsel %vm282_vm1, %v1703_v21, 0.0 }
 0xa27   :  { %1708 = vadd.xlane.f32.xlu0 %v1707_v22 }
 0xab2   :  { %v1706_v24 = vpop.xlane.xlu1 %1705 }
 0xab3   :  { %v1710_v25 = vmul.f32 0.03125, %v1706_v24 }
 0xab4   :  { %v1709_v26 = vpop.xlane.xlu0 %1708 }
 0xab5   :  { %v1712_v28 = vadd.f32 1e-05, %v1710_v25  ;;  %v1711_v29 = vmul.f32 0.03125, %v1709_v26 }
 0xab7   :  { %2094 = vrsqrt.f32 %v1712_v28  ;;  %v1713_v30 = vadd.f32 1e-05, %v1711_v29 }
 0xab9   :  { %2096 = vrsqrt.f32 %v1713_v30 }
 0xac1   :  { %v2095_v31 = vpop.eup %2094 }
 0xac2   :  { %v1716_v32 = vmul.f32 %v2095_v31, %v1700_v16 }
 0xac3   :  { %v2097_v33 = vpop.eup %2096 }
 0xac4   :  { %v1717_v34 = vmul.f32 %v2097_v33, %v1701_v18  ;;  %v1718_v35 = vmul.f32 %v3031_v23, %v1716_v32 }
 0xac6   :  { %v1719_v36 = vmul.f32 %v3031_v23, %v1717_v34  ;;  %v1720_v37 = vadd.f32 %v3034_v27, %v1718_v35 }
 0xac8   :  { %v1721_v39 = vadd.f32 %v3034_v27, %v1719_v36  ;;  %1722 = vst.msk [vmem:[#allocation29] sm:$0xff] %vm282_vm1, %v1720_v37 }
 0xaca   :  { %1723 = vst.msk [vmem:[#allocation29 + $0x8] sm:$0xff] %vm282_vm1, %v1721_v39 }
 0xacb   :  { %2461 = shalt.err (!%p2458_p6)
}
 0xacc   :  { %s2462_s30 = scalar_lea.hbm %s3096_s16, 256 }
 0xacd   :  { %p2463_p7 = scmp.ne.s32.totalorder %s3096_s16, %s2462_s30  ;;  %p2466_p8 = scmp.lt.u32.totalorder %s2462_s30, %s3096_s16 }
 0xacf   :  { %p2468_p9 = pnand %p2466_p8, %p2463_p7 }
 0xad1   :  { %2471 = shalt.err (!%p2468_p9)
}
 0xad2   :  { %1735 = dma.vmem_to_hbm [thread:$0]  %s1730_s1, 256, %s3096_s16, [#allocation5], %s2494_s18, %s2494_s18, %s2495_s19  }
 0xad3   :  { %2490 = dma.done.wait [#allocation5], 256  }
 0xad4   :  { %2491 = vsyncadd [#allocation5], 4294967040 }
 0xad5   :  { %1739 = vsyncpa [#allocation4], 1 }
 0xad6   :  { %1740 = vsyncpa [#allocation7], 1 }
 0xad7   :  { %1741 = vsyncpa [#allocation10], 1 }
 0xad8   :  { %1742 = vsyncpa [#allocation13], 1 }
 0xad9   :  { %1743 = vsyncpa [#allocation16], 1 }
 0xada   :  { %1744 = vsyncpa [#allocation19], 1 }
 0xadb   :  { %1745 = vsyncpa [#allocation22], 1 }
 0xadc   :  { %1746 = vsyncpa [#allocation25], 1 }
 0xadd   :  { %1747 = vsyncpa [#allocation28], 1 }
 0xade   :  { %1748 = vsyncpa [#allocation5], 1 }

// kernel: tpu_custom_call.1
= control target key start
LH: loop header
LB: loop body
LE: loop exit
PB: predicated region body
PF: predicated region fallthrough
CT: control target
= control target key end

     0   :  { %s3080_s0 = inlined_call_operand.hbm [shape: f32[16,32], index: 0, kind: input, shape index: {}]   ;;  %s3081_s1 = inlined_call_operand.hbm [shape: f32[2,8,8], index: 1, kind: input, shape index: {}]   ;;  %s3082_s2 = inlined_call_operand.hbm [shape: bf16[32,32], index: 2, kind: input, shape index: {}]   ;;  %s3083_s3 = inlined_call_operand.hbm [shape: f32[1,32], index: 3, kind: input, shape index: {}]   ;;  %s3084_s4 = inlined_call_operand.hbm [shape: bf16[32,32], index: 4, kind: input, shape index: {}]   ;;  %s3085_s5 = inlined_call_operand.hbm [shape: f32[1,32], index: 5, kind: input, shape index: {}]   ;;  %s3086_s6 = inlined_call_operand.hbm [shape: bf16[32,32], index: 6, kind: input, shape index: {}]   ;;  %s3087_s7 = inlined_call_operand.hbm [shape: f32[1,32], index: 7, kind: input, shape index: {}]   ;;  %s3088_s8 = inlined_call_operand.hbm [shape: bf16[32,32], index: 8, kind: input, shape index: {}]   ;;  %s3089_s9 = inlined_call_operand.hbm [shape: f32[1,32], index: 9, kind: input, shape index: {}]   ;;  %s3090_s10 = inlined_call_operand.hbm [shape: bf16[32,128], index: 10, kind: input, shape index: {}]   ;;  %s3091_s11 = inlined_call_operand.hbm [shape: f32[1,128], index: 11, kind: input, shape index: {}]   ;;  %s3092_s12 = inlined_call_operand.hbm [shape: bf16[128,32], index: 12, kind: input, shape index: {}]   ;;  %s3093_s13 = inlined_call_operand.hbm [shape: f32[1,32], index: 13, kind: input, shape index: {}]   ;;  %s3094_s14 = inlined_call_operand.hbm [shape: f32[1,32], index: 14, kind: input, shape index: {}]   ;;  %s3095_s15 = inlined_call_operand.hbm [shape: f32[1,32], index: 15, kind: input, shape index: {}]   ;;  %s3096_s16 = inlined_call_operand.hbm [shape: f32[16,32], index: 16, kind: output, shape index: {}]  }
   0x1   :  { %3098 = sst [smem:[#allocation40_spill]] %s3080_s0 }
   0x2   :  { %21 = vsyncpa [#allocation4], 0 }
   0x3   :  { %22 = vsyncpa [#allocation7], 0 }
   0x4   :  { %23 = vsyncpa [#allocation10], 0 }
   0x5   :  { %24 = vsyncpa [#allocation13], 0 }
   0x6   :  { %25 = vsyncpa [#allocation16], 0 }
   0x7   :  { %26 = vsyncpa [#allocation19], 0 }
   0x8   :  { %27 = vsyncpa [#allocation22], 0 }
   0x9   :  { %28 = vsyncpa [#allocation25], 0 }
   0xa   :  { %29 = vsyncpa [#allocation28], 0 }
   0xb   :  { %30 = vsyncpa [#allocation5], 0  ;;  %s2492_s21 = smov [#allocation6]   ;;  %s2493_s23 = smov [#allocation9]  }
   0xc   :  { %s48_s22 = sshll.u32 %s2492_s21, 4  ;;  %s73_s24 = sshll.u32 %s2493_s23, 4  ;;  %s49_s22 = int_to_ptr.vmem [resolvable:$true] %s48_s22  ;;  %s2605_s24 = int_to_ptr.vmem [resolvable:$true] %s73_s24 }
   0xd   :  { %s2098_s27 = scalar_lea.hbm %s3081_s1, 256 }
   0xe   :  { %p2099_p0 = scmp.ne.s32.totalorder %s3081_s1, %s2098_s27  ;;  %p2102_p1 = scmp.lt.u32.totalorder %s2098_s27, %s3081_s1 }
  0x10   :  { %p2104_p2 = pnand %p2102_p1, %p2099_p0 }
  0x12   :  { %2107 = shalt.err (!%p2104_p2)
}
  0x13   :  { %s2108_s17 = scalar_lea.vmem %s49_s22, 256  ;;  %p2113_p4 = scmp.lt.s32.totalorder %s49_s22, %s49_s22 }
  0x14   :  { %p2109_p3 = scmp.ne.s32.totalorder %s49_s22, %s2108_s17  ;;  %p2114_p5 = scmp.lt.s32.totalorder %s2108_s17, %s2108_s17 }
  0x16   :  { %p2115_p6 = por %p2114_p5, %p2113_p4 }
  0x18   :  { %p2116_p7 = pnand %p2115_p6, %p2109_p3 }
  0x1a   :  { %2119 = shalt.err (!%p2116_p7)
}
  0x1b   :  { %s2494_s18 = smov 128   ;;  %s2495_s19 = smov 8  }
  0x1c   :  { %54 = dma.hbm_to_vmem [thread:$0]  %s3081_s1, 256, %s49_s22, [#allocation7], %s2494_s18, %s2494_s18, %s2495_s19  }
  0x1d   :  { %s2120_s26 = scalar_lea.hbm %s3083_s3, 16 }
  0x1e   :  { %p2121_p8 = scmp.ne.s32.totalorder %s3083_s3, %s2120_s26  ;;  %p2124_p9 = scmp.lt.u32.totalorder %s2120_s26, %s3083_s3 }
  0x20   :  { %p2126_p10 = pnand %p2124_p9, %p2121_p8 }
  0x22   :  { %2129 = shalt.err (!%p2126_p10)
}
  0x23   :  { %s2130_s0 = scalar_lea.vmem %s2605_s24, 16  ;;  %s2134_s1 = scalar_lea.vmem %s2605_s24, 32 }
  0x24   :  { %p2131_p11 = scmp.ne.s32.totalorder %s2605_s24, %s2130_s0  ;;  %p2135_p12 = scmp.lt.s32.totalorder %s2605_s24, %s2605_s24 }
  0x25   :  { %p2136_p13 = scmp.lt.s32.totalorder %s2134_s1, %s2130_s0 }
  0x27   :  { %p2137_p0 = por %p2136_p13, %p2135_p12 }
  0x29   :  { %p2138_p1 = pnand %p2137_p0, %p2131_p11 }
  0x2b   :  { %2141 = shalt.err (!%p2138_p1)
}
  0x2c   :  { %76 = dma.hbm_to_vmem [thread:$0]  %s3083_s3, 16, %s2605_s24, [#allocation10]  }
  0x2d   :  { %s2496_s20 = smov [#allocation12]   ;;  %s2497_s23 = smov [#allocation15]  }
  0x2e   :  { %s95_s21 = sshll.u32 %s2496_s20, 4  ;;  %s117_s25 = sshll.u32 %s2497_s23, 4  ;;  %s96_s21 = int_to_ptr.vmem [resolvable:$true] %s95_s21  ;;  %s118_s25 = int_to_ptr.vmem [resolvable:$true] %s117_s25 }
  0x2f   :  { %s2142_s28 = scalar_lea.hbm %s3085_s5, 16 }
  0x30   :  { %p2143_p2 = scmp.ne.s32.totalorder %s3085_s5, %s2142_s28  ;;  %p2146_p3 = scmp.lt.u32.totalorder %s2142_s28, %s3085_s5 }
  0x32   :  { %p2148_p4 = pnand %p2146_p3, %p2143_p2 }
  0x34   :  { %2151 = shalt.err (!%p2148_p4)
}
  0x35   :  { %s2152_s3 = scalar_lea.vmem %s96_s21, 16  ;;  %s2156_s24 = scalar_lea.vmem %s96_s21, 32 }
  0x36   :  { %p2153_p5 = scmp.ne.s32.totalorder %s96_s21, %s2152_s3  ;;  %p2157_p6 = scmp.lt.s32.totalorder %s96_s21, %s96_s21 }
  0x37   :  { %p2158_p7 = scmp.lt.s32.totalorder %s2156_s24, %s2152_s3 }
  0x39   :  { %p2159_p8 = por %p2158_p7, %p2157_p6 }
  0x3b   :  { %p2160_p9 = pnand %p2159_p8, %p2153_p5 }
  0x3d   :  { %2163 = shalt.err (!%p2160_p9)
}
  0x3e   :  { %98 = dma.hbm_to_vmem [thread:$0]  %s3085_s5, 16, %s96_s21, [#allocation13]  }
  0x3f   :  { %s2164_s26 = scalar_lea.hbm %s3087_s7, 16 }
  0x40   :  { %p2165_p10 = scmp.ne.s32.totalorder %s3087_s7, %s2164_s26  ;;  %p2168_p11 = scmp.lt.u32.totalorder %s2164_s26, %s3087_s7 }
  0x42   :  { %p2170_p12 = pnand %p2168_p11, %p2165_p10 }
  0x44   :  { %2173 = shalt.err (!%p2170_p12)
}
  0x45   :  { %s2174_s0 = scalar_lea.vmem %s118_s25, 16  ;;  %s2178_s1 = scalar_lea.vmem %s118_s25, 32 }
  0x46   :  { %p2175_p13 = scmp.ne.s32.totalorder %s118_s25, %s2174_s0  ;;  %p2179_p0 = scmp.lt.s32.totalorder %s118_s25, %s118_s25 }
  0x47   :  { %p2180_p1 = scmp.lt.s32.totalorder %s2178_s1, %s2174_s0 }
  0x49   :  { %p2181_p2 = por %p2180_p1, %p2179_p0 }
  0x4b   :  { %p2182_p3 = pnand %p2181_p2, %p2175_p13 }
  0x4d   :  { %2185 = shalt.err (!%p2182_p3)
}
  0x4e   :  { %120 = dma.hbm_to_vmem [thread:$0]  %s3087_s7, 16, %s118_s25, [#allocation16]  }
  0x4f   :  { %s2498_s3 = smov [#allocation18]   ;;  %s2499_s22 = smov [#allocation21]  }
  0x50   :  { %s139_s24 = sshll.u32 %s2498_s3, 4  ;;  %s161_s17 = sshll.u32 %s2499_s22, 4  ;;  %s140_s24 = int_to_ptr.vmem [resolvable:$true] %s139_s24  ;;  %s162_s17 = int_to_ptr.vmem [resolvable:$true] %s161_s17 }
  0x51   :  { %s2186_s26 = scalar_lea.hbm %s3089_s9, 16 }
  0x52   :  { %p2187_p4 = scmp.ne.s32.totalorder %s3089_s9, %s2186_s26  ;;  %p2190_p5 = scmp.lt.u32.totalorder %s2186_s26, %s3089_s9 }
  0x54   :  { %p2192_p6 = pnand %p2190_p5, %p2187_p4 }
  0x56   :  { %2195 = shalt.err (!%p2192_p6)
}
  0x57   :  { %s2196_s7 = scalar_lea.vmem %s140_s24, 16  ;;  %s2200_s25 = scalar_lea.vmem %s140_s24, 32 }
  0x58   :  { %p2197_p7 = scmp.ne.s32.totalorder %s140_s24, %s2196_s7  ;;  %p2201_p8 = scmp.lt.s32.totalorder %s140_s24, %s140_s24 }
  0x59   :  { %p2202_p9 = scmp.lt.s32.totalorder %s2200_s25, %s2196_s7 }
  0x5b   :  { %p2203_p10 = por %p2202_p9, %p2201_p8 }
  0x5d   :  { %p2204_p11 = pnand %p2203_p10, %p2197_p7 }
  0x5f   :  { %2207 = shalt.err (!%p2204_p11)
}
  0x60   :  { %142 = dma.hbm_to_vmem [thread:$0]  %s3089_s9, 16, %s140_s24, [#allocation19]  }
  0x61   :  { %s2208_s3 = scalar_lea.hbm %s3091_s11, 16 }
  0x62   :  { %p2209_p12 = scmp.ne.s32.totalorder %s3091_s11, %s2208_s3  ;;  %p2212_p13 = scmp.lt.u32.totalorder %s2208_s3, %s3091_s11 }
  0x64   :  { %p2214_p0 = pnand %p2212_p13, %p2209_p12 }
  0x66   :  { %2217 = shalt.err (!%p2214_p0)
}
  0x67   :  { %s2218_s27 = scalar_lea.vmem %s162_s17, 16  ;;  %s2222_s28 = scalar_lea.vmem %s162_s17, 32 }
  0x68   :  { %p2219_p1 = scmp.ne.s32.totalorder %s162_s17, %s2218_s27  ;;  %p2223_p2 = scmp.lt.s32.totalorder %s162_s17, %s162_s17 }
  0x69   :  { %p2224_p3 = scmp.lt.s32.totalorder %s2222_s28, %s2218_s27 }
  0x6b   :  { %p2225_p4 = por %p2224_p3, %p2223_p2 }
  0x6d   :  { %p2226_p5 = pnand %p2225_p4, %p2219_p1 }
  0x6f   :  { %2229 = shalt.err (!%p2226_p5)
}
  0x70   :  { %164 = dma.hbm_to_vmem [thread:$0]  %s3091_s11, 16, %s162_s17, [#allocation22]  }
  0x71   :  { %s2500_s29 = smov [#allocation24]   ;;  %s2501_s7 = smov [#allocation3]  }
  0x72   :  { %s183_s30 = sshll.u32 %s2500_s29, 4  ;;  %s36_s25 = sshll.u32 %s2501_s7, 4  ;;  %s184_s30 = int_to_ptr.vmem [resolvable:$true] %s183_s30  ;;  %s2688_s25 = int_to_ptr.vmem [resolvable:$true] %s36_s25 }
  0x73   :  { %s2230_s5 = scalar_lea.hbm %s3093_s13, 16 }
  0x74   :  { %p2231_p6 = scmp.ne.s32.totalorder %s3093_s13, %s2230_s5  ;;  %p2234_p7 = scmp.lt.u32.totalorder %s2230_s5, %s3093_s13 }
  0x76   :  { %p2236_p8 = pnand %p2234_p7, %p2231_p6 }
  0x78   :  { %2239 = shalt.err (!%p2236_p8)
}
  0x79   :  { %s2240_s11 = scalar_lea.vmem %s184_s30, 16  ;;  %s2244_s17 = scalar_lea.vmem %s184_s30, 32 }
  0x7a   :  { %p2241_p9 = scmp.ne.s32.totalorder %s184_s30, %s2240_s11  ;;  %p2245_p10 = scmp.lt.s32.totalorder %s184_s30, %s184_s30 }
  0x7b   :  { %p2246_p11 = scmp.lt.s32.totalorder %s2244_s17, %s2240_s11 }
  0x7d   :  { %p2247_p12 = por %p2246_p11, %p2245_p10 }
  0x7f   :  { %p2248_p13 = pnand %p2247_p12, %p2241_p9 }
  0x81   :  { %2251 = shalt.err (!%p2248_p13)
}
  0x82   :  { %186 = dma.hbm_to_vmem [thread:$0]  %s3093_s13, 16, %s184_s30, [#allocation25]  }
  0x83   :  { %s3099_s9 = sld [smem:[#allocation40_spill]] }
  0x89   :  { %s2252_s24 = scalar_lea.hbm %s3099_s9, 256 }
  0x8a   :  { %p2253_p0 = scmp.ne.s32.totalorder %s3099_s9, %s2252_s24  ;;  %p2256_p1 = scmp.lt.u32.totalorder %s2252_s24, %s3099_s9 }
  0x8c   :  { %p2258_p2 = pnand %p2256_p1, %p2253_p0 }
  0x8e   :  { %2261 = shalt.err (!%p2258_p2)
}
  0x8f   :  { %s2262_s5 = scalar_lea.vmem %s2688_s25, 256  ;;  %p2267_p4 = scmp.lt.s32.totalorder %s2688_s25, %s2688_s25 }
  0x90   :  { %p2263_p3 = scmp.ne.s32.totalorder %s2688_s25, %s2262_s5  ;;  %p2268_p5 = scmp.lt.s32.totalorder %s2262_s5, %s2262_s5 }
  0x92   :  { %p2269_p6 = por %p2268_p5, %p2267_p4 }
  0x94   :  { %p2270_p7 = pnand %p2269_p6, %p2263_p3 }
  0x96   :  { %2273 = shalt.err (!%p2270_p7)
}
  0x97   :  { %42 = dma.hbm_to_vmem [thread:$0]  %s3099_s9, 256, %s2688_s25, [#allocation4], %s2494_s18, %s2494_s18, %s2495_s19  }
  0x98   :  { %s2502_s21 = smov [#allocation8]   ;;  %s2274_s11 = scalar_lea.hbm %s3082_s2, 256 }
  0x99   :  { %s60_s3 = sshll.u32 %s2502_s21, 4  ;;  %p2275_p8 = scmp.ne.s32.totalorder %s3082_s2, %s2274_s11  ;;  %s61_s3 = int_to_ptr.vmem [resolvable:$true] %s60_s3 }
  0x9a   :  { %p2278_p9 = scmp.lt.u32.totalorder %s2274_s11, %s3082_s2 }
  0x9c   :  { %p2280_p10 = pnand %p2278_p9, %p2275_p8 }
  0x9e   :  { %2283 = shalt.err (!%p2280_p10)
}
  0x9f   :  { %s2284_s28 = scalar_lea.vmem %s61_s3, 256  ;;  %p2289_p12 = scmp.lt.s32.totalorder %s61_s3, %s61_s3 }
  0xa0   :  { %p2285_p11 = scmp.ne.s32.totalorder %s61_s3, %s2284_s28  ;;  %p2290_p13 = scmp.lt.s32.totalorder %s2284_s28, %s2284_s28 }
  0xa2   :  { %p2291_p0 = por %p2290_p13, %p2289_p12 }
  0xa4   :  { %p2292_p1 = pnand %p2291_p0, %p2285_p11 }
  0xa6   :  { %2295 = shalt.err (!%p2292_p1)
}
  0xa7   :  { %s2503_s25 = smov 64   ;;  %s2504_s9 = smov 4  }
  0xa8   :  { %66 = dma.hbm_to_vmem [thread:$0]  %s3082_s2, 256, %s61_s3, [#allocation7], %s2503_s25, %s2503_s25, %s2504_s9  }
  0xa9   :  { %s2505_s7 = smov [#allocation11]   ;;  %s2506_s1 = smov [#allocation14]  }
  0xaa   :  { %s82_s0 = sshll.u32 %s2505_s7, 4  ;;  %s104_s5 = sshll.u32 %s2506_s1, 4  ;;  %s83_s0 = int_to_ptr.vmem [resolvable:$true] %s82_s0  ;;  %s105_s5 = int_to_ptr.vmem [resolvable:$true] %s104_s5 }
  0xab   :  { %s2296_s21 = scalar_lea.hbm %s3084_s4, 256 }
  0xac   :  { %p2297_p2 = scmp.ne.s32.totalorder %s3084_s4, %s2296_s21  ;;  %p2300_p3 = scmp.lt.u32.totalorder %s2296_s21, %s3084_s4 }
  0xae   :  { %p2302_p4 = pnand %p2300_p3, %p2297_p2 }
  0xb0   :  { %2305 = shalt.err (!%p2302_p4)
}
  0xb1   :  { %s2306_s2 = scalar_lea.vmem %s83_s0, 256  ;;  %p2311_p6 = scmp.lt.s32.totalorder %s83_s0, %s83_s0 }
  0xb2   :  { %p2307_p5 = scmp.ne.s32.totalorder %s83_s0, %s2306_s2  ;;  %p2312_p7 = scmp.lt.s32.totalorder %s2306_s2, %s2306_s2 }
  0xb4   :  { %p2313_p8 = por %p2312_p7, %p2311_p6 }
  0xb6   :  { %p2314_p9 = pnand %p2313_p8, %p2307_p5 }
  0xb8   :  { %2317 = shalt.err (!%p2314_p9)
}
  0xb9   :  { %88 = dma.hbm_to_vmem [thread:$0]  %s3084_s4, 256, %s83_s0, [#allocation10], %s2503_s25, %s2503_s25, %s2504_s9  }
  0xba   :  { %s2318_s28 = scalar_lea.hbm %s3086_s6, 256 }
  0xbb   :  { %p2319_p10 = scmp.ne.s32.totalorder %s3086_s6, %s2318_s28  ;;  %p2322_p11 = scmp.lt.u32.totalorder %s2318_s28, %s3086_s6 }
  0xbd   :  { %p2324_p12 = pnand %p2322_p11, %p2319_p10 }
  0xbf   :  { %2327 = shalt.err (!%p2324_p12)
}
  0xc0   :  { %s2328_s13 = scalar_lea.vmem %s105_s5, 256  ;;  %p2333_p0 = scmp.lt.s32.totalorder %s105_s5, %s105_s5 }
  0xc1   :  { %p2329_p13 = scmp.ne.s32.totalorder %s105_s5, %s2328_s13  ;;  %p2334_p1 = scmp.lt.s32.totalorder %s2328_s13, %s2328_s13 }
  0xc3   :  { %p2335_p2 = por %p2334_p1, %p2333_p0 }
  0xc5   :  { %p2336_p3 = pnand %p2335_p2, %p2329_p13 }
  0xc7   :  { %2339 = shalt.err (!%p2336_p3)
}
  0xc8   :  { %110 = dma.hbm_to_vmem [thread:$0]  %s3086_s6, 256, %s105_s5, [#allocation13], %s2503_s25, %s2503_s25, %s2504_s9  }
  0xc9   :  { %s2507_s30 = smov [#allocation17]   ;;  %s2508_s22 = smov [#allocation20]  }
  0xca   :  { %s126_s21 = sshll.u32 %s2507_s30, 4  ;;  %s148_s20 = sshll.u32 %s2508_s22, 4  ;;  %s127_s21 = int_to_ptr.vmem [resolvable:$true] %s126_s21  ;;  %s149_s20 = int_to_ptr.vmem [resolvable:$true] %s148_s20 }
  0xcb   :  { %s2340_s2 = scalar_lea.hbm %s3088_s8, 256 }
  0xcc   :  { %p2341_p4 = scmp.ne.s32.totalorder %s3088_s8, %s2340_s2  ;;  %p2344_p5 = scmp.lt.u32.totalorder %s2340_s2, %s3088_s8 }
  0xce   :  { %p2346_p6 = pnand %p2344_p5, %p2341_p4 }
  0xd0   :  { %2349 = shalt.err (!%p2346_p6)
}
  0xd1   :  { %s2350_s6 = scalar_lea.vmem %s127_s21, 256  ;;  %p2355_p8 = scmp.lt.s32.totalorder %s127_s21, %s127_s21 }
  0xd2   :  { %p2351_p7 = scmp.ne.s32.totalorder %s127_s21, %s2350_s6  ;;  %p2356_p9 = scmp.lt.s32.totalorder %s2350_s6, %s2350_s6 }
  0xd4   :  { %p2357_p10 = por %p2356_p9, %p2355_p8 }
  0xd6   :  { %p2358_p11 = pnand %p2357_p10, %p2351_p7 }
  0xd8   :  { %2361 = shalt.err (!%p2358_p11)
}
  0xd9   :  { %132 = dma.hbm_to_vmem [thread:$0]  %s3088_s8, 256, %s127_s21, [#allocation16], %s2503_s25, %s2503_s25, %s2504_s9  }
  0xda   :  { %s2362_s7 = scalar_lea.hbm %s3090_s10, 256 }
  0xdb   :  { %p2363_p12 = scmp.ne.s32.totalorder %s3090_s10, %s2362_s7  ;;  %p2366_p13 = scmp.lt.u32.totalorder %s2362_s7, %s3090_s10 }
  0xdd   :  { %p2368_p0 = pnand %p2366_p13, %p2363_p12 }
  0xdf   :  { %2371 = shalt.err (!%p2368_p0)
}
  0xe0   :  { %s2372_s30 = scalar_lea.vmem %s149_s20, 256  ;;  %p2377_p2 = scmp.lt.s32.totalorder %s149_s20, %s149_s20 }
  0xe1   :  { %p2373_p1 = scmp.ne.s32.totalorder %s149_s20, %s2372_s30  ;;  %p2378_p3 = scmp.lt.s32.totalorder %s2372_s30, %s2372_s30 }
  0xe3   :  { %p2379_p4 = por %p2378_p3, %p2377_p2 }
  0xe5   :  { %p2380_p5 = pnand %p2379_p4, %p2373_p1 }
  0xe7   :  { %2383 = shalt.err (!%p2380_p5)
}
  0xe8   :  { %154 = dma.hbm_to_vmem [thread:$0]  %s3090_s10, 256, %s149_s20, [#allocation19], %s2503_s25, %s2503_s25, %s2504_s9  }
  0xe9   :  { %s2509_s22 = smov [#allocation23]   ;;  %s2510_s17 = smov [#allocation26]  }
  0xea   :  { %s170_s11 = sshll.u32 %s2509_s22, 4  ;;  %s193_s2 = sshll.u32 %s2510_s17, 4  ;;  %s171_s11 = int_to_ptr.vmem [resolvable:$true] %s170_s11  ;;  %s194_s2 = int_to_ptr.vmem [resolvable:$true] %s193_s2 }
  0xeb   :  { %s2384_s26 = scalar_lea.hbm %s3092_s12, 1024 }
  0xec   :  { %p2385_p6 = scmp.ne.s32.totalorder %s3092_s12, %s2384_s26  ;;  %p2388_p7 = scmp.lt.u32.totalorder %s2384_s26, %s3092_s12 }
  0xee   :  { %p2390_p8 = pnand %p2388_p7, %p2385_p6 }
  0xf0   :  { %2393 = shalt.err (!%p2390_p8)
}
  0xf1   :  { %s2394_s10 = scalar_lea.vmem %s171_s11, 1024  ;;  %p2399_p10 = scmp.lt.s32.totalorder %s171_s11, %s171_s11 }
  0xf2   :  { %p2395_p9 = scmp.ne.s32.totalorder %s171_s11, %s2394_s10  ;;  %p2400_p11 = scmp.lt.s32.totalorder %s2394_s10, %s2394_s10 }
  0xf4   :  { %p2401_p12 = por %p2400_p11, %p2399_p10 }
  0xf6   :  { %p2402_p13 = pnand %p2401_p12, %p2395_p9 }
  0xf8   :  { %2405 = shalt.err (!%p2402_p13)
}
  0xf9   :  { %176 = dma.hbm_to_vmem [thread:$0]  %s3092_s12, 1024, %s171_s11, [#allocation22], %s2503_s25, %s2503_s25, %s2504_s9  }
  0xfa   :  { %s2406_s1 = scalar_lea.hbm %s3094_s14, 16 }
  0xfb   :  { %p2407_p0 = scmp.ne.s32.totalorder %s3094_s14, %s2406_s1  ;;  %p2410_p1 = scmp.lt.u32.totalorder %s2406_s1, %s3094_s14 }
  0xfd   :  { %p2412_p2 = pnand %p2410_p1, %p2407_p0 }
  0xff   :  { %2415 = shalt.err (!%p2412_p2)
}
 0x100   :  { %s2416_s8 = scalar_lea.vmem %s194_s2, 16  ;;  %s2420_s21 = scalar_lea.vmem %s194_s2, 32 }
 0x101   :  { %p2417_p3 = scmp.ne.s32.totalorder %s194_s2, %s2416_s8  ;;  %p2421_p4 = scmp.lt.s32.totalorder %s194_s2, %s194_s2 }
 0x102   :  { %p2422_p5 = scmp.lt.s32.totalorder %s2420_s21, %s2416_s8 }
 0x104   :  { %p2423_p6 = por %p2422_p5, %p2421_p4 }
 0x106   :  { %p2424_p7 = pnand %p2423_p6, %p2417_p3 }
 0x108   :  { %2427 = shalt.err (!%p2424_p7)
}
 0x109   :  { %196 = dma.hbm_to_vmem [thread:$0]  %s3094_s14, 16, %s194_s2, [#allocation25]  }
 0x10a   :  { %s2511_s9 = smov [#allocation27]   ;;  %s2428_s3 = scalar_lea.hbm %s3095_s15, 16 }
 0x10b   :  { %s203_s22 = sshll.u32 %s2511_s9, 4  ;;  %p2429_p8 = scmp.ne.s32.totalorder %s3095_s15, %s2428_s3  ;;  %s204_s22 = int_to_ptr.vmem [resolvable:$true] %s203_s22 }
 0x10c   :  { %p2432_p9 = scmp.lt.u32.totalorder %s2428_s3, %s3095_s15 }
 0x10e   :  { %p2434_p10 = pnand %p2432_p9, %p2429_p8 }
 0x110   :  { %2437 = shalt.err (!%p2434_p10)
}
 0x111   :  { %s2438_s5 = scalar_lea.vmem %s204_s22, 16  ;;  %s2442_s14 = scalar_lea.vmem %s204_s22, 32 }
 0x112   :  { %p2439_p11 = scmp.ne.s32.totalorder %s204_s22, %s2438_s5  ;;  %p2443_p12 = scmp.lt.s32.totalorder %s204_s22, %s204_s22 }
 0x113   :  { %p2444_p13 = scmp.lt.s32.totalorder %s2442_s14, %s2438_s5 }
 0x115   :  { %p2445_p0 = por %p2444_p13, %p2443_p12 }
 0x117   :  { %p2446_p1 = pnand %p2445_p0, %p2439_p11 }
 0x119   :  { %2449 = shalt.err (!%p2446_p1)
}
 0x11a   :  { %206 = dma.hbm_to_vmem [thread:$0]  %s3095_s15, 16, %s204_s22, [#allocation28]  }
 0x11b   :  { %2472 = dma.done.wait [#allocation4], 256  }
 0x11c   :  { %2473 = vsyncadd [#allocation4], 4294967040 }
 0x11d   :  { %2474 = dma.done.wait [#allocation7], 512  }
 0x11e   :  { %2475 = vsyncadd [#allocation7], 4294966784 }
 0x11f   :  { %2476 = dma.done.wait [#allocation10], 272  }
 0x120   :  { %2477 = vsyncadd [#allocation10], 4294967024 }
 0x121   :  { %2478 = dma.done.wait [#allocation13], 272  }
 0x122   :  { %2479 = vsyncadd [#allocation13], 4294967024 }
 0x123   :  { %2480 = dma.done.wait [#allocation16], 272  }
 0x124   :  { %2481 = vsyncadd [#allocation16], 4294967024 }
 0x125   :  { %2482 = dma.done.wait [#allocation19], 272  }
 0x126   :  { %2483 = vsyncadd [#allocation19], 4294967024 }
 0x127   :  { %2484 = dma.done.wait [#allocation22], 1040  }
 0x128   :  { %2485 = vsyncadd [#allocation22], 4294966256 }
 0x129   :  { %2486 = dma.done.wait [#allocation25], 32  }
 0x12a   :  { %2487 = vsyncadd [#allocation25], 4294967264 }
 0x12b   :  { %2488 = dma.done.wait [#allocation28], 16  }
 0x12c   :  { %2489 = vsyncadd [#allocation28], 4294967280  ;;  %v2512_v0 = vmov 0.0   ;;  %vm2513_vm0 = vmmov 0   ;;  %v2036_v1 = vld [vmem:[#allocation8] sm:$0xff]   ;;  %v2037_v2 = vld [vmem:[#allocation8 + $0x8] sm:$0xff]  }
 0x12d   :  { %1852 = vmatprep.subr.bf16.mxu0 %v2512_v0  ;;  %1856 = vmatprep.mubr.msk.bf16.mxu0 %vm2513_vm0, %v2512_v0  ;;  %v2842_v3 = vld [vmem:[#allocation3] sm:$0xff]  ;;  %v2844_v4 = vld [vmem:[#allocation3 + $0x8] sm:$0xff]  ;;  %vm282_vm1 = vcmask 261120   ;;  %v2038_v5 = vld [vmem:[#allocation11] sm:$0xff]   ;;  %vm461_vm2 = vcmask 64512   ;;  %s2514_s15 = smov 112  }
 0x12e   :  { %1876 = vmatprep.subr.bf16.mxu1 %v2512_v0  ;;  %1878 = vmatprep.mubr.msk.bf16.mxu1 %vm2513_vm0, %v2512_v0  ;;  %v258_v6 = vpack.c.bf16 %v2844_v4, %v2842_v3  ;;  %v2039_v7 = vld [vmem:[#allocation11 + $0x8] sm:$0xff]   ;;  %v1749_v8 = vld [vmem:[#allocation9] ss:$0 sm:$0xff]  ;;  %v1753_v18 = vld [vmem:[#allocation12] ss:$0 sm:$0xff]  ;;  %s2515_s10 = smov 120  }
 0x12f   :  { %1853 = vmatpush3.bf16.msra.mxu0 %v2036_v1  ;;  %v2040_v26 = vld [vmem:[#allocation14] sm:$0xff]   ;;  %v2041_v28 = vld [vmem:[#allocation14 + $0x8] sm:$0xff]   ;;  %s2516_s20 = smov 104   ;;  %v1757_v51 = vld [vmem:[#allocation15] ss:$0 sm:$0xff]  ;;  %vm521_vm3 = vcmask 1043456  }
 0x130   :  { %1854 = vmatprep.subr.bf16.mxu0 %v2512_v0  ;;  %v460_v50 = vld [vmem:[#allocation6] sm:$0xff]  ;;  %s2517_s24 = smov 16   ;;  %s2518_s29 = smov 24   ;;  %vm685_vm4 = vcmask 130112   ;;  %vm801_vm5 = vcmask 195712   ;;  %vm917_vm6 = vcmask 261312  }
 0x131   :  { %s2519_s7 = smov [#allocation29]  }
 0x132   :  { %s1729_s1 = sshll.u32 %s2519_s7, 4  ;;  %s1730_s1 = int_to_ptr.vmem [resolvable:$true] %s1729_s1 }
 0x133   :  { %1855 = vmatpush3.bf16.msra.mxu0 %v2037_v2  ;;  %s2450_s13 = scalar_lea.vmem %s1730_s1, 256  ;;  %p2455_p3 = scmp.lt.s32.totalorder %s1730_s1, %s1730_s1 }
 0x134   :  { %1860 = vmatprep.subr.bf16.mxu0 %v2512_v0  ;;  %p2451_p2 = scmp.ne.s32.totalorder %s1730_s1, %s2450_s13  ;;  %p2456_p4 = scmp.lt.s32.totalorder %s2450_s13, %s2450_s13 }
 0x136   :  { %1857 = vmatmul.mubr.msk.bf16.vlgmr.msra.gmra.mrb[0].mxu0 %vm282_vm1, %v258_v6  ;;  %p2457_p5 = por %p2456_p4, %p2455_p3 }
 0x137   :  { %1861 = vmatpush3.bf16.msra.mxu0 %v2038_v5  ;;  %1864 = vmatprep.mubr.msk.bf16.mxu0 %vm2513_vm0, %v2512_v0 }
 0x138   :  { %1862 = vmatprep.subr.bf16.mxu0 %v2512_v0  ;;  %p2458_p6 = pnand %p2457_p5, %p2451_p2 }
 0x13b   :  { %1863 = vmatpush3.bf16.msra.mxu0 %v2039_v7 }
 0x13c   :  { %1868 = vmatprep.subr.bf16.mxu0 %v2512_v0 }
 0x13e   :  { %1865 = vmatmul.mubr.msk.bf16.vlgmr.msra.gmra.mrb[4].mxu0 %vm282_vm1, %v258_v6 }
 0x13f   :  { %1872 = vmatprep.mubr.msk.bf16.mxu0 %vm2513_vm0, %v2512_v0  ;;  %1869 = vmatpush3.bf16.msra.mxu0 %v2040_v26 }
 0x140   :  { %1870 = vmatprep.subr.bf16.mxu0 %v2512_v0 }
 0x143   :  { %1871 = vmatpush3.bf16.msra.mxu0 %v2041_v28 }
 0x144   :  { %1882 = vmatprep.subr.bf16.mxu0 %v2512_v0 }
 0x146   :  { %1873 = vmatmul.mubr.msk.bf16.vlgmr.msra.gmra.mrb[8].mxu0 %vm282_vm1, %v258_v6 }
 0x147   :  { %1884 = vmatprep.mubr.msk.bf16.mxu0 %vm2513_vm0, %v2512_v0 }
 0x209   :  { %v320_v9 = vpop.f32.mrb[0].mxu0 }
 0x20a   :  { %v321_v10 = vadd.f32 %v1749_v8, %v320_v9  ;;  %v1858_v11 = vpop.f32.mrb[1].mxu0 }
 0x20b   :  { %v323_v12 = vpop.f32.mrb[2].mxu0 }
 0x20c   :  { %v324_v13 = vadd.f32 %v1749_v8, %v323_v12  ;;  %v1859_v14 = vpop.f32.mrb[3].mxu0  ;;  %v327_v15 = vmul.f32 0.35355338, %v321_v10 }
 0x20e   :  { %v328_v16 = vmul.f32 0.35355338, %v324_v13 }
 0x210   :  { %v329_v17 = vpack.c.bf16 %v328_v16, %v327_v15 }
 0x211   :  { %v387_v19 = vpop.f32.mrb[4].mxu0 }
 0x212   :  { %v1866_v20 = vpop.f32.mrb[5].mxu0  ;;  %v388_v22 = vadd.f32 %v1753_v18, %v387_v19  ;;  %v921_v29 = vrot.slane %v329_v17, 4 }
 0x213   :  { %v390_v21 = vpop.f32.mrb[6].mxu0 }
 0x214   :  { %v391_v23 = vadd.f32 %v1753_v18, %v390_v21  ;;  %v1867_v24 = vpop.f32.mrb[7].mxu0 }
 0x216   :  { %v394_v25 = vpack.c.bf16 %v391_v23, %v388_v22 }
 0x218   :  { %689 = vrot.lane.b32.xlu1 %v394_v25, %s2514_s15  ;;  %572 = vrot.lane.b32.xlu0 %v394_v25, %s2515_s10  ;;  %v466_v27 = vsel %vm461_vm2, %v394_v25, 0  ;;  %v922_v30 = vrot.slane %v394_v25, 4 }
 0x219   :  { %1877 = vmatpush3.bf16.xpose.msra.mxu1 %v466_v27  ;;  %v452_v53 = vpop.f32.mrb[8].mxu0 }
 0x21a   :  { %1888 = vmatprep.subr.bf16.mxu1 %v2512_v0  ;;  %v927_v40 = vsel %vm461_vm2, %v922_v30, 0  ;;  %v453_v56 = vadd.f32 %v1757_v51, %v452_v53  ;;  %v1874_v57 = vpop.f32.mrb[9].mxu0 }
 0x21b   :  { %v455_v59 = vpop.f32.mrb[10].mxu0 }
 0x21c   :  { %687 = vrot.lane.b32.xlu1 %v329_v17, %s2514_s15  ;;  %569 = vrot.lane.b32.xlu0 %v329_v17, %s2515_s10  ;;  %v456_v62 = vadd.f32 %v1757_v51, %v455_v59  ;;  %v1875_v63 = vpop.f32.mrb[11].mxu0 }
 0x21e   :  { %v2916_v1 = vpack.c.bf16 %v456_v62, %v453_v56 }
 0x220   :  { %803 = vrot.lane.b32.xlu1 %v329_v17, %s2516_s20  ;;  %805 = vrot.lane.b32.xlu0 %v394_v25, %s2516_s20  ;;  %v523_v2 = vsel %vm521_vm3, %v2916_v1, 0  ;;  %v979_v53 = vrot.slane %v2916_v1, 4 }
 0x221   :  { %1879 = vmatmul.mubr.msk.bf16.vlgmr.msra.gmra.mrb[0].mxu1 %vm461_vm2, %v329_v17  ;;  %1883 = vmatpush3.bf16.msra.mxu0 %v523_v2 }
 0x222   :  { %1890 = vmatprep.mubr.msk.bf16.mxu1 %vm2513_vm0, %v2512_v0  ;;  %1894 = vmatprep.subr.bf16.mxu0 %v2512_v0 }
 0x224   :  { %1029 = vrot.lane.b32.xlu1 %v921_v29, %s2515_s10  ;;  %1031 = vrot.lane.b32.xlu0 %v922_v30, %s2515_s10 }
 0x228   :  { %1144 = vrot.lane.b32.xlu1 %v921_v29, %s2514_s15  ;;  %1146 = vrot.lane.b32.xlu0 %v922_v30, %s2514_s15 }
 0x22c   :  { %1259 = vrot.lane.b32.xlu1 %v921_v29, %s2516_s20  ;;  %1261 = vrot.lane.b32.xlu0 %v922_v30, %s2516_s20 }
 0x28a   :  { %v573_v31 = vpop.permute.xlu0 %572  ;;  %v690_v33 = vpop.permute.xlu1 %689 }
 0x28b   :  { %v578_v32 = vsel %vm461_vm2, %v573_v31, 0  ;;  %v695_v35 = vsel %vm461_vm2, %v690_v33, 0 }
 0x28c   :  { %1889 = vmatpush3.bf16.xpose.msra.mxu1 %v578_v32 }
 0x28d   :  { %1900 = vmatprep.subr.bf16.mxu1 %v2512_v0 }
 0x28e   :  { %v570_v34 = vpop.permute.xlu0 %569  ;;  %v688_v37 = vpop.permute.xlu1 %687 }
 0x292   :  { %v806_v36 = vpop.permute.xlu0 %805  ;;  %v804_v39 = vpop.permute.xlu1 %803 }
 0x293   :  { %1891 = vmatmul.mubr.msk.bf16.vlgmr.msra.gmra.mrb[4].mxu1 %vm461_vm2, %v570_v34  ;;  %v811_v38 = vsel %vm461_vm2, %v806_v36, 0 }
 0x294   :  { %1901 = vmatpush3.bf16.xpose.msra.mxu1 %v695_v35  ;;  %1902 = vmatprep.mubr.msk.bf16.mxu1 %vm2513_vm0, %v2512_v0 }
 0x295   :  { %1912 = vmatprep.subr.bf16.mxu1 %v2512_v0 }
 0x296   :  { %v1032_v41 = vpop.permute.xlu0 %1031  ;;  %v1030_v44 = vpop.permute.xlu1 %1029 }
 0x297   :  { %v1037_v42 = vsel %vm461_vm2, %v1032_v41, 0 }
 0x29a   :  { %v1147_v43 = vpop.permute.xlu0 %1146  ;;  %v1145_v47 = vpop.permute.xlu1 %1144 }
 0x29b   :  { %1903 = vmatmul.mubr.msk.bf16.vlgmr.msra.gmra.mrb[8].mxu1 %vm461_vm2, %v688_v37  ;;  %v1152_v45 = vsel %vm461_vm2, %v1147_v43, 0 }
 0x29c   :  { %1913 = vmatpush3.bf16.xpose.msra.mxu1 %v811_v38  ;;  %1914 = vmatprep.mubr.msk.bf16.mxu1 %vm2513_vm0, %v2512_v0 }
 0x29d   :  { %1924 = vmatprep.subr.bf16.mxu1 %v2512_v0 }
 0x29e   :  { %v1262_v46 = vpop.permute.xlu0 %1261  ;;  %v1260_v49 = vpop.permute.xlu1 %1259 }
 0x29f   :  { %v1267_v48 = vsel %vm461_vm2, %v1262_v46, 0 }
 0x2a3   :  { %1915 = vmatmul.mubr.msk.bf16.vlgmr.msra.gmra.mrb[12].mxu1 %vm461_vm2, %v804_v39 }
 0x2a4   :  { %1925 = vmatpush3.bf16.xpose.msra.mxu1 %v927_v40  ;;  %1926 = vmatprep.mubr.msk.bf16.mxu1 %vm2513_vm0, %v2512_v0 }
 0x2a5   :  { %1936 = vmatprep.subr.bf16.mxu1 %v2512_v0 }
 0x2ab   :  { %1927 = vmatmul.mubr.msk.bf16.vlgmr.msra.gmra.mrb[16].mxu1 %vm461_vm2, %v921_v29 }
 0x2ac   :  { %1937 = vmatpush3.bf16.xpose.msra.mxu1 %v1037_v42  ;;  %1938 = vmatprep.mubr.msk.bf16.mxu1 %vm2513_vm0, %v2512_v0 }
 0x2ad   :  { %1948 = vmatprep.subr.bf16.mxu1 %v2512_v0 }
 0x2b3   :  { %1939 = vmatmul.mubr.msk.bf16.vlgmr.msra.gmra.mrb[20].mxu1 %vm461_vm2, %v1030_v44  ;;  %v920_v44 = vld [vmem:[#allocation6 + $0x8] sm:$0xff] }
 0x2b4   :  { %1949 = vmatpush3.bf16.xpose.msra.mxu1 %v1152_v45  ;;  %1950 = vmatprep.mubr.msk.bf16.mxu1 %vm2513_vm0, %v2512_v0 }
 0x2b5   :  { %1960 = vmatprep.subr.bf16.mxu1 %v2512_v0 }
 0x2bb   :  { %1951 = vmatmul.mubr.msk.bf16.vlgmr.msra.gmra.mrb[24].mxu1 %vm461_vm2, %v1145_v47 }
 0x2bc   :  { %1961 = vmatpush3.bf16.xpose.msra.mxu1 %v1267_v48  ;;  %1962 = vmatprep.mubr.msk.bf16.mxu1 %vm2513_vm0, %v2512_v0 }
 0x2bd   :  { %1972 = vmatprep.subr.bf16.mxu1 %v2512_v0 }
 0x2c3   :  { %1963 = vmatmul.mubr.msk.bf16.vlgmr.msra.gmra.mrb[28].mxu1 %vm461_vm2, %v1260_v49 }
 0x2c4   :  { %1976 = vmatprep.mubr.msk.bf16.mxu1 %vm2513_vm0, %v2512_v0 }
 0x2f4   :  { %v502_v52 = vpop.f32.mrb[0].mxu1 }
 0x2f5   :  { %v503_v54 = vadd.f32 %v502_v52, %v460_v50  ;;  %v1880_v55 = vpop.f32.mrb[1].mxu1 }
 0x2f6   :  { %v505_v58 = vpop.f32.mrb[2].mxu1 }
 0x2f7   :  { %v1881_v60 = vpop.f32.mrb[3].mxu1  ;;  %v508_v61 = vsel %vm461_vm2, %v503_v54, -inf }
 0x2f8   :  { %509 = vmax.xlane.f32.xlu0 %v508_v61 }
 0x366   :  { %v614_v5 = vpop.f32.mrb[4].mxu1 }
 0x367   :  { %v2921_v6 = vadd.f32 %v614_v5, %v460_v50  ;;  %v1892_v7 = vpop.f32.mrb[5].mxu1 }
 0x368   :  { %v617_v8 = vpop.f32.mrb[6].mxu1 }
 0x369   :  { %v1893_v9 = vpop.f32.mrb[7].mxu1  ;;  %v620_v10 = vsel %vm461_vm2, %v2921_v6, -inf }
 0x36a   :  { %621 = vmax.xlane.f32.xlu1 %v620_v10 }
 0x36e   :  { %v731_v11 = vpop.f32.mrb[8].mxu1 }
 0x36f   :  { %v2925_v12 = vadd.f32 %v731_v11, %v460_v50  ;;  %v1904_v13 = vpop.f32.mrb[9].mxu1 }
 0x370   :  { %v734_v14 = vpop.f32.mrb[10].mxu1 }
 0x371   :  { %v1905_v15 = vpop.f32.mrb[11].mxu1  ;;  %v737_v16 = vsel %vm461_vm2, %v2925_v12, -inf }
 0x372   :  { %738 = vmax.xlane.f32.xlu0 %v737_v16  ;;  %v984_v16 = vsel %vm521_vm3, %v979_v53, 0 }
 0x376   :  { %v847_v17 = vpop.f32.mrb[12].mxu1 }
 0x377   :  { %v2929_v18 = vadd.f32 %v847_v17, %v460_v50  ;;  %v1916_v19 = vpop.f32.mrb[13].mxu1 }
 0x378   :  { %v850_v20 = vpop.f32.mrb[14].mxu1 }
 0x379   :  { %v1917_v21 = vpop.f32.mrb[15].mxu1  ;;  %v853_v22 = vsel %vm461_vm2, %v2929_v18, -inf }
 0x37a   :  { %854 = vmax.xlane.f32.xlu0 %v853_v22 }
 0x37b   :  { %747 = vrot.lane.b32.xlu1 %v2916_v1, %s2514_s15 }
 0x37e   :  { %v963_v23 = vpop.f32.mrb[16].mxu1 }
 0x37f   :  { %v1928_v24 = vpop.f32.mrb[17].mxu1  ;;  %863 = vrot.lane.b32.xlu1 %v2916_v1, %s2516_s20  ;;  %v964_v45 = vadd.f32 %v963_v23, %v920_v44 }
 0x380   :  { %v966_v25 = vpop.f32.mrb[18].mxu1 }
 0x381   :  { %v1929_v26 = vpop.f32.mrb[19].mxu1  ;;  %v969_v47 = vsel %vm461_vm2, %v964_v45, -inf }
 0x385   :  { %v510_v27 = vpop.xlane.xlu0 %509 }
 0x386   :  { %v511_v28 = vsub.f32 %v503_v54, %v510_v27  ;;  %v1073_v29 = vpop.f32.mrb[20].mxu1 }
 0x387   :  { %v1940_v30 = vpop.f32.mrb[21].mxu1  ;;  %v2946_v46 = vadd.f32 %v1073_v29, %v920_v44 }
 0x388   :  { %v512_v31 = vmul.f32 1.442695, %v511_v28  ;;  %v1076_v32 = vpop.f32.mrb[22].mxu1 }
 0x389   :  { %v1941_v33 = vpop.f32.mrb[23].mxu1  ;;  %v1079_v49 = vsel %vm461_vm2, %v2946_v46, -inf }
 0x38a   :  { %2054 = vpow2.f32 %v512_v31 }
 0x38e   :  { %v1188_v34 = vpop.f32.mrb[24].mxu1 }
 0x38f   :  { %v1952_v35 = vpop.f32.mrb[25].mxu1  ;;  %v2953_v50 = vadd.f32 %v1188_v34, %v920_v44 }
 0x390   :  { %v1191_v36 = vpop.f32.mrb[26].mxu1  ;;  %631 = vrot.lane.b32.xlu0 %v2916_v1, %s2515_s10 }
 0x391   :  { %v1953_v37 = vpop.f32.mrb[27].mxu1  ;;  %v1194_v52 = vsel %vm461_vm2, %v2953_v50, -inf }
 0x394   :  { %v2939_v38 = vpop.eup %2054 }
 0x395   :  { %v517_v39 = vpack.c.bf16 %v2939_v38, %v2939_v38 }
 0x396   :  { %v1303_v40 = vpop.f32.mrb[28].mxu1 }
 0x397   :  { %1885 = vmatmul.mubr.msk.bf16.vlgmr.msra.gmra.mrb[12].mxu0 %vm461_vm2, %v517_v39  ;;  %v1964_v41 = vpop.f32.mrb[29].mxu1  ;;  %v2949_v48 = vadd.f32 %v1303_v40, %v920_v44 }
 0x398   :  { %v1306_v42 = vpop.f32.mrb[30].mxu1  ;;  %1896 = vmatprep.mubr.msk.bf16.mxu0 %vm2513_vm0, %v2512_v0  ;;  %v514_v41 = vsel %vm461_vm2, %v2939_v38, 0.0 }
 0x399   :  { %v1965_v43 = vpop.f32.mrb[31].mxu1  ;;  %v1309_v51 = vsel %vm461_vm2, %v2949_v48, -inf }
 0x3a3   :  { %970 = vmax.xlane.f32.xlu1 %v969_v47 }
 0x3a7   :  { %1080 = vmax.xlane.f32.xlu1 %v1079_v49 }
 0x3ab   :  { %1310 = vmax.xlane.f32.xlu1 %v1309_v51 }
 0x3af   :  { %1195 = vmax.xlane.f32.xlu0 %v1194_v52 }
 0x3bc   :  { %1204 = vrot.lane.b32.xlu1 %v979_v53, %s2514_s15 }
 0x3c5   :  { %1089 = vrot.lane.b32.xlu0 %v979_v53, %s2515_s10 }
 0x3c9   :  { %1319 = vrot.lane.b32.xlu0 %v979_v53, %s2516_s20 }
 0x3f7   :  { %v622_v54 = vpop.xlane.xlu1 %621 }
 0x3f8   :  { %v623_v55 = vsub.f32 %v2921_v6, %v622_v54 }
 0x3fa   :  { %v624_v56 = vmul.f32 1.442695, %v623_v55 }
 0x3fb   :  { %v748_v5 = vpop.permute.xlu1 %747 }
 0x3fc   :  { %2056 = vpow2.f32 %v624_v56  ;;  %v753_v10 = vsel %vm521_vm3, %v748_v5, 0 }
 0x3ff   :  { %v739_v57 = vpop.xlane.xlu0 %738  ;;  %v864_v11 = vpop.permute.xlu1 %863 }
 0x400   :  { %v740_v58 = vsub.f32 %v2925_v12, %v739_v57  ;;  %v869_v13 = vsel %vm521_vm3, %v864_v11, 0 }
 0x402   :  { %v741_v59 = vmul.f32 1.442695, %v740_v58 }
 0x404   :  { %2058 = vpow2.f32 %v741_v59 }
 0x406   :  { %v2057_v60 = vpop.eup %2056 }
 0x407   :  { %v855_v61 = vpop.xlane.xlu0 %854  ;;  %v626_v62 = vsel %vm461_vm2, %v2057_v60, 0.0  ;;  %v629_v8 = vpack.c.bf16 %v2057_v60, %v2057_v60 }
 0x408   :  { %627 = vadd.xlane.f32.xlu0 %v626_v62  ;;  %v856_v63 = vsub.f32 %v2929_v18, %v855_v61 }
 0x40a   :  { %v857_v7 = vmul.f32 1.442695, %v856_v63 }
 0x40b   :  { %v632_v1 = vpop.permute.xlu0 %631 }
 0x40c   :  { %v637_v2 = vsel %vm521_vm3, %v632_v1, 0  ;;  %2060 = vpow2.f32 %v857_v7 }
 0x40d   :  { %1895 = vmatpush3.bf16.msra.mxu0 %v637_v2 }
 0x40e   :  { %v2059_v6 = vpop.eup %2058  ;;  %1906 = vmatprep.subr.bf16.mxu0 %v2512_v0 }
 0x40f   :  { %v743_v9 = vsel %vm461_vm2, %v2059_v6, 0.0  ;;  %v746_v12 = vpack.c.bf16 %v2059_v6, %v2059_v6 }
 0x410   :  { %744 = vadd.xlane.f32.xlu0 %v743_v9  ;;  %1897 = vmatmul.mubr.msk.bf16.vlgmr.msra.gmra.mrb[16].mxu0 %vm461_vm2, %v629_v8 }
 0x411   :  { %1907 = vmatpush3.bf16.msra.mxu0 %v753_v10  ;;  %1908 = vmatprep.mubr.msk.bf16.mxu0 %vm2513_vm0, %v2512_v0 }
 0x412   :  { %1918 = vmatprep.subr.bf16.mxu0 %v2512_v0 }
 0x416   :  { %v2061_v14 = vpop.eup %2060 }
 0x417   :  { %v862_v15 = vpack.c.bf16 %v2061_v14, %v2061_v14  ;;  %v859_v36 = vsel %vm461_vm2, %v2061_v14, 0.0 }
 0x418   :  { %1909 = vmatmul.mubr.msk.bf16.vlgmr.msra.gmra.mrb[20].mxu0 %vm461_vm2, %v746_v12 }
 0x419   :  { %1919 = vmatpush3.bf16.msra.mxu0 %v869_v13  ;;  %1920 = vmatprep.mubr.msk.bf16.mxu0 %vm2513_vm0, %v2512_v0 }
 0x41a   :  { %1930 = vmatprep.subr.bf16.mxu0 %v2512_v0 }
 0x420   :  { %1921 = vmatmul.mubr.msk.bf16.vlgmr.msra.gmra.mrb[24].mxu0 %vm461_vm2, %v862_v15 }
 0x421   :  { %1931 = vmatpush3.bf16.msra.mxu0 %v984_v16  ;;  %1932 = vmatprep.mubr.msk.bf16.mxu0 %vm2513_vm0, %v2512_v0 }
 0x422   :  { %1942 = vmatprep.subr.bf16.mxu0 %v2512_v0 }
 0x430   :  { %v971_v17 = vpop.xlane.xlu1 %970 }
 0x431   :  { %v972_v18 = vsub.f32 %v964_v45, %v971_v17 }
 0x433   :  { %v973_v19 = vmul.f32 1.442695, %v972_v18 }
 0x434   :  { %v1081_v20 = vpop.xlane.xlu1 %1080 }
 0x435   :  { %2062 = vpow2.f32 %v973_v19  ;;  %v1082_v21 = vsub.f32 %v2946_v46, %v1081_v20 }
 0x437   :  { %v1083_v22 = vmul.f32 1.442695, %v1082_v21 }
 0x438   :  { %v1311_v23 = vpop.xlane.xlu1 %1310 }
 0x439   :  { %2064 = vpow2.f32 %v1083_v22  ;;  %v1312_v24 = vsub.f32 %v2949_v48, %v1311_v23 }
 0x43b   :  { %v1313_v28 = vmul.f32 1.442695, %v1312_v24 }
 0x43c   :  { %v1196_v25 = vpop.xlane.xlu0 %1195  ;;  %v1205_v35 = vpop.permute.xlu1 %1204 }
 0x43d   :  { %v1197_v26 = vsub.f32 %v2953_v50, %v1196_v25  ;;  %v1210_v39 = vsel %vm521_vm3, %v1205_v35, 0  ;;  %v2043_v35 = vld [vmem:[#allocation17 + $0x8] sm:$0xff]  }
 0x43f   :  { %v2063_v27 = vpop.eup %2062  ;;  %v1198_v29 = vmul.f32 1.442695, %v1197_v26 }
 0x440   :  { %v1090_v30 = vpop.permute.xlu0 %1089  ;;  %v978_v31 = vpack.c.bf16 %v2063_v27, %v2063_v27  ;;  %v975_v38 = vsel %vm461_vm2, %v2063_v27, 0.0 }
 0x441   :  { %2066 = vpow2.f32 %v1198_v29  ;;  %v1095_v32 = vsel %vm521_vm3, %v1090_v30, 0 }
 0x442   :  { %1933 = vmatmul.mubr.msk.bf16.vlgmr.msra.gmra.mrb[28].mxu0 %vm461_vm2, %v978_v31  ;;  %2068 = vpow2.f32 %v1313_v28 }
 0x443   :  { %v2065_v33 = vpop.eup %2064  ;;  %1943 = vmatpush3.bf16.msra.mxu0 %v1095_v32  ;;  %1944 = vmatprep.mubr.msk.bf16.mxu0 %vm2513_vm0, %v2512_v0  ;;  %v2042_v32 = vld [vmem:[#allocation17] sm:$0xff]  }
 0x444   :  { %v1085_v34 = vsel %vm461_vm2, %v2065_v33, 0.0  ;;  %1954 = vmatprep.subr.bf16.mxu0 %v2512_v0  ;;  %v1088_v37 = vpack.c.bf16 %v2065_v33, %v2065_v33  ;;  %v1320_v44 = vpop.permute.xlu0 %1319  ;;  %1973 = vmatpush3.bf16.msra.mxu1 %v2042_v32  ;;  %v2046_v32 = vld [vmem:[#allocation23] sm:$0xff]  }
 0x445   :  { %1086 = vadd.xlane.f32.xlu1 %v1085_v34  ;;  %v1325_v47 = vsel %vm521_vm3, %v1320_v44, 0  ;;  %1974 = vmatprep.subr.bf16.mxu1 %v2512_v0 }
 0x448   :  { %1975 = vmatpush3.bf16.msra.mxu1 %v2043_v35  ;;  %v2049_v35 = vld [vmem:[#allocation23 + $0x18] sm:$0xff]  }
 0x449   :  { %860 = vadd.xlane.f32.xlu1 %v859_v36  ;;  %1988 = vmatprep.subr.bf16.mxu1 %v2512_v0 }
 0x44a   :  { %1945 = vmatmul.mubr.msk.bf16.vlgmr.msra.gmra.mrb[32].mxu0 %vm461_vm2, %v1088_v37 }
 0x44b   :  { %v2067_v40 = vpop.eup %2066  ;;  %1955 = vmatpush3.bf16.msra.mxu0 %v1210_v39  ;;  %1956 = vmatprep.mubr.msk.bf16.mxu0 %vm2513_vm0, %v2512_v0 }
 0x44c   :  { %v1200_v42 = vsel %vm461_vm2, %v2067_v40, 0.0  ;;  %1966 = vmatprep.subr.bf16.mxu0 %v2512_v0  ;;  %v2069_v43 = vpop.eup %2068  ;;  %v1203_v46 = vpack.c.bf16 %v2067_v40, %v2067_v40 }
 0x44d   :  { %515 = vadd.xlane.f32.xlu1 %v514_v41  ;;  %1201 = vadd.xlane.f32.xlu0 %v1200_v42  ;;  %v1315_v45 = vsel %vm461_vm2, %v2069_v43, 0.0  ;;  %v1318_v48 = vpack.c.bf16 %v2069_v43, %v2069_v43 }
 0x451   :  { %1316 = vadd.xlane.f32.xlu0 %v1315_v45 }
 0x452   :  { %1957 = vmatmul.mubr.msk.bf16.vlgmr.msra.gmra.mrb[36].mxu0 %vm461_vm2, %v1203_v46 }
 0x453   :  { %1967 = vmatpush3.bf16.msra.mxu0 %v1325_v47  ;;  %1968 = vmatprep.mubr.msk.bf16.mxu0 %vm2513_vm0, %v2512_v0 }
 0x454   :  { %1980 = vmatprep.subr.bf16.mxu0 %v2512_v0 }
 0x455   :  { %976 = vadd.xlane.f32.xlu0 %v975_v38 }
 0x45a   :  { %1969 = vmatmul.mubr.msk.bf16.vlgmr.msra.gmra.mrb[40].mxu0 %vm461_vm2, %v1318_v48 }
 0x45b   :  { %1984 = vmatprep.mubr.msk.bf16.mxu0 %vm2513_vm0, %v2512_v0 }
 0x46a   :  { %v559_v49 = vpop.f32.mrb[12].mxu0 }
 0x46b   :  { %v1886_v50 = vpop.f32.mrb[13].mxu0 }
 0x46c   :  { %v562_v51 = vpop.f32.mrb[14].mxu0 }
 0x46d   :  { %v1887_v52 = vpop.f32.mrb[15].mxu0 }
 0x495   :  { %v628_v54 = vpop.xlane.xlu0 %627 }
 0x496   :  { %2070 = vrcp.f32 %v628_v54 }
 0x49d   :  { %v745_v57 = vpop.xlane.xlu0 %744 }
 0x4a0   :  { %v2071_v58 = vpop.eup %2070 }
 0x4d2   :  { %v1087_v53 = vpop.xlane.xlu1 %1086 }
 0x4d6   :  { %v861_v55 = vpop.xlane.xlu1 %860 }
 0x4da   :  { %v516_v56 = vpop.xlane.xlu1 %515  ;;  %v1202_v17 = vpop.xlane.xlu0 %1201 }
 0x4db   :  { %2072 = vrcp.f32 %v516_v56 }
 0x4dc   :  { %2074 = vrcp.f32 %v745_v57 }
 0x4dd   :  { %2076 = vrcp.f32 %v861_v55  ;;  %v1777_v55 = vld [vmem:[#allocation18] ss:$0 sm:$0xff] }
 0x4de   :  { %v1317_v18 = vpop.xlane.xlu0 %1316 }
 0x4e2   :  { %v977_v19 = vpop.xlane.xlu0 %976 }
 0x4e3   :  { %v673_v59 = vpop.f32.mrb[16].mxu0  ;;  %2078 = vrcp.f32 %v977_v19 }
 0x4e4   :  { %v680_v60 = vmul.f32 %v2071_v58, %v673_v59  ;;  %v1898_v61 = vpop.f32.mrb[17].mxu0  ;;  %2080 = vrcp.f32 %v1087_v53 }
 0x4e5   :  { %v2073_v62 = vpop.eup %2072  ;;  %v676_v63 = vpop.f32.mrb[18].mxu0  ;;  %2082 = vrcp.f32 %v1202_v17 }
 0x4e6   :  { %v566_v1 = vmul.f32 %v2073_v62, %v559_v49  ;;  %682 = vrot.lane.b32.xlu1 %v680_v60, %s2495_s19  ;;  %v1899_v2 = vpop.f32.mrb[19].mxu0  ;;  %v2075_v5 = vpop.eup %2074  ;;  %2084 = vrcp.f32 %v1317_v18 }
 0x4e7   :  { %v2077_v11 = vpop.eup %2076 }
 0x4e8   :  { %567 = vst.msk [vmem:[#allocation2] sm:$0xff] %vm461_vm2, %v566_v1 }
 0x4eb   :  { %v789_v7 = vpop.f32.mrb[20].mxu0 }
 0x4ec   :  { %v796_v6 = vmul.f32 %v2075_v5, %v789_v7  ;;  %v1910_v8 = vpop.f32.mrb[21].mxu0 }
 0x4ed   :  { %v792_v9 = vpop.f32.mrb[22].mxu0  ;;  %v2079_v20 = vpop.eup %2078 }
 0x4ee   :  { %798 = vrot.lane.b32.xlu1 %v796_v6, %s2517_s24  ;;  %v1911_v10 = vpop.f32.mrb[23].mxu0  ;;  %v2081_v26 = vpop.eup %2080 }
 0x4ef   :  { %v2083_v33 = vpop.eup %2082 }
 0x4f0   :  { %v2085_v41 = vpop.eup %2084 }
 0x4f3   :  { %v905_v12 = vpop.f32.mrb[24].mxu0 }
 0x4f4   :  { %v912_v13 = vmul.f32 %v2077_v11, %v905_v12  ;;  %v1922_v14 = vpop.f32.mrb[25].mxu0 }
 0x4f5   :  { %v908_v15 = vpop.f32.mrb[26].mxu0  ;;  %v2044_v14 = vld [vmem:[#allocation20] sm:$0xff]  }
 0x4f6   :  { %v1923_v16 = vpop.f32.mrb[27].mxu0  ;;  %1981 = vmatpush3.bf16.msra.mxu0 %v2044_v14 }
 0x4f7   :  { %1982 = vmatprep.subr.bf16.mxu0 %v2512_v0 }
 0x515   :  { %v1020_v21 = vpop.f32.mrb[28].mxu0 }
 0x516   :  { %v1027_v22 = vmul.f32 %v2079_v20, %v1020_v21  ;;  %v1934_v23 = vpop.f32.mrb[29].mxu0 }
 0x517   :  { %v1023_v24 = vpop.f32.mrb[30].mxu0  ;;  %v3031_v23 = vld [vmem:[#allocation26] ss:$0 sm:$0xff] }
 0x518   :  { %1028 = vst.msk [vmem:[#allocation2 + $0x8] sm:$0xff] %vm461_vm2, %v1027_v22  ;;  %v1935_v25 = vpop.f32.mrb[31].mxu0 }
 0x51d   :  { %v1131_v27 = vpop.f32.mrb[32].mxu0 }
 0x51e   :  { %v1138_v28 = vmul.f32 %v2081_v26, %v1131_v27  ;;  %v1946_v29 = vpop.f32.mrb[33].mxu0  ;;  %v3034_v27 = vld [vmem:[#allocation27] ss:$0 sm:$0xff] }
 0x51f   :  { %v1134_v30 = vpop.f32.mrb[34].mxu0 }
 0x520   :  { %1140 = vrot.lane.b32.xlu0 %v1138_v28, %s2495_s19  ;;  %v1947_v31 = vpop.f32.mrb[35].mxu0 }
 0x524   :  { %914 = vrot.lane.b32.xlu0 %v912_v13, %s2518_s29 }
 0x525   :  { %v1246_v34 = vpop.f32.mrb[36].mxu0 }
 0x526   :  { %v1253_v36 = vmul.f32 %v2083_v33, %v1246_v34  ;;  %v1958_v37 = vpop.f32.mrb[37].mxu0  ;;  %v2047_v33 = vld [vmem:[#allocation23 + $0x8] sm:$0xff]   ;;  %v2048_v34 = vld [vmem:[#allocation23 + $0x10] sm:$0xff]  }
 0x527   :  { %v1249_v39 = vpop.f32.mrb[38].mxu0  ;;  %v2051_v37 = vld [vmem:[#allocation23 + $0x28] sm:$0xff]  }
 0x528   :  { %1255 = vrot.lane.b32.xlu1 %v1253_v36, %s2517_s24  ;;  %v1959_v40 = vpop.f32.mrb[39].mxu0  ;;  %v2050_v36 = vld [vmem:[#allocation23 + $0x20] sm:$0xff]   ;;  %v2052_v39 = vld [vmem:[#allocation23 + $0x30] sm:$0xff]  }
 0x529   :  { %v2053_v40 = vld [vmem:[#allocation23 + $0x38] sm:$0xff]  }
 0x52d   :  { %v1361_v42 = vpop.f32.mrb[40].mxu0 }
 0x52e   :  { %v1368_v43 = vmul.f32 %v2085_v41, %v1361_v42  ;;  %v1970_v44 = vpop.f32.mrb[41].mxu0  ;;  %v1783_v41 = vld [vmem:[#allocation21] ss:$0 sm:$0xff] }
 0x52f   :  { %v1364_v45 = vpop.f32.mrb[42].mxu0 }
 0x530   :  { %1370 = vrot.lane.b32.xlu1 %v1368_v43, %s2518_s29  ;;  %v1971_v46 = vpop.f32.mrb[43].mxu0 }
 0x558   :  { %v683_v47 = vpop.permute.xlu1 %682 }
 0x559   :  { %686 = vst.msk [vmem:[#allocation2] sm:$0xff] %vm685_vm4, %v683_v47 }
 0x560   :  { %v799_v38 = vpop.permute.xlu1 %798 }
 0x561   :  { %802 = vst.msk [vmem:[#allocation2] sm:$0xff] %vm801_vm5, %v799_v38 }
 0x592   :  { %v1141_v48 = vpop.permute.xlu0 %1140 }
 0x593   :  { %1143 = vst.msk [vmem:[#allocation2 + $0x8] sm:$0xff] %vm685_vm4, %v1141_v48 }
 0x596   :  { %v915_v49 = vpop.permute.xlu0 %914 }
 0x597   :  { %918 = vst.msk [vmem:[#allocation2] sm:$0xff] %vm917_vm6, %v915_v49 }
 0x59a   :  { %v1256_v50 = vpop.permute.xlu1 %1255 }
 0x59b   :  { %1258 = vst.msk [vmem:[#allocation2 + $0x8] sm:$0xff] %vm801_vm5, %v1256_v50 }
 0x59e   :  { %v1374_v52 = vld [vmem:[#allocation2] sm:$0xff] }
 0x5a2   :  { %v1371_v51 = vpop.permute.xlu1 %1370 }
 0x5a3   :  { %1373 = vst.msk [vmem:[#allocation2 + $0x8] sm:$0xff] %vm917_vm6, %v1371_v51 }
 0x5aa   :  { %v1375_v53 = vld [vmem:[#allocation2 + $0x8] sm:$0xff] }
 0x5ab   :  { %v1376_v54 = vpack.c.bf16 %v1375_v53, %v1374_v52 }
 0x5ad   :  { %1977 = vmatmul.mubr.msk.bf16.vlgmr.msra.gmra.mrb[32].mxu1 %vm282_vm1, %v1376_v54 }
 0x5ae   :  { %2004 = vmatprep.mubr.msk.bf16.mxu1 %vm2513_vm0, %v2512_v0  ;;  %1989 = vmatpush3.bf16.msra.mxu1 %v2046_v32 }
 0x5af   :  { %1990 = vmatprep.subr.bf16.mxu1 %v2512_v0 }
 0x5b2   :  { %1991 = vmatpush3.bf16.msra.mxu1 %v2047_v33 }
 0x5b3   :  { %1992 = vmatprep.subr.bf16.mxu1 %v2512_v0 }
 0x5b6   :  { %1993 = vmatpush3.bf16.msra.mxu1 %v2048_v34 }
 0x5b7   :  { %1994 = vmatprep.subr.bf16.mxu1 %v2512_v0 }
 0x5ba   :  { %1995 = vmatpush3.bf16.msra.mxu1 %v2049_v35 }
 0x5bb   :  { %1996 = vmatprep.subr.bf16.mxu1 %v2512_v0 }
 0x5be   :  { %1997 = vmatpush3.bf16.msra.mxu1 %v2050_v36 }
 0x5bf   :  { %1998 = vmatprep.subr.bf16.mxu1 %v2512_v0 }
 0x5c2   :  { %1999 = vmatpush3.bf16.msra.mxu1 %v2051_v37 }
 0x5c3   :  { %2000 = vmatprep.subr.bf16.mxu1 %v2512_v0 }
 0x5c6   :  { %2001 = vmatpush3.bf16.msra.mxu1 %v2052_v39 }
 0x5c7   :  { %2002 = vmatprep.subr.bf16.mxu1 %v2512_v0 }
 0x5ca   :  { %2003 = vmatpush3.bf16.msra.mxu1 %v2053_v40 }
 0x680   :  { %v1437_v56 = vpop.f32.mrb[32].mxu1 }
 0x681   :  { %v1438_v57 = vadd.f32 %v1777_v55, %v1437_v56  ;;  %v1978_v58 = vpop.f32.mrb[33].mxu1 }
 0x682   :  { %v1440_v59 = vpop.f32.mrb[34].mxu1 }
 0x683   :  { %v1441_v60 = vadd.f32 %v1777_v55, %v1440_v59  ;;  %v1979_v61 = vpop.f32.mrb[35].mxu1  ;;  %v1446_v62 = vadd.f32 %v1438_v57, %v2842_v3 }
 0x685   :  { %v1448_v63 = vsel %vm282_vm1, %v1446_v62, 0.0  ;;  %v1447_v1 = vadd.f32 %v1441_v60, %v2844_v4  ;;  %v2045_v4 = vld [vmem:[#allocation20 + $0x8] sm:$0xff]  }
 0x686   :  { %1449 = vadd.xlane.f32.xlu0 %v1448_v63  ;;  %1983 = vmatpush3.bf16.msra.mxu0 %v2045_v4 }
 0x687   :  { %v1451_v2 = vsel %vm282_vm1, %v1447_v1, 0.0 }
 0x688   :  { %1452 = vadd.xlane.f32.xlu1 %v1451_v2  ;;  %v1787_v2 = vld [vmem:[#allocation24] ss:$0 sm:$0xff] }
 0x713   :  { %v1450_v5 = vpop.xlane.xlu0 %1449 }
 0x714   :  { %v1455_v7 = vmul.f32 0.03125, %v1450_v5 }
 0x715   :  { %v1453_v6 = vpop.xlane.xlu1 %1452 }
 0x716   :  { %v1457_v8 = vsub.f32 %v1446_v62, %v1455_v7  ;;  %v1456_v9 = vmul.f32 0.03125, %v1453_v6 }
 0x718   :  { %v1458_v10 = vsub.f32 %v1447_v1, %v1456_v9  ;;  %v1459_v11 = vmul.f32 %v1457_v8, %v1457_v8 }
 0x71a   :  { %v1461_v12 = vsel %vm282_vm1, %v1459_v11, 0.0  ;;  %v1460_v13 = vmul.f32 %v1458_v10, %v1458_v10 }
 0x71b   :  { %1462 = vadd.xlane.f32.xlu0 %v1461_v12 }
 0x71c   :  { %v1464_v3 = vsel %vm282_vm1, %v1460_v13, 0.0 }
 0x71f   :  { %1465 = vadd.xlane.f32.xlu0 %v1464_v3 }
 0x7a8   :  { %v1463_v15 = vpop.xlane.xlu0 %1462 }
 0x7a9   :  { %v1467_v16 = vmul.f32 0.03125, %v1463_v15 }
 0x7ab   :  { %v1469_v17 = vadd.f32 1e-05, %v1467_v16 }
 0x7ac   :  { %v1466_v18 = vpop.xlane.xlu0 %1465 }
 0x7ad   :  { %2086 = vrsqrt.f32 %v1469_v17  ;;  %v1468_v19 = vmul.f32 0.03125, %v1466_v18 }
 0x7af   :  { %v1470_v20 = vadd.f32 1e-05, %v1468_v19 }
 0x7b1   :  { %2088 = vrsqrt.f32 %v1470_v20 }
 0x7b7   :  { %v2087_v21 = vpop.eup %2086 }
 0x7b8   :  { %v1473_v22 = vmul.f32 %v2087_v21, %v1457_v8 }
 0x7ba   :  { %v1481_v25 = vmul.f32 %v3031_v23, %v1473_v22 }
 0x7bb   :  { %v2089_v24 = vpop.eup %2088 }
 0x7bc   :  { %v1474_v26 = vmul.f32 %v2089_v24, %v1458_v10  ;;  %v3038_v29 = vadd.f32 %v3034_v27, %v1481_v25 }
 0x7be   :  { %v1482_v28 = vmul.f32 %v3031_v23, %v1474_v26 }
 0x7c0   :  { %v3041_v30 = vadd.f32 %v3034_v27, %v1482_v28 }
 0x7c2   :  { %v1491_v31 = vpack.c.bf16 %v3041_v30, %v3038_v29 }
 0x7c4   :  { %1985 = vmatmul.mubr.msk.bf16.vlgmr.msra.gmra.mrb[44].mxu0 %vm282_vm1, %v1491_v31 }
 0x897   :  { %v1552_v42 = vpop.f32.mrb[44].mxu0 }
 0x898   :  { %v1553_v43 = vadd.f32 %v1783_v41, %v1552_v42  ;;  %v1986_v44 = vpop.f32.mrb[45].mxu0 }
 0x899   :  { %v1555_v45 = vpop.f32.mrb[46].mxu0 }
 0x89a   :  { %v1561_v46 = vmul.f32 %v1553_v43, %v1553_v43  ;;  %v1556_v47 = vadd.f32 %v1783_v41, %v1555_v45  ;;  %v1987_v38 = vpop.f32.mrb[47].mxu0  ;;  %v1559_v59 = vmul.f32 0.5, %v1553_v43 }
 0x89c   :  { %v1563_v48 = vmul.f32 %v1561_v46, %v1553_v43  ;;  %v1562_v49 = vmul.f32 %v1556_v47, %v1556_v47  ;;  %v1560_v60 = vmul.f32 0.5, %v1556_v47 }
 0x89e   :  { %v1565_v50 = vmul.f32 0.044715, %v1563_v48  ;;  %v1564_v51 = vmul.f32 %v1562_v49, %v1556_v47 }
 0x8a0   :  { %v1567_v52 = vadd.f32 %v1565_v50, %v1553_v43  ;;  %v1566_v53 = vmul.f32 0.044715, %v1564_v51 }
 0x8a2   :  { %v1569_v54 = vmul.f32 0.7978846, %v1567_v52  ;;  %v1568_v55 = vadd.f32 %v1566_v53, %v1556_v47 }
 0x8a4   :  { %2090 = vtanh.f32 %v1569_v54  ;;  %v1570_v56 = vmul.f32 0.7978846, %v1568_v55 }
 0x8a6   :  { %2092 = vtanh.f32 %v1570_v56 }
 0x8ae   :  { %v2091_v0 = vpop.eup %2090 }
 0x8af   :  { %v1573_v57 = vadd.f32 1.0, %v2091_v0 }
 0x8b0   :  { %v2093_v58 = vpop.eup %2092 }
 0x8b1   :  { %v1574_v61 = vadd.f32 1.0, %v2093_v58  ;;  %v1575_v62 = vmul.f32 %v1573_v57, %v1559_v59 }
 0x8b3   :  { %v1576_v63 = vmul.f32 %v1574_v61, %v1560_v60 }
 0x8b5   :  { %v1577_v1 = vpack.c.bf16 %v1576_v63, %v1575_v62 }
 0x8b7   :  { %2005 = vmatmul.mubr.bf16.vlgmr.msra.gmra.mrb[36].mxu1 %v1577_v1 }
 0x98a   :  { %v1683_v5 = vpop.f32.mrb[36].mxu1 }
 0x98b   :  { %v1684_v7 = vadd.f32 %v1787_v2, %v1683_v5  ;;  %v2006_v6 = vpop.f32.mrb[37].mxu1 }
 0x98c   :  { %v1686_v8 = vpop.f32.mrb[38].mxu1 }
 0x98d   :  { %v1687_v9 = vadd.f32 %v1787_v2, %v1686_v8  ;;  %v2007_v10 = vpop.f32.mrb[39].mxu1  ;;  %v1690_v11 = vadd.f32 %v1684_v7, %v3038_v29 }
 0x98f   :  { %v1692_v12 = vsel %vm282_vm1, %v1690_v11, 0.0  ;;  %v1691_v13 = vadd.f32 %v1687_v9, %v3041_v30 }
 0x990   :  { %1693 = vadd.xlane.f32.xlu1 %v1692_v12 }
 0x991   :  { %v1695_v3 = vsel %vm282_vm1, %v1691_v13, 0.0 }
 0x992   :  { %1696 = vadd.xlane.f32.xlu0 %v1695_v3 }
 0xa1d   :  { %v1694_v14 = vpop.xlane.xlu1 %1693 }
 0xa1e   :  { %v1698_v4 = vmul.f32 0.03125, %v1694_v14 }
 0xa1f   :  { %v1697_v15 = vpop.xlane.xlu0 %1696 }
 0xa20   :  { %v1700_v16 = vsub.f32 %v1690_v11, %v1698_v4  ;;  %v1699_v17 = vmul.f32 0.03125, %v1697_v15 }
 0xa22   :  { %v1701_v18 = vsub.f32 %v1691_v13, %v1699_v17  ;;  %v1702_v19 = vmul.f32 %v1700_v16, %v1700_v16 }
 0xa24   :  { %v1704_v20 = vsel %vm282_vm1, %v1702_v19, 0.0  ;;  %v1703_v21 = vmul.f32 %v1701_v18, %v1701_v18 }
 0xa25   :  { %1705 = vadd.xlane.f32.xlu1 %v1704_v20 }
 0xa26   :  { %v1707_v22 = vsel %vm282_vm1, %v1703_v21, 0.0 }
 0xa27   :  { %1708 = vadd.xlane.f32.xlu0 %v1707_v22 }
 0xab2   :  { %v1706_v24 = vpop.xlane.xlu1 %1705 }
 0xab3   :  { %v1710_v25 = vmul.f32 0.03125, %v1706_v24 }
 0xab4   :  { %v1709_v26 = vpop.xlane.xlu0 %1708 }
 0xab5   :  { %v1712_v28 = vadd.f32 1e-05, %v1710_v25  ;;  %v1711_v29 = vmul.f32 0.03125, %v1709_v26 }
 0xab7   :  { %2094 = vrsqrt.f32 %v1712_v28  ;;  %v1713_v30 = vadd.f32 1e-05, %v1711_v29 }
 0xab9   :  { %2096 = vrsqrt.f32 %v1713_v30 }
 0xac1   :  { %v2095_v31 = vpop.eup %2094 }
 0xac2   :  { %v1716_v32 = vmul.f32 %v2095_v31, %v1700_v16 }
 0xac3   :  { %v2097_v33 = vpop.eup %2096 }
 0xac4   :  { %v1717_v34 = vmul.f32 %v2097_v33, %v1701_v18  ;;  %v1718_v35 = vmul.f32 %v3031_v23, %v1716_v32 }
 0xac6   :  { %v1719_v36 = vmul.f32 %v3031_v23, %v1717_v34  ;;  %v1720_v37 = vadd.f32 %v3034_v27, %v1718_v35 }
 0xac8   :  { %v1721_v39 = vadd.f32 %v3034_v27, %v1719_v36  ;;  %1722 = vst.msk [vmem:[#allocation29] sm:$0xff] %vm282_vm1, %v1720_v37 }
 0xaca   :  { %1723 = vst.msk [vmem:[#allocation29 + $0x8] sm:$0xff] %vm282_vm1, %v1721_v39 }
 0xacb   :  { %2461 = shalt.err (!%p2458_p6)
}
 0xacc   :  { %s2462_s30 = scalar_lea.hbm %s3096_s16, 256 }
 0xacd   :  { %p2463_p7 = scmp.ne.s32.totalorder %s3096_s16, %s2462_s30  ;;  %p2466_p8 = scmp.lt.u32.totalorder %s2462_s30, %s3096_s16 }
 0xacf   :  { %p2468_p9 = pnand %p2466_p8, %p2463_p7 }
 0xad1   :  { %2471 = shalt.err (!%p2468_p9)
}
 0xad2   :  { %1735 = dma.vmem_to_hbm [thread:$0]  %s1730_s1, 256, %s3096_s16, [#allocation5], %s2494_s18, %s2494_s18, %s2495_s19  }
 0xad3   :  { %2490 = dma.done.wait [#allocation5], 256  }
 0xad4   :  { %2491 = vsyncadd [#allocation5], 4294967040 }
 0xad5   :  { %1739 = vsyncpa [#allocation4], 1 }
 0xad6   :  { %1740 = vsyncpa [#allocation7], 1 }
 0xad7   :  { %1741 = vsyncpa [#allocation10], 1 }
 0xad8   :  { %1742 = vsyncpa [#allocation13], 1 }
 0xad9   :  { %1743 = vsyncpa [#allocation16], 1 }
 0xada   :  { %1744 = vsyncpa [#allocation19], 1 }
 0xadb   :  { %1745 = vsyncpa [#allocation22], 1 }
 0xadc   :  { %1746 = vsyncpa [#allocation25], 1 }
 0xadd   :  { %1747 = vsyncpa [#allocation28], 1 }
 0xade   :  { %1748 = vsyncpa [#allocation5], 1 }

</bundles_post_ra>
